<compile_context>
chip_gen: v7x
topology: tpu7x:2x2x1
jax: 0.10.0
libtpu: 0.0.40
codegen_flags: <defaults>
</compile_context>

<pallas_src>
import jax
import jax.numpy as jnp
from jax import lax
from jax.experimental import pallas as pl
from jax.experimental.pallas import tpu as pltpu

NEG_SLOPE = 0.01   # nn.LeakyReLU default
BN_EPS = 1e-5      # nn.BatchNorm2d default
LATENT_DIMS = 32
HEAD_PAD = 128     # mu|logvar concatenated and zero-padded to 128 lanes


def _leaky_relu(y):
    return jnp.where(y >= 0.0, y, NEG_SLOPE * y)


# ----------------------------- Pallas kernels ------------------------------

def conv_gemm_kernel(x_ref, w_ref, b_ref, o_ref):
    # (bm, K) bf16 @ (K, Cout) bf16 -> f32 acc, + bias, LeakyReLU, store bf16.
    y = jnp.dot(x_ref[...], w_ref[...], preferred_element_type=jnp.float32)
    o_ref[...] = _leaky_relu(y + b_ref[...]).astype(o_ref.dtype)


def conv_gemm_bn_kernel(x_ref, w_ref, b_ref, g_ref, beta_ref, o_ref):
    # Conv-as-GEMM + training-mode BatchNorm (stats over the full M = N*OH*OW
    # rows; MUST run with grid=(1,) / full-M block so statistics are exact)
    # + affine + LeakyReLU, fused in VMEM.
    y = jnp.dot(x_ref[...], w_ref[...], preferred_element_type=jnp.float32)
    y = y + b_ref[...]
    m = jnp.mean(y, axis=0, keepdims=True)
    d = y - m
    v = jnp.mean(d * d, axis=0, keepdims=True)          # shifted, no cancellation
    inv = jax.lax.rsqrt(v + BN_EPS)
    yn = d * inv * g_ref[...] + beta_ref[...]
    o_ref[...] = _leaky_relu(yn).astype(o_ref.dtype)


def linear_head_kernel(x_ref, w_ref, s_ref, b_ref, wh_ref, part_ref):
    # Fused per column tile: h = LeakyReLU((x @ wq)*scale + bl); partial head
    # accumulation part += h @ wh (wh = [Wmu | Wlv | 0] padded to 128 lanes).
    # Grid = (core "parallel", col-tile "arbitrary"); each core owns its own
    # partial output block; h never leaves VMEM.
    j = pl.program_id(1)

    @pl.when(j == 0)
    def _init():
        part_ref[...] = jnp.zeros_like(part_ref)

    w = w_ref[...].astype(jnp.bfloat16)     # int8 -> bf16 is exact, single VPU op
    h = jnp.dot(x_ref[...], w, preferred_element_type=jnp.float32)
    h = _leaky_relu(h * s_ref[...] + b_ref[...])
    part_ref[...] += jnp.dot(h.astype(jnp.bfloat16), wh_ref[...],
                             preferred_element_type=jnp.float32)


# ------------------------------- glue / wrappers ----------------------------

def conv_block(x, wmat, b, kh, kw, stride, padding, cout, bn=None, num_blocks=None):
    """x: (N, H, W, Cin) bf16.  wmat: (Cin*kh*kw, Cout) bf16 in (Cin, kh, kw)
    feature order (== PyTorch weight.view(Cout, -1)).  Returns (N,OH,OW,Cout) bf16."""
    patches = lax.conv_general_dilated_patches(
        x, (kh, kw), (stride, stride),
        [(padding, padding), (padding, padding)],
        dimension_numbers=("NHWC", "HWIO", "NHWC"))
    N, OH, OW, K = patches.shape
    M = N * OH * OW
    patches = patches.reshape(M, K)

    if bn is None:
        if num_blocks is None or num_blocks <= 1:
            nb, bm, Mp = 1, M, M
        else:
            nb = num_blocks
            bm = pl.cdiv(pl.cdiv(M, nb), 8) * 8          # 8-row (sublane) aligned
            Mp = bm * nb
            if Mp != M:
                patches = jnp.pad(patches, ((0, Mp - M), (0, 0)))
        out = pl.pallas_call(
            conv_gemm_kernel,
            out_shape=jax.ShapeDtypeStruct((Mp, cout), jnp.bfloat16),
            grid=(nb,),
            in_specs=[pl.BlockSpec((bm, K), lambda i: (i, 0)),
                      pl.BlockSpec((K, cout), lambda i: (0, 0)),
                      pl.BlockSpec((1, cout), lambda i: (0, 0))],
            out_specs=pl.BlockSpec((bm, cout), lambda i: (i, 0)),
            compiler_params=pltpu.CompilerParams(
                dimension_semantics=("parallel",)),
        )(patches, wmat, b)
        out = out[:M]
    else:
        gamma, beta = bn
        # Full-M single block: BatchNorm statistics must see the whole batch.
        out = pl.pallas_call(
            conv_gemm_bn_kernel,
            out_shape=jax.ShapeDtypeStruct((M, cout), jnp.bfloat16),
            grid=(1,),
            in_specs=[pl.BlockSpec((M, K), lambda i: (0, 0)),
                      pl.BlockSpec((K, cout), lambda i: (0, 0)),
                      pl.BlockSpec((1, cout), lambda i: (0, 0)),
                      pl.BlockSpec((1, cout), lambda i: (0, 0)),
                      pl.BlockSpec((1, cout), lambda i: (0, 0))],
            out_specs=pl.BlockSpec((M, cout), lambda i: (0, 0)),
        )(patches, wmat, b, gamma, beta)

    return out.reshape(N, OH, OW, cout)


def linear_head_partial(h, wl_q, wl_scale, bl, wh, block_n=256, ncore=2):
    """Fused 9216->1024 linear (+LeakyReLU) and mu/logvar head partial sums.
    Returns (ncore, M, HEAD_PAD) f32 partials (one per weight-column half)."""
    M, K = h.shape
    Nl = wl_q.shape[1]                  # 1024
    Hp = wh.shape[1]                    # 128
    nj = Nl // (ncore * block_n)
    assert Nl == ncore * nj * block_n

    def col(c, j):
        return c * nj + j

    return pl.pallas_call(
        linear_head_kernel,
        out_shape=jax.ShapeDtypeStruct((ncore, M, Hp), jnp.float32),
        grid=(ncore, nj),
        in_specs=[pl.BlockSpec((M, K), lambda c, j: (0, 0)),
                  pl.BlockSpec((K, block_n), lambda c, j: (0, col(c, j))),
                  pl.BlockSpec((1, block_n), lambda c, j: (0, col(c, j))),
                  pl.BlockSpec((1, block_n), lambda c, j: (0, col(c, j))),
                  pl.BlockSpec((block_n, Hp), lambda c, j: (col(c, j), 0))],
        out_specs=pl.BlockSpec((None, M, Hp), lambda c, j: (c, 0, 0)),
        compiler_params=pltpu.CompilerParams(
            dimension_semantics=("parallel", "arbitrary")),
    )(h, wl_q, wl_scale, bl, wh)


def variational_encoder_forward(prep, x, eps):
    # One-time relayout: NCHW f32 input -> NHWC bf16 activation carry.
    x = jnp.transpose(x, (0, 2, 3, 1)).astype(jnp.bfloat16)
    # encoder_layer1: Conv2d(3, 32, 4, stride=2) + LeakyReLU   (2 fat M tiles)
    x = conv_block(x, prep["w1"], prep["b1"], 4, 4, 2, 0, 32, num_blocks=2)
    # encoder_layer2: Conv2d(32, 64, 3, stride=2, padding=1) + BN + LeakyReLU
    x = conv_block(x, prep["w2"], prep["b2"], 3, 3, 2, 1, 64,
                   bn=(prep["g2"], prep["bt2"]))
    # encoder_layer3: Conv2d(64, 128, 4, stride=2) + LeakyReLU
    x = conv_block(x, prep["w3"], prep["b3"], 4, 4, 2, 0, 128)
    # encoder_layer4: Conv2d(128, 256, 3, stride=2) + BN + LeakyReLU
    x = conv_block(x, prep["w4"], prep["b4"], 3, 3, 2, 0, 256,
                   bn=(prep["g4"], prep["bt4"]))
    # flatten (NHWC order; linear weight rows pre-permuted to match PyTorch's
    # CHW flatten) + int8 linear + head partials, all in one kernel.
    n = x.shape[0]
    h = x.reshape(n, -1)                                      # (N, 9216) bf16
    partial = linear_head_partial(h, prep["wl_q"], prep["wl_scale"],
                                  prep["bl"], prep["wh"])
    # Tiny epilogue: combine the two per-core partials, bias, reparameterize.
    acc = jnp.sum(partial, axis=0) + prep["bh"]               # (N, 128) f32
    mu = acc[:, :LATENT_DIMS]
    logvar = acc[:, LATENT_DIMS:2 * LATENT_DIMS]
    z = mu + jnp.exp(0.5 * logvar) * eps
    return mu, logvar, z


# ------------------------------ parameter init ------------------------------

def init_params(key, latent_dims=LATENT_DIMS):
    """PyTorch-shaped parameters (f32)."""
    ks = jax.random.split(key, 14)

    def w(k, shape, fan_in):
        return jax.random.normal(k, shape, jnp.float32) / jnp.sqrt(jnp.float32(fan_in))

    p = {}
    p["w1"] = w(ks[0], (32, 3, 4, 4), 3 * 4 * 4)
    p["b1"] = w(ks[1], (32,), 3 * 4 * 4)
    p["w2"] = w(ks[2], (64, 32, 3, 3), 32 * 3 * 3)
    p["b2"] = w(ks[3], (64,), 32 * 3 * 3)
    p["g2"] = jnp.ones((64,), jnp.float32)
    p["bt2"] = jnp.zeros((64,), jnp.float32)
    p["w3"] = w(ks[4], (128, 64, 4, 4), 64 * 4 * 4)
    p["b3"] = w(ks[5], (128,), 64 * 4 * 4)
    p["w4"] = w(ks[6], (256, 128, 3, 3), 128 * 3 * 3)
    p["b4"] = w(ks[7], (256,), 128 * 3 * 3)
    p["g4"] = jnp.ones((256,), jnp.float32)
    p["bt4"] = jnp.zeros((256,), jnp.float32)
    flattened = 256 * 4 * 9                      # 80x160 dummy input -> 9216
    p["wl"] = w(ks[8], (flattened, 1024), flattened)
    p["bl"] = w(ks[9], (1024,), flattened)
    p["wmu"] = w(ks[10], (1024, latent_dims), 1024)
    p["bmu"] = w(ks[11], (latent_dims,), 1024)
    p["wlv"] = w(ks[12], (1024, latent_dims), 1024)
    p["blv"] = w(ks[13], (latent_dims,), 1024)
    return p


def prepare_params(p):
    """One-time (eager) conversion to GEMM-ready, kernel-friendly layouts:
    bf16 conv matrices, HWC-permuted + int8-quantized linear weight with
    per-column scales, concatenated + lane-padded bf16 mu/logvar head."""
    def conv_w(w):                                # (Cout,Cin,kh,kw)->(K,Cout) bf16
        cout = w.shape[0]
        return w.reshape(cout, -1).T.astype(jnp.bfloat16)

    q = {}
    q["w1"], q["b1"] = conv_w(p["w1"]), p["b1"].reshape(1, -1)
    q["w2"], q["b2"] = conv_w(p["w2"]), p["b2"].reshape(1, -1)
    q["g2"], q["bt2"] = p["g2"].reshape(1, -1), p["bt2"].reshape(1, -1)
    q["w3"], q["b3"] = conv_w(p["w3"]), p["b3"].reshape(1, -1)
    q["w4"], q["b4"] = conv_w(p["w4"]), p["b4"].reshape(1, -1)
    q["g4"], q["bt4"] = p["g4"].reshape(1, -1), p["bt4"].reshape(1, -1)

    # Linear weight rows follow PyTorch's (C,H,W) flatten; re-permute once to
    # the (H,W,C) order produced by the NHWC activation flatten, then quantize
    # to int8 with per-output-column scales (weight-only quant).
    C, H, W = 256, 4, 9
    wl = (p["wl"].reshape(C, H, W, -1).transpose(1, 2, 0, 3)
          .reshape(C * H * W, -1))                               # (9216, 1024) f32
    scale = jnp.maximum(jnp.max(jnp.abs(wl), axis=0, keepdims=True), 1e-8) / 127.0
    q["wl_q"] = jnp.clip(jnp.round(wl / scale), -127.0, 127.0).astype(jnp.int8)
    q["wl_scale"] = scale                                        # (1, 1024) f32
    q["bl"] = p["bl"].reshape(1, -1)

    # mu/logvar heads: concat + zero-pad to 128 lanes, bf16 weight, f32 bias.
    L = p["wmu"].shape[1]
    wh = jnp.concatenate([p["wmu"], p["wlv"]], axis=1)           # (1024, 2L)
    q["wh"] = jnp.pad(wh, ((0, 0), (0, HEAD_PAD - 2 * L))).astype(jnp.bfloat16)
    bh = jnp.concatenate([p["bmu"], p["blv"]])                   # (2L,)
    q["bh"] = jnp.pad(bh, (0, HEAD_PAD - 2 * L)).reshape(1, HEAD_PAD)
    return q


# ----------------------------------- main -----------------------------------

if __name__ == "__main__":
    key = jax.random.PRNGKey(0)
    kp, kx, ke = jax.random.split(key, 3)
    params = init_params(kp, LATENT_DIMS)
    prep = prepare_params(params)     # eager, one-time layout/precision/quant prep

    # Spatial size 80x160 is mandated by the module's hard-coded dummy input
    # (the Linear layer's input size is derived from it); batch kept small.
    x = jax.random.normal(kx, (2, 3, 80, 160), jnp.float32)
    # TODO(synk): torch.distributions.Normal(0,1).sample has no Pallas
    # equivalent; a deterministic externally drawn eps stands in for it.
    eps = jax.random.normal(ke, (2, LATENT_DIMS), jnp.float32)

    # --- parity check: conv1 patch/GEMM path vs lax.conv_general_dilated -----
    x_nhwc = jnp.transpose(x, (0, 2, 3, 1))
    ref = lax.conv_general_dilated(
        x_nhwc, jnp.transpose(params["w1"], (2, 3, 1, 0)),       # OIHW -> HWIO
        (2, 2), [(0, 0), (0, 0)], dimension_numbers=("NHWC", "HWIO", "NHWC"))
    ref = ref + params["b1"].reshape(1, 1, 1, -1)
    ref = jnp.where(ref >= 0.0, ref, NEG_SLOPE * ref)
    got = conv_block(x_nhwc.astype(jnp.bfloat16), prep["w1"], prep["b1"],
                     4, 4, 2, 0, 32, num_blocks=2).astype(jnp.float32)
    tol = 0.05 * float(jnp.max(jnp.abs(ref))) + 0.05             # bf16 headroom
    assert float(jnp.max(jnp.abs(got - ref))) < tol, "conv1 patch-order parity failed"

    # --- full forward ---------------------------------------------------------
    fwd = jax.jit(variational_encoder_forward)
    mu, logvar, z = fwd(prep, x, eps)
    jax.block_until_ready((mu, logvar, z))

    assert mu.shape == (2, LATENT_DIMS)
    assert logvar.shape == (2, LATENT_DIMS)
    assert z.shape == (2, LATENT_DIMS)
    assert bool(jnp.all(jnp.isfinite(mu)))
    assert bool(jnp.all(jnp.isfinite(logvar)))
    assert bool(jnp.all(jnp.isfinite(z)))
    print("KERNEL_OK")
</pallas_src>

<mosaic_0001>
module attributes {stable_mosaic.version = 11 : i64} {
  func.func @conv_gemm_kernel(%arg0: i32, %arg1: memref<3088x48xbf16, #tpu.memory_space<vmem>>, %arg2: memref<48x32xbf16, #tpu.memory_space<vmem>>, %arg3: memref<1x32xf32, #tpu.memory_space<vmem>>, %arg4: memref<3088x32xbf16, #tpu.memory_space<vmem>>) attributes {dimension_semantics = [#tpu.dimension_semantics<parallel>], iteration_bounds = array<i64: 2>, scalar_prefetch = 0 : i64, scratch_operands = 0 : i64, tpu.core_type = #tpu.core_type<tc>, window_params = [{transform_indices = @transform_0, window_bounds = array<i64: 3088, 48>}, {pipeline_mode = #tpu.pipeline_mode<synchronous>, transform_indices = @transform_1, window_bounds = array<i64: 48, 32>}, {pipeline_mode = #tpu.pipeline_mode<synchronous>, transform_indices = @transform_2, window_bounds = array<i64: 1, 32>}, {transform_indices = @transform_3, window_bounds = array<i64: 3088, 32>}]} {
    %c0 = arith.constant 0 : index
    %c0_0 = arith.constant 0 : index
    %0 = vector.load %arg1[%c0, %c0_0] : memref<3088x48xbf16, #tpu.memory_space<vmem>>, vector<3088x48xbf16>
    %c0_1 = arith.constant 0 : index
    %c0_2 = arith.constant 0 : index
    %1 = vector.load %arg2[%c0_1, %c0_2] : memref<48x32xbf16, #tpu.memory_space<vmem>>, vector<48x32xbf16>
    %cst = arith.constant dense<0.000000e+00> : vector<3088x32xf32>
    %2 = tpu.matmul %0, %1, %cst {dimension_numbers = #tpu.dot_dimension_numbers<[1], [0], [0], [1], [0, 0, 1, 1], [], []>} : vector<3088x48xbf16>, vector<48x32xbf16>, vector<3088x32xf32> -> vector<3088x32xf32>
    %c0_3 = arith.constant 0 : index
    %c0_4 = arith.constant 0 : index
    %3 = vector.load %arg3[%c0_3, %c0_4] : memref<1x32xf32, #tpu.memory_space<vmem>>, vector<1x32xf32>
    %4 = vector.broadcast %3 : vector<1x32xf32> to vector<3088x32xf32>
    %5 = arith.addf %2, %4 : vector<3088x32xf32>
    %cst_5 = arith.constant 0.000000e+00 : f32
    %6 = vector.broadcast %cst_5 : f32 to vector<3088x32xf32>
    %7 = arith.cmpf oge, %5, %6 : vector<3088x32xf32>
    %cst_6 = arith.constant 0.00999999977 : f32
    %8 = vector.broadcast %cst_6 : f32 to vector<3088x32xf32>
    %9 = arith.mulf %8, %5 : vector<3088x32xf32>
    %10 = arith.select %7, %5, %9 : vector<3088x32xi1>, vector<3088x32xf32>
    %11 = arith.truncf %10 : vector<3088x32xf32> to vector<3088x32xbf16>
    %c0_7 = arith.constant 0 : index
    %c0_8 = arith.constant 0 : index
    %12 = vector.load %arg4[%c0_7, %c0_8] : memref<3088x32xbf16, #tpu.memory_space<vmem>>, vector<3088x32xbf16>
    tpu.vector_store %arg4[%c0_7, %c0_8], %11 {strides = array<i32>} : memref<3088x32xbf16, #tpu.memory_space<vmem>>, vector<3088x32xbf16>,
    return
  }
  func.func @transform_0(%arg0: i32) -> (i32, i32) {
    %c0_i32 = arith.constant 0 : i32
    %c0_i32_0 = arith.constant 0 : i32
    return %arg0, %c0_i32 : i32, i32
  }
  func.func @transform_1(%arg0: i32) -> (i32, i32) {
    %c0_i32 = arith.constant 0 : i32
    %c0_i32_0 = arith.constant 0 : i32
    %c0_i32_1 = arith.constant 0 : i32
    return %c0_i32, %c0_i32_0 : i32, i32
  }
  func.func @transform_2(%arg0: i32) -> (i32, i32) {
    %c0_i32 = arith.constant 0 : i32
    %c0_i32_0 = arith.constant 0 : i32
    %c0_i32_1 = arith.constant 0 : i32
    return %c0_i32, %c0_i32_0 : i32, i32
  }
  func.func @transform_3(%arg0: i32) -> (i32, i32) {
    %c0_i32 = arith.constant 0 : i32
    %c0_i32_0 = arith.constant 0 : i32
    return %arg0, %c0_i32 : i32, i32
  }
}

</mosaic_0001>

<bundles_post_ra>
// kernel: tpu_custom_call.1
= control target key start
LH: loop header
LB: loop body
LE: loop exit
PB: predicated region body
PF: predicated region fallthrough
CT: control target
= control target key end

     0   :  { %s9252_s12 = smov 0   ;;  %s11260_s0 = inlined_call_operand.vmem [shape: bf16[6176,48], index: 0, kind: input, shape index: {}]   ;;  %s11261_s1 = inlined_call_operand.vmem [shape: bf16[48,32], index: 1, kind: input, shape index: {}]   ;;  %s11262_s2 = inlined_call_operand.vmem [shape: f32[1,32], index: 2, kind: input, shape index: {}]   ;;  %s11263_s3 = inlined_call_operand.vmem [shape: bf16[6176,32], index: 3, kind: output, shape index: {}]  }
   0x1 LB: > { %s6859_s13 = sadd.s32 4294967295, %s9228_s12   ;;  %p6863_p0 = scmp.ge.s32.totalorder %s9228_s12, 1  ;;  %s9228_s12 = sphi %s9252_s12, %s13_s12  }
   0x2   : > { %p138_p1 = scmp.lt.s32.totalorder %s9228_s12, 3 }
   0x4   : > { %p139_p2 = pnand %p6863_p0, %p138_p1 }
   0x5   : > { %v9020_v0 = vld [vmem:[%s11261_s1] sm:$0xff] (!%p139_p2)   ;;  %v9230_v1 = vmov (!%p139_p2), 0.0   ;;  %v9021_v2 = vld [vmem:[%s11261_s1 + $0x8] sm:$0xff] (!%p139_p2)   ;;  %s162_s18 = smul.u32 (!%p139_p2), 386, %s6859_s13  ;;  %vm9231_vm0 = vmmov (!%p139_p2), 0   ;;  %v9022_v3 = vld [vmem:[%s11261_s1 + $0x10] sm:$0xff] (!%p139_p2)  }
   0x6   : > { %142 = sbr.rel (%p139_p2) target bundleno = 1008 (0x3f0), region = 32  ;;  %8226 = vmatprep.subr.bf16.mxu0 (!%p139_p2), %v9230_v1  ;;  %9004 = vmatprep.subr.bf16.mxu1 (!%p139_p2), %v9230_v1  ;;  %vm1557_vm1 = vcmask (!%p139_p2), 392192   ;;  %v9504_v58 = vld [vmem:[%s11262_s2] ss:$0 sm:$0xff] (!%p139_p2)  ;;  %vm6416_vm4 = vcmask (!%p139_p2), 257024  }
   0x7   : > { %8227 = vmatpush3.bf16.msra.mxu0 (!%p139_p2), %v9020_v0  ;;  %9007 = vmatpush3.bf16.msra.mxu1 (!%p139_p2), %v9020_v0  ;;  %p163_p3 = scmp.lt.s32.totalorder (!%p139_p2), %s162_s18, 771 }
   0x8   : > { %8228 = vmatprep.subr.bf16.mxu0 (!%p139_p2), %v9230_v1  ;;  %9005 = vmatprep.subr.bf16.mxu1 (!%p139_p2), %v9230_v1 }
   0x9   : > { %8232 = vmatprep.mubr.msk.bf16.mxu0 (!%p139_p2), %vm9231_vm0, %v9230_v1  ;;  %8620 = vmatprep.mubr.msk.bf16.mxu1 (!%p139_p2), %vm9231_vm0, %v9230_v1 }
   0xb   : > { %8229 = vmatpush3.bf16.msra.mxu0 (!%p139_p2), %v9021_v2  ;;  %9008 = vmatpush3.bf16.msra.mxu1 (!%p139_p2), %v9021_v2 }
   0xc   : > { %8230 = vmatprep.subr.bf16.mxu0 (!%p139_p2), %v9230_v1  ;;  %9006 = vmatprep.subr.bf16.mxu1 (!%p139_p2), %v9230_v1 }
   0xd   : > { %s11265_s18 = smov (!%p163_p3, %s162_s18), 771 }
   0xe   : > { %s6864_s21 = sshll.u32 %s11265_s18, 2 }
   0xf   : > { %s9287_s24 = scalar_lea.vmem %s11260_s0, %s6864_s21  ;;  %8231 = vmatpush3.bf16.msra.mxu0 %v9022_v3  ;;  %9009 = vmatpush3.bf16.msra.mxu1 %v9022_v3  ;;  %s9521_s29 = scalar_lea.vmem %s11263_s3, %s6864_s21 }
  0x10   : > { %v9023_v4 = vld [vmem:[%s9287_s24] sm:$0xff]   ;;  %v9024_v5 = vld [vmem:[%s9287_s24 + $0x308] sm:$0xff]   ;;  %v9026_v7 = vld [vmem:[%s9287_s24 + $0x310] sm:$0xff]  }
  0x11   : > { %v9025_v6 = vld [vmem:[%s9287_s24 + $0x8] sm:$0xff]   ;;  %v9027_v8 = vld [vmem:[%s9287_s24 + $0x10] sm:$0xff]   ;;  %v9028_v9 = vld [vmem:[%s9287_s24 + $0x318] sm:$0xff]  }
  0x12   : > { %8233 = vmatmul.mubr.msk.bf16.vlgmr.msra.gmra.mrb[0].mxu0 %vm1557_vm1, %v9023_v4  ;;  %8621 = vmatmul.mubr.msk.bf16.vlgmr.msra.gmra.mrb[0].mxu1 %vm1557_vm1, %v9024_v5  ;;  %v9029_v10 = vld [vmem:[%s9287_s24 + $0x18] sm:$0xff]   ;;  %v9030_v11 = vld [vmem:[%s9287_s24 + $0x320] sm:$0xff]   ;;  %v9032_v13 = vld [vmem:[%s9287_s24 + $0x328] sm:$0xff]  }
  0x13   : > { %8236 = vmatprep.mubr.msk.bf16.mxu0 %vm9231_vm0, %v9230_v1  ;;  %8624 = vmatprep.mubr.msk.bf16.mxu1 %vm9231_vm0, %v9230_v1  ;;  %v9031_v12 = vld [vmem:[%s9287_s24 + $0x20] sm:$0xff]   ;;  %v9033_v14 = vld [vmem:[%s9287_s24 + $0x28] sm:$0xff]   ;;  %v9034_v15 = vld [vmem:[%s9287_s24 + $0x330] sm:$0xff]  }
  0x14   : > { %v9035_v16 = vld [vmem:[%s9287_s24 + $0x30] sm:$0xff]   ;;  %v9036_v17 = vld [vmem:[%s9287_s24 + $0x338] sm:$0xff]   ;;  %v9038_v19 = vld [vmem:[%s9287_s24 + $0x340] sm:$0xff]  }
  0x15   : > { %v9037_v18 = vld [vmem:[%s9287_s24 + $0x38] sm:$0xff]   ;;  %v9039_v20 = vld [vmem:[%s9287_s24 + $0x40] sm:$0xff]   ;;  %v9040_v21 = vld [vmem:[%s9287_s24 + $0x348] sm:$0xff]  }
  0x16   : > { %v9041_v22 = vld [vmem:[%s9287_s24 + $0x48] sm:$0xff]   ;;  %v9042_v23 = vld [vmem:[%s9287_s24 + $0x350] sm:$0xff]   ;;  %v9044_v25 = vld [vmem:[%s9287_s24 + $0x358] sm:$0xff]  }
  0x17   : > { %v9043_v24 = vld [vmem:[%s9287_s24 + $0x50] sm:$0xff]   ;;  %v9045_v26 = vld [vmem:[%s9287_s24 + $0x58] sm:$0xff]   ;;  %v9046_v27 = vld [vmem:[%s9287_s24 + $0x360] sm:$0xff]  }
  0x18   : > { %v9047_v28 = vld [vmem:[%s9287_s24 + $0x60] sm:$0xff]   ;;  %v9048_v29 = vld [vmem:[%s9287_s24 + $0x368] sm:$0xff]   ;;  %v9050_v31 = vld [vmem:[%s9287_s24 + $0x370] sm:$0xff]  }
  0x19   : > { %v9049_v30 = vld [vmem:[%s9287_s24 + $0x68] sm:$0xff]   ;;  %v9051_v32 = vld [vmem:[%s9287_s24 + $0x70] sm:$0xff]   ;;  %v9052_v33 = vld [vmem:[%s9287_s24 + $0x378] sm:$0xff]  }
  0x1a   : > { %8237 = vmatmul.mubr.msk.bf16.gmra.mrb[4].mxu0 %vm1557_vm1, %v9025_v6  ;;  %8625 = vmatmul.mubr.msk.bf16.gmra.mrb[4].mxu1 %vm1557_vm1, %v9026_v7  ;;  %v9053_v34 = vld [vmem:[%s9287_s24 + $0x78] sm:$0xff]   ;;  %v9054_v35 = vld [vmem:[%s9287_s24 + $0x380] sm:$0xff]   ;;  %v9056_v37 = vld [vmem:[%s9287_s24 + $0x388] sm:$0xff]  }
  0x1b   : > { %8240 = vmatprep.mubr.msk.bf16.mxu0 %vm9231_vm0, %v9230_v1  ;;  %8628 = vmatprep.mubr.msk.bf16.mxu1 %vm9231_vm0, %v9230_v1  ;;  %v9055_v36 = vld [vmem:[%s9287_s24 + $0x80] sm:$0xff]   ;;  %v9057_v38 = vld [vmem:[%s9287_s24 + $0x88] sm:$0xff]   ;;  %v9058_v39 = vld [vmem:[%s9287_s24 + $0x390] sm:$0xff]  }
  0x1c   : > { %v9059_v40 = vld [vmem:[%s9287_s24 + $0x90] sm:$0xff]   ;;  %v9060_v41 = vld [vmem:[%s9287_s24 + $0x398] sm:$0xff]   ;;  %v9062_v43 = vld [vmem:[%s9287_s24 + $0x3a0] sm:$0xff]  }
  0x1d   : > { %v9061_v42 = vld [vmem:[%s9287_s24 + $0x98] sm:$0xff]   ;;  %v9063_v44 = vld [vmem:[%s9287_s24 + $0xa0] sm:$0xff]   ;;  %v9064_v45 = vld [vmem:[%s9287_s24 + $0x3a8] sm:$0xff]  }
  0x1e   : > { %v9065_v46 = vld [vmem:[%s9287_s24 + $0xa8] sm:$0xff]   ;;  %v9066_v47 = vld [vmem:[%s9287_s24 + $0x3b0] sm:$0xff]   ;;  %v9068_v49 = vld [vmem:[%s9287_s24 + $0x3b8] sm:$0xff]  }
  0x1f   : > { %v9067_v48 = vld [vmem:[%s9287_s24 + $0xb0] sm:$0xff]   ;;  %v9069_v50 = vld [vmem:[%s9287_s24 + $0xb8] sm:$0xff]   ;;  %v9070_v51 = vld [vmem:[%s9287_s24 + $0x3c0] sm:$0xff]  }
  0x20   : > { %v9071_v52 = vld [vmem:[%s9287_s24 + $0xc0] sm:$0xff]   ;;  %v9072_v53 = vld [vmem:[%s9287_s24 + $0x3c8] sm:$0xff]   ;;  %v9074_v55 = vld [vmem:[%s9287_s24 + $0x3d0] sm:$0xff]  }
  0x21   : > { %v9073_v54 = vld [vmem:[%s9287_s24 + $0xc8] sm:$0xff]   ;;  %v9075_v56 = vld [vmem:[%s9287_s24 + $0xd0] sm:$0xff]   ;;  %v9076_v57 = vld [vmem:[%s9287_s24 + $0x3d8] sm:$0xff]  }
  0x22   : > { %8241 = vmatmul.mubr.msk.bf16.gmra.mrb[8].mxu0 %vm1557_vm1, %v9027_v8  ;;  %8629 = vmatmul.mubr.msk.bf16.gmra.mrb[8].mxu1 %vm1557_vm1, %v9028_v9  ;;  %v9077_v0 = vld [vmem:[%s9287_s24 + $0xd8] sm:$0xff]   ;;  %v9078_v3 = vld [vmem:[%s9287_s24 + $0x3e0] sm:$0xff]  }
  0x23   : > { %8244 = vmatprep.mubr.msk.bf16.mxu0 %vm9231_vm0, %v9230_v1  ;;  %8632 = vmatprep.mubr.msk.bf16.mxu1 %vm9231_vm0, %v9230_v1 }
  0x2a   : > { %8245 = vmatmul.mubr.msk.bf16.gmra.mrb[12].mxu0 %vm1557_vm1, %v9029_v10  ;;  %8633 = vmatmul.mubr.msk.bf16.gmra.mrb[12].mxu1 %vm1557_vm1, %v9030_v11 }
  0x2b   : > { %8248 = vmatprep.mubr.msk.bf16.mxu0 %vm9231_vm0, %v9230_v1  ;;  %8636 = vmatprep.mubr.msk.bf16.mxu1 %vm9231_vm0, %v9230_v1 }
  0x32   : > { %8249 = vmatmul.mubr.msk.bf16.gmra.mrb[16].mxu0 %vm1557_vm1, %v9031_v12  ;;  %8637 = vmatmul.mubr.msk.bf16.gmra.mrb[16].mxu1 %vm1557_vm1, %v9032_v13 }
  0x33   : > { %8252 = vmatprep.mubr.msk.bf16.mxu0 %vm9231_vm0, %v9230_v1  ;;  %8640 = vmatprep.mubr.msk.bf16.mxu1 %vm9231_vm0, %v9230_v1 }
  0x3a   : > { %8253 = vmatmul.mubr.msk.bf16.gmra.mrb[20].mxu0 %vm1557_vm1, %v9033_v14  ;;  %8641 = vmatmul.mubr.msk.bf16.gmra.mrb[20].mxu1 %vm1557_vm1, %v9034_v15 }
  0x3b   : > { %8256 = vmatprep.mubr.msk.bf16.mxu0 %vm9231_vm0, %v9230_v1  ;;  %8644 = vmatprep.mubr.msk.bf16.mxu1 %vm9231_vm0, %v9230_v1 }
  0x42   : > { %8257 = vmatmul.mubr.msk.bf16.gmra.mrb[24].mxu0 %vm1557_vm1, %v9035_v16  ;;  %8645 = vmatmul.mubr.msk.bf16.gmra.mrb[24].mxu1 %vm1557_vm1, %v9036_v17 }
  0x43   : > { %8260 = vmatprep.mubr.msk.bf16.mxu0 %vm9231_vm0, %v9230_v1  ;;  %8648 = vmatprep.mubr.msk.bf16.mxu1 %vm9231_vm0, %v9230_v1 }
  0x4a   : > { %8261 = vmatmul.mubr.msk.bf16.gmra.mrb[28].mxu0 %vm1557_vm1, %v9037_v18  ;;  %8649 = vmatmul.mubr.msk.bf16.gmra.mrb[28].mxu1 %vm1557_vm1, %v9038_v19 }
  0x4b   : > { %8264 = vmatprep.mubr.msk.bf16.mxu0 %vm9231_vm0, %v9230_v1  ;;  %8652 = vmatprep.mubr.msk.bf16.mxu1 %vm9231_vm0, %v9230_v1 }
  0x52   : > { %8265 = vmatmul.mubr.msk.bf16.gmra.mrb[32].mxu0 %vm1557_vm1, %v9039_v20  ;;  %8653 = vmatmul.mubr.msk.bf16.gmra.mrb[32].mxu1 %vm1557_vm1, %v9040_v21 }
  0x53   : > { %8268 = vmatprep.mubr.msk.bf16.mxu0 %vm9231_vm0, %v9230_v1  ;;  %8656 = vmatprep.mubr.msk.bf16.mxu1 %vm9231_vm0, %v9230_v1 }
  0x5a   : > { %8269 = vmatmul.mubr.msk.bf16.gmra.mrb[36].mxu0 %vm1557_vm1, %v9041_v22  ;;  %8657 = vmatmul.mubr.msk.bf16.gmra.mrb[36].mxu1 %vm1557_vm1, %v9042_v23 }
  0x5b   : > { %8272 = vmatprep.mubr.msk.bf16.mxu0 %vm9231_vm0, %v9230_v1  ;;  %8660 = vmatprep.mubr.msk.bf16.mxu1 %vm9231_vm0, %v9230_v1 }
  0x62   : > { %8273 = vmatmul.mubr.msk.bf16.gmra.mrb[40].mxu0 %vm1557_vm1, %v9043_v24  ;;  %8661 = vmatmul.mubr.msk.bf16.gmra.mrb[40].mxu1 %vm1557_vm1, %v9044_v25 }
  0x63   : > { %8276 = vmatprep.mubr.msk.bf16.mxu0 %vm9231_vm0, %v9230_v1  ;;  %8664 = vmatprep.mubr.msk.bf16.mxu1 %vm9231_vm0, %v9230_v1 }
  0x6a   : > { %8277 = vmatmul.mubr.msk.bf16.gmra.mrb[44].mxu0 %vm1557_vm1, %v9045_v26  ;;  %8665 = vmatmul.mubr.msk.bf16.gmra.mrb[44].mxu1 %vm1557_vm1, %v9046_v27  ;;  %v9079_v27 = vld [vmem:[%s9287_s24 + $0xe0] sm:$0xff]  }
  0x6b   : > { %8280 = vmatprep.mubr.msk.bf16.mxu0 %vm9231_vm0, %v9230_v1  ;;  %8668 = vmatprep.mubr.msk.bf16.mxu1 %vm9231_vm0, %v9230_v1 }
  0x72   : > { %8281 = vmatmul.mubr.msk.bf16.gmra.mrb[48].mxu0 %vm1557_vm1, %v9047_v28  ;;  %8669 = vmatmul.mubr.msk.bf16.gmra.mrb[48].mxu1 %vm1557_vm1, %v9048_v29  ;;  %v9080_v29 = vld [vmem:[%s9287_s24 + $0x3e8] sm:$0xff]  }
  0x73   : > { %8284 = vmatprep.mubr.msk.bf16.mxu0 %vm9231_vm0, %v9230_v1  ;;  %8672 = vmatprep.mubr.msk.bf16.mxu1 %vm9231_vm0, %v9230_v1 }
  0x7a   : > { %8285 = vmatmul.mubr.msk.bf16.gmra.mrb[52].mxu0 %vm1557_vm1, %v9049_v30  ;;  %8673 = vmatmul.mubr.msk.bf16.gmra.mrb[52].mxu1 %vm1557_vm1, %v9050_v31 }
  0x7b   : > { %8288 = vmatprep.mubr.msk.bf16.mxu0 %vm9231_vm0, %v9230_v1  ;;  %8676 = vmatprep.mubr.msk.bf16.mxu1 %vm9231_vm0, %v9230_v1 }
  0x82   : > { %8289 = vmatmul.mubr.msk.bf16.gmra.mrb[56].mxu0 %vm1557_vm1, %v9051_v32  ;;  %8677 = vmatmul.mubr.msk.bf16.gmra.mrb[56].mxu1 %vm1557_vm1, %v9052_v33 }
  0x83   : > { %8292 = vmatprep.mubr.msk.bf16.mxu0 %vm9231_vm0, %v9230_v1  ;;  %8680 = vmatprep.mubr.msk.bf16.mxu1 %vm9231_vm0, %v9230_v1 }
  0x8a   : > { %8293 = vmatmul.mubr.msk.bf16.gmra.mrb[60].mxu0 %vm1557_vm1, %v9053_v34  ;;  %8681 = vmatmul.mubr.msk.bf16.gmra.mrb[60].mxu1 %vm1557_vm1, %v9054_v35 }
  0x8b   : > { %8296 = vmatprep.mubr.msk.bf16.mxu0 %vm9231_vm0, %v9230_v1  ;;  %8684 = vmatprep.mubr.msk.bf16.mxu1 %vm9231_vm0, %v9230_v1 }
  0x92   : > { %8297 = vmatmul.mubr.msk.bf16.gmra.mrb[64].mxu0 %vm1557_vm1, %v9055_v36  ;;  %8685 = vmatmul.mubr.msk.bf16.gmra.mrb[64].mxu1 %vm1557_vm1, %v9056_v37 }
  0x93   : > { %8300 = vmatprep.mubr.msk.bf16.mxu0 %vm9231_vm0, %v9230_v1  ;;  %8688 = vmatprep.mubr.msk.bf16.mxu1 %vm9231_vm0, %v9230_v1 }
  0x9a   : > { %8301 = vmatmul.mubr.msk.bf16.gmra.mrb[68].mxu0 %vm1557_vm1, %v9057_v38  ;;  %8689 = vmatmul.mubr.msk.bf16.gmra.mrb[68].mxu1 %vm1557_vm1, %v9058_v39 }
  0x9b   : > { %8304 = vmatprep.mubr.msk.bf16.mxu0 %vm9231_vm0, %v9230_v1  ;;  %8692 = vmatprep.mubr.msk.bf16.mxu1 %vm9231_vm0, %v9230_v1 }
  0xa2   : > { %8305 = vmatmul.mubr.msk.bf16.gmra.mrb[72].mxu0 %vm1557_vm1, %v9059_v40  ;;  %8693 = vmatmul.mubr.msk.bf16.gmra.mrb[72].mxu1 %vm1557_vm1, %v9060_v41 }
  0xa3   : > { %8308 = vmatprep.mubr.msk.bf16.mxu0 %vm9231_vm0, %v9230_v1  ;;  %8696 = vmatprep.mubr.msk.bf16.mxu1 %vm9231_vm0, %v9230_v1 }
  0xaa   : > { %8309 = vmatmul.mubr.msk.bf16.gmra.mrb[76].mxu0 %vm1557_vm1, %v9061_v42  ;;  %8697 = vmatmul.mubr.msk.bf16.gmra.mrb[76].mxu1 %vm1557_vm1, %v9062_v43 }
  0xab   : > { %8312 = vmatprep.mubr.msk.bf16.mxu0 %vm9231_vm0, %v9230_v1  ;;  %8700 = vmatprep.mubr.msk.bf16.mxu1 %vm9231_vm0, %v9230_v1 }
  0xb2   : > { %8313 = vmatmul.mubr.msk.bf16.gmra.mrb[80].mxu0 %vm1557_vm1, %v9063_v44  ;;  %8701 = vmatmul.mubr.msk.bf16.gmra.mrb[80].mxu1 %vm1557_vm1, %v9064_v45 }
  0xb3   : > { %8316 = vmatprep.mubr.msk.bf16.mxu0 %vm9231_vm0, %v9230_v1  ;;  %8704 = vmatprep.mubr.msk.bf16.mxu1 %vm9231_vm0, %v9230_v1 }
  0xba   : > { %8317 = vmatmul.mubr.msk.bf16.gmra.mrb[84].mxu0 %vm1557_vm1, %v9065_v46  ;;  %8705 = vmatmul.mubr.msk.bf16.gmra.mrb[84].mxu1 %vm1557_vm1, %v9066_v47 }
  0xbb   : > { %8320 = vmatprep.mubr.msk.bf16.mxu0 %vm9231_vm0, %v9230_v1  ;;  %8708 = vmatprep.mubr.msk.bf16.mxu1 %vm9231_vm0, %v9230_v1 }
  0xc2   : > { %8321 = vmatmul.mubr.msk.bf16.gmra.mrb[88].mxu0 %vm1557_vm1, %v9067_v48  ;;  %8709 = vmatmul.mubr.msk.bf16.gmra.mrb[88].mxu1 %vm1557_vm1, %v9068_v49 }
  0xc3   : > { %8324 = vmatprep.mubr.msk.bf16.mxu0 %vm9231_vm0, %v9230_v1  ;;  %8712 = vmatprep.mubr.msk.bf16.mxu1 %vm9231_vm0, %v9230_v1 }
  0xca   : > { %8325 = vmatmul.mubr.msk.bf16.gmra.mrb[92].mxu0 %vm1557_vm1, %v9069_v50  ;;  %8713 = vmatmul.mubr.msk.bf16.gmra.mrb[92].mxu1 %vm1557_vm1, %v9070_v51 }
  0xcb   : > { %8328 = vmatprep.mubr.msk.bf16.mxu0 %vm9231_vm0, %v9230_v1  ;;  %8716 = vmatprep.mubr.msk.bf16.mxu1 %vm9231_vm0, %v9230_v1 }
  0xd2   : > { %8329 = vmatmul.mubr.msk.bf16.gmra.mrb[96].mxu0 %vm1557_vm1, %v9071_v52  ;;  %8717 = vmatmul.mubr.msk.bf16.gmra.mrb[96].mxu1 %vm1557_vm1, %v9072_v53  ;;  %v9081_v53 = vld [vmem:[%s9287_s24 + $0xe8] sm:$0xff]  }
  0xd3   : > { %8332 = vmatprep.mubr.msk.bf16.mxu0 %vm9231_vm0, %v9230_v1  ;;  %8720 = vmatprep.mubr.msk.bf16.mxu1 %vm9231_vm0, %v9230_v1 }
  0xda   : > { %8333 = vmatmul.mubr.msk.bf16.gmra.mrb[100].mxu0 %vm1557_vm1, %v9073_v54  ;;  %8721 = vmatmul.mubr.msk.bf16.gmra.mrb[100].mxu1 %vm1557_vm1, %v9074_v55  ;;  %v9082_v55 = vld [vmem:[%s9287_s24 + $0x3f0] sm:$0xff]  }
  0xdb   : > { %8336 = vmatprep.mubr.msk.bf16.mxu0 %vm9231_vm0, %v9230_v1  ;;  %8724 = vmatprep.mubr.msk.bf16.mxu1 %vm9231_vm0, %v9230_v1 }
  0xe2   : > { %8337 = vmatmul.mubr.msk.bf16.gmra.mrb[104].mxu0 %vm1557_vm1, %v9075_v56  ;;  %8725 = vmatmul.mubr.msk.bf16.gmra.mrb[104].mxu1 %vm1557_vm1, %v9076_v57 }
  0xe3   : > { %8340 = vmatprep.mubr.msk.bf16.mxu0 %vm9231_vm0, %v9230_v1  ;;  %8728 = vmatprep.mubr.msk.bf16.mxu1 %vm9231_vm0, %v9230_v1 }
  0xe5   : > { %v2171_v59 = vpop.f32.mrb[0].mxu0  ;;  %v2947_v60 = vpop.f32.mrb[0].mxu1 }
  0xe6   : > { %v2172_v61 = vadd.f32 %v9504_v58, %v2171_v59  ;;  %v8234_v62 = vpop.f32.mrb[1].mxu0  ;;  %v2948_v63 = vadd.f32 %v9504_v58, %v2947_v60  ;;  %v8622_v2 = vpop.f32.mrb[1].mxu1 }
  0xe7   : > { %v2174_v4 = vpop.f32.mrb[2].mxu0  ;;  %v2950_v5 = vpop.f32.mrb[2].mxu1 }
  0xe8   : > { %vm3714_vm2 = vcmp.ge.f32.partialorder %v2172_v61, 0.0  ;;  %v4100_v6 = vmul.f32 0.01, %v2172_v61  ;;  %v2175_v7 = vadd.f32 %v9504_v58, %v2174_v4  ;;  %v8235_v8 = vpop.f32.mrb[3].mxu0  ;;  %vm3908_vm3 = vcmp.ge.f32.partialorder %v2948_v63, 0.0  ;;  %v8623_v9 = vpop.f32.mrb[3].mxu1 }
  0xe9   : > { %v4294_v10 = vmul.f32 0.01, %v2948_v63  ;;  %v2951_v11 = vadd.f32 %v9504_v58, %v2950_v5 }
  0xea   : > { %v4486_v12 = vsel %vm3714_vm2, %v2172_v61, %v4100_v6  ;;  %vm3715_vm5 = vcmp.ge.f32.partialorder %v2175_v7, 0.0  ;;  %v4101_v13 = vmul.f32 0.01, %v2175_v7  ;;  %8341 = vmatmul.mubr.msk.bf16.gmra.mrb[108].mxu0 %vm1557_vm1, %v9077_v0  ;;  %8729 = vmatmul.mubr.msk.bf16.gmra.mrb[108].mxu1 %vm1557_vm1, %v9078_v3 }
  0xeb   : > { %v7644_v14 = vpack.c.bf16 %v4486_v12, %v4486_v12  ;;  %v4680_v15 = vsel %vm3908_vm3, %v2948_v63, %v4294_v10  ;;  %vm3909_vm6 = vcmp.ge.f32.partialorder %v2951_v11, 0.0  ;;  %v4295_v16 = vmul.f32 0.01, %v2951_v11  ;;  %8344 = vmatprep.mubr.msk.bf16.mxu0 %vm9231_vm0, %v9230_v1  ;;  %8732 = vmatprep.mubr.msk.bf16.mxu1 %vm9231_vm0, %v9230_v1 }
  0xec   : > { %v4487_v17 = vsel %vm3715_vm5, %v2175_v7, %v4101_v13  ;;  %v7838_v18 = vpack.c.bf16 %v4680_v15, %v4680_v15 }
  0xed   : > { %6417 = vst.msk [vmem:[%s9521_s29] sm:$0xf] %vm6416_vm4, %v7644_v14  ;;  %v7645_v19 = vpack.c.bf16 %v4487_v17, %v4487_v17  ;;  %v4681_v20 = vsel %vm3909_vm6, %v2951_v11, %v4295_v16  ;;  %v2179_v21 = vpop.f32.mrb[4].mxu0  ;;  %v2955_v22 = vpop.f32.mrb[4].mxu1  ;;  %v9083_v17 = vld [vmem:[%s9287_s24 + $0xf0] sm:$0xff]  }
  0xee   : > { %6611 = vst.msk [vmem:[%s9521_s29 + $0x308] sm:$0xf] %vm6416_vm4, %v7838_v18  ;;  %v7839_v23 = vpack.c.bf16 %v4681_v20, %v4681_v20  ;;  %v2180_v24 = vadd.f32 %v9504_v58, %v2179_v21  ;;  %v8238_v25 = vpop.f32.mrb[5].mxu0  ;;  %v2956_v26 = vadd.f32 %v9504_v58, %v2955_v22  ;;  %v8626_v28 = vpop.f32.mrb[5].mxu1 }
  0xef   : > { %6418 = vst.msk [vmem:[%s9521_s29 + $0x4] sm:$0xf] %vm6416_vm4, %v7645_v19  ;;  %v2182_v30 = vpop.f32.mrb[6].mxu0  ;;  %v2958_v31 = vpop.f32.mrb[6].mxu1  ;;  %v9084_v19 = vld [vmem:[%s9287_s24 + $0x3f8] sm:$0xff]  }
  0xf0   : > { %6612 = vst.msk [vmem:[%s9521_s29 + $0x30c] sm:$0xf] %vm6416_vm4, %v7839_v23  ;;  %vm3716_vm7 = vcmp.ge.f32.partialorder %v2180_v24, 0.0  ;;  %v4102_v32 = vmul.f32 0.01, %v2180_v24  ;;  %v2183_v33 = vadd.f32 %v9504_v58, %v2182_v30  ;;  %v8239_v34 = vpop.f32.mrb[7].mxu0  ;;  %v2959_v37 = vadd.f32 %v9504_v58, %v2958_v31 }
  0xf1   : > { %vm3910_vm8 = vcmp.ge.f32.partialorder %v2956_v26, 0.0  ;;  %v8627_v35 = vpop.f32.mrb[7].mxu1  ;;  %v4296_v36 = vmul.f32 0.01, %v2956_v26 }
  0xf2   : > { %v4488_v38 = vsel %vm3716_vm7, %v2180_v24, %v4102_v32  ;;  %vm3717_vm9 = vcmp.ge.f32.partialorder %v2183_v33, 0.0  ;;  %v4103_v39 = vmul.f32 0.01, %v2183_v33  ;;  %8345 = vmatmul.mubr.msk.bf16.gmra.mrb[112].mxu0 %vm1557_vm1, %v9079_v27  ;;  %8733 = vmatmul.mubr.msk.bf16.gmra.mrb[112].mxu1 %vm1557_vm1, %v9080_v29  ;;  %vm3911_vm10 = vcmp.ge.f32.partialorder %v2959_v37, 0.0 }
  0xf3   : > { %v7646_v40 = vpack.c.bf16 %v4488_v38, %v4488_v38  ;;  %v4682_v41 = vsel %vm3910_vm8, %v2956_v26, %v4296_v36  ;;  %v4297_v42 = vmul.f32 0.01, %v2959_v37  ;;  %8348 = vmatprep.mubr.msk.bf16.mxu0 %vm9231_vm0, %v9230_v1  ;;  %8736 = vmatprep.mubr.msk.bf16.mxu1 %vm9231_vm0, %v9230_v1 }
  0xf4   : > { %v4489_v43 = vsel %vm3717_vm9, %v2183_v33, %v4103_v39  ;;  %v7840_v44 = vpack.c.bf16 %v4682_v41, %v4682_v41 }
  0xf5   : > { %6419 = vst.msk [vmem:[%s9521_s29 + $0x8] sm:$0xf] %vm6416_vm4, %v7646_v40  ;;  %v7647_v45 = vpack.c.bf16 %v4489_v43, %v4489_v43  ;;  %v4683_v46 = vsel %vm3911_vm10, %v2959_v37, %v4297_v42  ;;  %v2187_v47 = vpop.f32.mrb[8].mxu0  ;;  %v2963_v48 = vpop.f32.mrb[8].mxu1  ;;  %v9085_v43 = vld [vmem:[%s9287_s24 + $0xf8] sm:$0xff]  }
  0xf6   : > { %6613 = vst.msk [vmem:[%s9521_s29 + $0x310] sm:$0xf] %vm6416_vm4, %v7840_v44  ;;  %v7841_v49 = vpack.c.bf16 %v4683_v46, %v4683_v46  ;;  %v2188_v50 = vadd.f32 %v9504_v58, %v2187_v47  ;;  %v8242_v51 = vpop.f32.mrb[9].mxu0  ;;  %v2964_v52 = vadd.f32 %v9504_v58, %v2963_v48  ;;  %v8630_v54 = vpop.f32.mrb[9].mxu1 }
  0xf7   : > { %6420 = vst.msk [vmem:[%s9521_s29 + $0xc] sm:$0xf] %vm6416_vm4, %v7647_v45  ;;  %v2190_v56 = vpop.f32.mrb[10].mxu0  ;;  %v2966_v57 = vpop.f32.mrb[10].mxu1  ;;  %v9086_v45 = vld [vmem:[%s9287_s24 + $0x400] sm:$0xff]  }
  0xf8   : > { %6614 = vst.msk [vmem:[%s9521_s29 + $0x314] sm:$0xf] %vm6416_vm4, %v7841_v49  ;;  %vm3718_vm11 = vcmp.ge.f32.partialorder %v2188_v50, 0.0  ;;  %v4104_v59 = vmul.f32 0.01, %v2188_v50  ;;  %v2191_v60 = vadd.f32 %v9504_v58, %v2190_v56  ;;  %v8243_v61 = vpop.f32.mrb[11].mxu0  ;;  %v2967_v0 = vadd.f32 %v9504_v58, %v2966_v57 }
  0xf9   : > { %vm3912_vm12 = vcmp.ge.f32.partialorder %v2964_v52, 0.0  ;;  %v8631_v62 = vpop.f32.mrb[11].mxu1  ;;  %v4298_v63 = vmul.f32 0.01, %v2964_v52 }
  0xfa   : > { %v4490_v2 = vsel %vm3718_vm11, %v2188_v50, %v4104_v59  ;;  %vm3719_vm13 = vcmp.ge.f32.partialorder %v2191_v60, 0.0  ;;  %v4105_v3 = vmul.f32 0.01, %v2191_v60  ;;  %8349 = vmatmul.mubr.msk.bf16.gmra.mrb[116].mxu0 %vm1557_vm1, %v9081_v53  ;;  %8737 = vmatmul.mubr.msk.bf16.gmra.mrb[116].mxu1 %vm1557_vm1, %v9082_v55  ;;  %vm3913_vm14 = vcmp.ge.f32.partialorder %v2967_v0, 0.0 }
  0xfb   : > { %v7648_v4 = vpack.c.bf16 %v4490_v2, %v4490_v2  ;;  %v4684_v5 = vsel %vm3912_vm12, %v2964_v52, %v4298_v63  ;;  %v4299_v6 = vmul.f32 0.01, %v2967_v0  ;;  %8352 = vmatprep.mubr.msk.bf16.mxu0 %vm9231_vm0, %v9230_v1  ;;  %8740 = vmatprep.mubr.msk.bf16.mxu1 %vm9231_vm0, %v9230_v1 }
  0xfc   : > { %v4491_v7 = vsel %vm3719_vm13, %v2191_v60, %v4105_v3  ;;  %v7842_v8 = vpack.c.bf16 %v4684_v5, %v4684_v5 }
  0xfd   : > { %6421 = vst.msk [vmem:[%s9521_s29 + $0x10] sm:$0xf] %vm6416_vm4, %v7648_v4  ;;  %v7649_v9 = vpack.c.bf16 %v4491_v7, %v4491_v7  ;;  %v4685_v10 = vsel %vm3913_vm14, %v2967_v0, %v4299_v6  ;;  %v2195_v11 = vpop.f32.mrb[12].mxu0  ;;  %v2971_v12 = vpop.f32.mrb[12].mxu1  ;;  %v9087_v7 = vld [vmem:[%s9287_s24 + $0x100] sm:$0xff]  }
  0xfe   : > { %6615 = vst.msk [vmem:[%s9521_s29 + $0x318] sm:$0xf] %vm6416_vm4, %v7842_v8  ;;  %v7843_v13 = vpack.c.bf16 %v4685_v10, %v4685_v10  ;;  %v2196_v14 = vadd.f32 %v9504_v58, %v2195_v11  ;;  %v8246_v15 = vpop.f32.mrb[13].mxu0  ;;  %v2972_v16 = vadd.f32 %v9504_v58, %v2971_v12  ;;  %v8634_v18 = vpop.f32.mrb[13].mxu1 }
  0xff   : > { %6422 = vst.msk [vmem:[%s9521_s29 + $0x14] sm:$0xf] %vm6416_vm4, %v7649_v9  ;;  %v2198_v20 = vpop.f32.mrb[14].mxu0  ;;  %v2974_v21 = vpop.f32.mrb[14].mxu1  ;;  %v9088_v9 = vld [vmem:[%s9287_s24 + $0x408] sm:$0xff]  }
 0x100   : > { %6616 = vst.msk [vmem:[%s9521_s29 + $0x31c] sm:$0xf] %vm6416_vm4, %v7843_v13  ;;  %vm3720_vm15 = vcmp.ge.f32.partialorder %v2196_v14, 0.0  ;;  %v4106_v22 = vmul.f32 0.01, %v2196_v14  ;;  %v2199_v23 = vadd.f32 %v9504_v58, %v2198_v20  ;;  %v8247_v24 = vpop.f32.mrb[15].mxu0  ;;  %v2975_v27 = vadd.f32 %v9504_v58, %v2974_v21 }
 0x101   : > { %vm3914_vm2 = vcmp.ge.f32.partialorder %v2972_v16, 0.0  ;;  %v8635_v25 = vpop.f32.mrb[15].mxu1  ;;  %v4300_v26 = vmul.f32 0.01, %v2972_v16 }
 0x102   : > { %v4492_v28 = vsel %vm3720_vm15, %v2196_v14, %v4106_v22  ;;  %vm3721_vm3 = vcmp.ge.f32.partialorder %v2199_v23, 0.0  ;;  %v4107_v29 = vmul.f32 0.01, %v2199_v23  ;;  %8353 = vmatmul.mubr.msk.bf16.gmra.mrb[120].mxu0 %vm1557_vm1, %v9083_v17  ;;  %8741 = vmatmul.mubr.msk.bf16.gmra.mrb[120].mxu1 %vm1557_vm1, %v9084_v19  ;;  %vm3915_vm5 = vcmp.ge.f32.partialorder %v2975_v27, 0.0 }
 0x103   : > { %v7650_v30 = vpack.c.bf16 %v4492_v28, %v4492_v28  ;;  %v4686_v31 = vsel %vm3914_vm2, %v2972_v16, %v4300_v26  ;;  %v4301_v32 = vmul.f32 0.01, %v2975_v27  ;;  %8356 = vmatprep.mubr.msk.bf16.mxu0 %vm9231_vm0, %v9230_v1  ;;  %8744 = vmatprep.mubr.msk.bf16.mxu1 %vm9231_vm0, %v9230_v1 }
 0x104   : > { %v4493_v33 = vsel %vm3721_vm3, %v2199_v23, %v4107_v29  ;;  %v7844_v34 = vpack.c.bf16 %v4686_v31, %v4686_v31 }
 0x105   : > { %6423 = vst.msk [vmem:[%s9521_s29 + $0x18] sm:$0xf] %vm6416_vm4, %v7650_v30  ;;  %v7651_v35 = vpack.c.bf16 %v4493_v33, %v4493_v33  ;;  %v4687_v36 = vsel %vm3915_vm5, %v2975_v27, %v4301_v32  ;;  %v2203_v37 = vpop.f32.mrb[16].mxu0  ;;  %v2979_v38 = vpop.f32.mrb[16].mxu1  ;;  %v9089_v33 = vld [vmem:[%s9287_s24 + $0x108] sm:$0xff]  }
 0x106   : > { %6617 = vst.msk [vmem:[%s9521_s29 + $0x320] sm:$0xf] %vm6416_vm4, %v7844_v34  ;;  %v7845_v39 = vpack.c.bf16 %v4687_v36, %v4687_v36  ;;  %v2204_v40 = vadd.f32 %v9504_v58, %v2203_v37  ;;  %v8250_v41 = vpop.f32.mrb[17].mxu0  ;;  %v2980_v42 = vadd.f32 %v9504_v58, %v2979_v38  ;;  %v8638_v44 = vpop.f32.mrb[17].mxu1 }
 0x107   : > { %6424 = vst.msk [vmem:[%s9521_s29 + $0x1c] sm:$0xf] %vm6416_vm4, %v7651_v35  ;;  %v2206_v46 = vpop.f32.mrb[18].mxu0  ;;  %v2982_v47 = vpop.f32.mrb[18].mxu1  ;;  %v9090_v35 = vld [vmem:[%s9287_s24 + $0x410] sm:$0xff]  }
 0x108   : > { %6618 = vst.msk [vmem:[%s9521_s29 + $0x324] sm:$0xf] %vm6416_vm4, %v7845_v39  ;;  %vm3722_vm6 = vcmp.ge.f32.partialorder %v2204_v40, 0.0  ;;  %v4108_v48 = vmul.f32 0.01, %v2204_v40  ;;  %v2207_v49 = vadd.f32 %v9504_v58, %v2206_v46  ;;  %v8251_v50 = vpop.f32.mrb[19].mxu0  ;;  %v2983_v53 = vadd.f32 %v9504_v58, %v2982_v47 }
 0x109   : > { %vm3916_vm7 = vcmp.ge.f32.partialorder %v2980_v42, 0.0  ;;  %v8639_v51 = vpop.f32.mrb[19].mxu1  ;;  %v4302_v52 = vmul.f32 0.01, %v2980_v42 }
 0x10a   : > { %v4494_v54 = vsel %vm3722_vm6, %v2204_v40, %v4108_v48  ;;  %vm3723_vm8 = vcmp.ge.f32.partialorder %v2207_v49, 0.0  ;;  %v4109_v55 = vmul.f32 0.01, %v2207_v49  ;;  %8357 = vmatmul.mubr.msk.bf16.gmra.mrb[124].mxu0 %vm1557_vm1, %v9085_v43  ;;  %8745 = vmatmul.mubr.msk.bf16.gmra.mrb[124].mxu1 %vm1557_vm1, %v9086_v45  ;;  %vm3917_vm9 = vcmp.ge.f32.partialorder %v2983_v53, 0.0 }
 0x10b   : > { %v7652_v56 = vpack.c.bf16 %v4494_v54, %v4494_v54  ;;  %v4688_v57 = vsel %vm3916_vm7, %v2980_v42, %v4302_v52  ;;  %v4303_v59 = vmul.f32 0.01, %v2983_v53  ;;  %8360 = vmatprep.mubr.msk.bf16.mxu0 %vm9231_vm0, %v9230_v1  ;;  %8748 = vmatprep.mubr.msk.bf16.mxu1 %vm9231_vm0, %v9230_v1 }
 0x10c   : > { %v4495_v60 = vsel %vm3723_vm8, %v2207_v49, %v4109_v55  ;;  %v7846_v61 = vpack.c.bf16 %v4688_v57, %v4688_v57 }
 0x10d   : > { %6425 = vst.msk [vmem:[%s9521_s29 + $0x20] sm:$0xf] %vm6416_vm4, %v7652_v56  ;;  %v7653_v62 = vpack.c.bf16 %v4495_v60, %v4495_v60  ;;  %v4689_v63 = vsel %vm3917_vm9, %v2983_v53, %v4303_v59  ;;  %v2211_v0 = vpop.f32.mrb[20].mxu0  ;;  %v2987_v2 = vpop.f32.mrb[20].mxu1  ;;  %v9091_v60 = vld [vmem:[%s9287_s24 + $0x110] sm:$0xff]  }
 0x10e   : > { %6619 = vst.msk [vmem:[%s9521_s29 + $0x328] sm:$0xf] %vm6416_vm4, %v7846_v61  ;;  %v7847_v3 = vpack.c.bf16 %v4689_v63, %v4689_v63  ;;  %v2212_v4 = vadd.f32 %v9504_v58, %v2211_v0  ;;  %v8254_v5 = vpop.f32.mrb[21].mxu0  ;;  %v2988_v6 = vadd.f32 %v9504_v58, %v2987_v2  ;;  %v8642_v8 = vpop.f32.mrb[21].mxu1 }
 0x10f   : > { %6426 = vst.msk [vmem:[%s9521_s29 + $0x24] sm:$0xf] %vm6416_vm4, %v7653_v62  ;;  %v2214_v10 = vpop.f32.mrb[22].mxu0  ;;  %v2990_v11 = vpop.f32.mrb[22].mxu1  ;;  %v9092_v62 = vld [vmem:[%s9287_s24 + $0x418] sm:$0xff]  }
 0x110   : > { %6620 = vst.msk [vmem:[%s9521_s29 + $0x32c] sm:$0xf] %vm6416_vm4, %v7847_v3  ;;  %vm3724_vm10 = vcmp.ge.f32.partialorder %v2212_v4, 0.0  ;;  %v4110_v12 = vmul.f32 0.01, %v2212_v4  ;;  %v2215_v13 = vadd.f32 %v9504_v58, %v2214_v10  ;;  %v8255_v14 = vpop.f32.mrb[23].mxu0  ;;  %v2991_v17 = vadd.f32 %v9504_v58, %v2990_v11 }
 0x111   : > { %vm3918_vm11 = vcmp.ge.f32.partialorder %v2988_v6, 0.0  ;;  %v8643_v15 = vpop.f32.mrb[23].mxu1  ;;  %v4304_v16 = vmul.f32 0.01, %v2988_v6 }
 0x112   : > { %v4496_v18 = vsel %vm3724_vm10, %v2212_v4, %v4110_v12  ;;  %vm3725_vm12 = vcmp.ge.f32.partialorder %v2215_v13, 0.0  ;;  %v4111_v19 = vmul.f32 0.01, %v2215_v13  ;;  %8361 = vmatmul.mubr.msk.bf16.gmra.mrb[128].mxu0 %vm1557_vm1, %v9087_v7  ;;  %8749 = vmatmul.mubr.msk.bf16.gmra.mrb[128].mxu1 %vm1557_vm1, %v9088_v9  ;;  %vm3919_vm13 = vcmp.ge.f32.partialorder %v2991_v17, 0.0 }
 0x113   : > { %v7654_v20 = vpack.c.bf16 %v4496_v18, %v4496_v18  ;;  %v4690_v21 = vsel %vm3918_vm11, %v2988_v6, %v4304_v16  ;;  %v4305_v22 = vmul.f32 0.01, %v2991_v17  ;;  %8364 = vmatprep.mubr.msk.bf16.mxu0 %vm9231_vm0, %v9230_v1  ;;  %8752 = vmatprep.mubr.msk.bf16.mxu1 %vm9231_vm0, %v9230_v1 }
 0x114   : > { %v4497_v23 = vsel %vm3725_vm12, %v2215_v13, %v4111_v19  ;;  %v7848_v24 = vpack.c.bf16 %v4690_v21, %v4690_v21 }
 0x115   : > { %6427 = vst.msk [vmem:[%s9521_s29 + $0x28] sm:$0xf] %vm6416_vm4, %v7654_v20  ;;  %v7655_v25 = vpack.c.bf16 %v4497_v23, %v4497_v23  ;;  %v4691_v26 = vsel %vm3919_vm13, %v2991_v17, %v4305_v22  ;;  %v2219_v27 = vpop.f32.mrb[24].mxu0  ;;  %v2995_v28 = vpop.f32.mrb[24].mxu1  ;;  %v9093_v23 = vld [vmem:[%s9287_s24 + $0x118] sm:$0xff]  }
 0x116   : > { %6621 = vst.msk [vmem:[%s9521_s29 + $0x330] sm:$0xf] %vm6416_vm4, %v7848_v24  ;;  %v7849_v29 = vpack.c.bf16 %v4691_v26, %v4691_v26  ;;  %v2220_v30 = vadd.f32 %v9504_v58, %v2219_v27  ;;  %v8258_v31 = vpop.f32.mrb[25].mxu0  ;;  %v2996_v32 = vadd.f32 %v9504_v58, %v2995_v28  ;;  %v8646_v34 = vpop.f32.mrb[25].mxu1 }
 0x117   : > { %6428 = vst.msk [vmem:[%s9521_s29 + $0x2c] sm:$0xf] %vm6416_vm4, %v7655_v25  ;;  %v2222_v36 = vpop.f32.mrb[26].mxu0  ;;  %v2998_v37 = vpop.f32.mrb[26].mxu1  ;;  %v9094_v25 = vld [vmem:[%s9287_s24 + $0x420] sm:$0xff]  }
 0x118   : > { %6622 = vst.msk [vmem:[%s9521_s29 + $0x334] sm:$0xf] %vm6416_vm4, %v7849_v29  ;;  %vm3726_vm14 = vcmp.ge.f32.partialorder %v2220_v30, 0.0  ;;  %v4112_v38 = vmul.f32 0.01, %v2220_v30  ;;  %v2223_v39 = vadd.f32 %v9504_v58, %v2222_v36  ;;  %v8259_v40 = vpop.f32.mrb[27].mxu0  ;;  %v2999_v43 = vadd.f32 %v9504_v58, %v2998_v37 }
 0x119   : > { %vm3920_vm15 = vcmp.ge.f32.partialorder %v2996_v32, 0.0  ;;  %v8647_v41 = vpop.f32.mrb[27].mxu1  ;;  %v4306_v42 = vmul.f32 0.01, %v2996_v32 }
 0x11a   : > { %v4498_v44 = vsel %vm3726_vm14, %v2220_v30, %v4112_v38  ;;  %vm3727_vm2 = vcmp.ge.f32.partialorder %v2223_v39, 0.0  ;;  %v4113_v45 = vmul.f32 0.01, %v2223_v39  ;;  %8365 = vmatmul.mubr.msk.bf16.gmra.mrb[132].mxu0 %vm1557_vm1, %v9089_v33  ;;  %8753 = vmatmul.mubr.msk.bf16.gmra.mrb[132].mxu1 %vm1557_vm1, %v9090_v35  ;;  %vm3921_vm3 = vcmp.ge.f32.partialorder %v2999_v43, 0.0 }
 0x11b   : > { %v7656_v46 = vpack.c.bf16 %v4498_v44, %v4498_v44  ;;  %v4692_v47 = vsel %vm3920_vm15, %v2996_v32, %v4306_v42  ;;  %v4307_v48 = vmul.f32 0.01, %v2999_v43  ;;  %8368 = vmatprep.mubr.msk.bf16.mxu0 %vm9231_vm0, %v9230_v1  ;;  %8756 = vmatprep.mubr.msk.bf16.mxu1 %vm9231_vm0, %v9230_v1 }
 0x11c   : > { %v4499_v49 = vsel %vm3727_vm2, %v2223_v39, %v4113_v45  ;;  %v7850_v50 = vpack.c.bf16 %v4692_v47, %v4692_v47 }
 0x11d   : > { %6429 = vst.msk [vmem:[%s9521_s29 + $0x30] sm:$0xf] %vm6416_vm4, %v7656_v46  ;;  %v7657_v51 = vpack.c.bf16 %v4499_v49, %v4499_v49  ;;  %v4693_v52 = vsel %vm3921_vm3, %v2999_v43, %v4307_v48  ;;  %v2227_v53 = vpop.f32.mrb[28].mxu0  ;;  %v3003_v54 = vpop.f32.mrb[28].mxu1  ;;  %v9095_v49 = vld [vmem:[%s9287_s24 + $0x120] sm:$0xff]  }
 0x11e   : > { %6623 = vst.msk [vmem:[%s9521_s29 + $0x338] sm:$0xf] %vm6416_vm4, %v7850_v50  ;;  %v7851_v55 = vpack.c.bf16 %v4693_v52, %v4693_v52  ;;  %v2228_v56 = vadd.f32 %v9504_v58, %v2227_v53  ;;  %v8262_v57 = vpop.f32.mrb[29].mxu0  ;;  %v3004_v59 = vadd.f32 %v9504_v58, %v3003_v54  ;;  %v8650_v61 = vpop.f32.mrb[29].mxu1 }
 0x11f   : > { %6430 = vst.msk [vmem:[%s9521_s29 + $0x34] sm:$0xf] %vm6416_vm4, %v7657_v51  ;;  %v2230_v63 = vpop.f32.mrb[30].mxu0  ;;  %v3006_v0 = vpop.f32.mrb[30].mxu1  ;;  %v9096_v51 = vld [vmem:[%s9287_s24 + $0x428] sm:$0xff]  }
 0x120   : > { %6624 = vst.msk [vmem:[%s9521_s29 + $0x33c] sm:$0xf] %vm6416_vm4, %v7851_v55  ;;  %vm3728_vm5 = vcmp.ge.f32.partialorder %v2228_v56, 0.0  ;;  %v4114_v2 = vmul.f32 0.01, %v2228_v56  ;;  %v2231_v3 = vadd.f32 %v9504_v58, %v2230_v63  ;;  %v8263_v4 = vpop.f32.mrb[31].mxu0  ;;  %v3007_v7 = vadd.f32 %v9504_v58, %v3006_v0 }
 0x121   : > { %vm3922_vm6 = vcmp.ge.f32.partialorder %v3004_v59, 0.0  ;;  %v8651_v5 = vpop.f32.mrb[31].mxu1  ;;  %v4308_v6 = vmul.f32 0.01, %v3004_v59 }
 0x122   : > { %v4500_v8 = vsel %vm3728_vm5, %v2228_v56, %v4114_v2  ;;  %vm3729_vm7 = vcmp.ge.f32.partialorder %v2231_v3, 0.0  ;;  %v4115_v9 = vmul.f32 0.01, %v2231_v3  ;;  %8369 = vmatmul.mubr.msk.bf16.gmra.mrb[136].mxu0 %vm1557_vm1, %v9091_v60  ;;  %8757 = vmatmul.mubr.msk.bf16.gmra.mrb[136].mxu1 %vm1557_vm1, %v9092_v62  ;;  %vm3923_vm8 = vcmp.ge.f32.partialorder %v3007_v7, 0.0 }
 0x123   : > { %v7658_v10 = vpack.c.bf16 %v4500_v8, %v4500_v8  ;;  %v4694_v11 = vsel %vm3922_vm6, %v3004_v59, %v4308_v6  ;;  %v4309_v12 = vmul.f32 0.01, %v3007_v7  ;;  %8372 = vmatprep.mubr.msk.bf16.mxu0 %vm9231_vm0, %v9230_v1  ;;  %8760 = vmatprep.mubr.msk.bf16.mxu1 %vm9231_vm0, %v9230_v1 }
 0x124   : > { %v4501_v13 = vsel %vm3729_vm7, %v2231_v3, %v4115_v9  ;;  %v7852_v14 = vpack.c.bf16 %v4694_v11, %v4694_v11 }
 0x125   : > { %6431 = vst.msk [vmem:[%s9521_s29 + $0x38] sm:$0xf] %vm6416_vm4, %v7658_v10  ;;  %v7659_v15 = vpack.c.bf16 %v4501_v13, %v4501_v13  ;;  %v4695_v16 = vsel %vm3923_vm8, %v3007_v7, %v4309_v12  ;;  %v2235_v17 = vpop.f32.mrb[32].mxu0  ;;  %v3011_v18 = vpop.f32.mrb[32].mxu1  ;;  %v9097_v13 = vld [vmem:[%s9287_s24 + $0x128] sm:$0xff]  }
 0x126   : > { %6625 = vst.msk [vmem:[%s9521_s29 + $0x340] sm:$0xf] %vm6416_vm4, %v7852_v14  ;;  %v7853_v19 = vpack.c.bf16 %v4695_v16, %v4695_v16  ;;  %v2236_v20 = vadd.f32 %v9504_v58, %v2235_v17  ;;  %v8266_v21 = vpop.f32.mrb[33].mxu0  ;;  %v3012_v22 = vadd.f32 %v9504_v58, %v3011_v18  ;;  %v8654_v24 = vpop.f32.mrb[33].mxu1 }
 0x127   : > { %6432 = vst.msk [vmem:[%s9521_s29 + $0x3c] sm:$0xf] %vm6416_vm4, %v7659_v15  ;;  %v2238_v26 = vpop.f32.mrb[34].mxu0  ;;  %v3014_v27 = vpop.f32.mrb[34].mxu1  ;;  %v9098_v15 = vld [vmem:[%s9287_s24 + $0x430] sm:$0xff]  }
 0x128   : > { %6626 = vst.msk [vmem:[%s9521_s29 + $0x344] sm:$0xf] %vm6416_vm4, %v7853_v19  ;;  %vm3730_vm9 = vcmp.ge.f32.partialorder %v2236_v20, 0.0  ;;  %v4116_v28 = vmul.f32 0.01, %v2236_v20  ;;  %v2239_v29 = vadd.f32 %v9504_v58, %v2238_v26  ;;  %v8267_v30 = vpop.f32.mrb[35].mxu0  ;;  %v3015_v33 = vadd.f32 %v9504_v58, %v3014_v27 }
 0x129   : > { %vm3924_vm10 = vcmp.ge.f32.partialorder %v3012_v22, 0.0  ;;  %v8655_v31 = vpop.f32.mrb[35].mxu1  ;;  %v4310_v32 = vmul.f32 0.01, %v3012_v22 }
 0x12a   : > { %v4502_v34 = vsel %vm3730_vm9, %v2236_v20, %v4116_v28  ;;  %vm3731_vm11 = vcmp.ge.f32.partialorder %v2239_v29, 0.0  ;;  %v4117_v35 = vmul.f32 0.01, %v2239_v29  ;;  %8373 = vmatmul.mubr.msk.bf16.gmra.mrb[140].mxu0 %vm1557_vm1, %v9093_v23  ;;  %8761 = vmatmul.mubr.msk.bf16.gmra.mrb[140].mxu1 %vm1557_vm1, %v9094_v25  ;;  %vm3925_vm12 = vcmp.ge.f32.partialorder %v3015_v33, 0.0 }
 0x12b   : > { %v7660_v36 = vpack.c.bf16 %v4502_v34, %v4502_v34  ;;  %v4696_v37 = vsel %vm3924_vm10, %v3012_v22, %v4310_v32  ;;  %v4311_v38 = vmul.f32 0.01, %v3015_v33  ;;  %8376 = vmatprep.mubr.msk.bf16.mxu0 %vm9231_vm0, %v9230_v1  ;;  %8764 = vmatprep.mubr.msk.bf16.mxu1 %vm9231_vm0, %v9230_v1 }
 0x12c   : > { %v4503_v39 = vsel %vm3731_vm11, %v2239_v29, %v4117_v35  ;;  %v7854_v40 = vpack.c.bf16 %v4696_v37, %v4696_v37 }
 0x12d   : > { %6433 = vst.msk [vmem:[%s9521_s29 + $0x40] sm:$0xf] %vm6416_vm4, %v7660_v36  ;;  %v7661_v41 = vpack.c.bf16 %v4503_v39, %v4503_v39  ;;  %v4697_v42 = vsel %vm3925_vm12, %v3015_v33, %v4311_v38  ;;  %v2243_v43 = vpop.f32.mrb[36].mxu0  ;;  %v3019_v44 = vpop.f32.mrb[36].mxu1  ;;  %v9099_v39 = vld [vmem:[%s9287_s24 + $0x130] sm:$0xff]  }
 0x12e   : > { %6627 = vst.msk [vmem:[%s9521_s29 + $0x348] sm:$0xf] %vm6416_vm4, %v7854_v40  ;;  %v7855_v45 = vpack.c.bf16 %v4697_v42, %v4697_v42  ;;  %v2244_v46 = vadd.f32 %v9504_v58, %v2243_v43  ;;  %v8270_v47 = vpop.f32.mrb[37].mxu0  ;;  %v3020_v48 = vadd.f32 %v9504_v58, %v3019_v44  ;;  %v8658_v50 = vpop.f32.mrb[37].mxu1 }
 0x12f   : > { %6434 = vst.msk [vmem:[%s9521_s29 + $0x44] sm:$0xf] %vm6416_vm4, %v7661_v41  ;;  %v2246_v52 = vpop.f32.mrb[38].mxu0  ;;  %v3022_v53 = vpop.f32.mrb[38].mxu1  ;;  %v9100_v41 = vld [vmem:[%s9287_s24 + $0x438] sm:$0xff]  }
 0x130   : > { %6628 = vst.msk [vmem:[%s9521_s29 + $0x34c] sm:$0xf] %vm6416_vm4, %v7855_v45  ;;  %vm3732_vm13 = vcmp.ge.f32.partialorder %v2244_v46, 0.0  ;;  %v4118_v54 = vmul.f32 0.01, %v2244_v46  ;;  %v2247_v55 = vadd.f32 %v9504_v58, %v2246_v52  ;;  %v8271_v56 = vpop.f32.mrb[39].mxu0  ;;  %v3023_v60 = vadd.f32 %v9504_v58, %v3022_v53 }
 0x131   : > { %vm3926_vm14 = vcmp.ge.f32.partialorder %v3020_v48, 0.0  ;;  %v8659_v57 = vpop.f32.mrb[39].mxu1  ;;  %v4312_v59 = vmul.f32 0.01, %v3020_v48 }
 0x132   : > { %v4504_v61 = vsel %vm3732_vm13, %v2244_v46, %v4118_v54  ;;  %vm3733_vm15 = vcmp.ge.f32.partialorder %v2247_v55, 0.0  ;;  %v4119_v62 = vmul.f32 0.01, %v2247_v55  ;;  %8377 = vmatmul.mubr.msk.bf16.gmra.mrb[144].mxu0 %vm1557_vm1, %v9095_v49  ;;  %8765 = vmatmul.mubr.msk.bf16.gmra.mrb[144].mxu1 %vm1557_vm1, %v9096_v51  ;;  %vm3927_vm2 = vcmp.ge.f32.partialorder %v3023_v60, 0.0 }
 0x133   : > { %v7662_v63 = vpack.c.bf16 %v4504_v61, %v4504_v61  ;;  %v4698_v0 = vsel %vm3926_vm14, %v3020_v48, %v4312_v59  ;;  %v4313_v2 = vmul.f32 0.01, %v3023_v60  ;;  %8380 = vmatprep.mubr.msk.bf16.mxu0 %vm9231_vm0, %v9230_v1  ;;  %8768 = vmatprep.mubr.msk.bf16.mxu1 %vm9231_vm0, %v9230_v1 }
 0x134   : > { %v4505_v3 = vsel %vm3733_vm15, %v2247_v55, %v4119_v62  ;;  %v7856_v4 = vpack.c.bf16 %v4698_v0, %v4698_v0 }
 0x135   : > { %6435 = vst.msk [vmem:[%s9521_s29 + $0x48] sm:$0xf] %vm6416_vm4, %v7662_v63  ;;  %v7663_v5 = vpack.c.bf16 %v4505_v3, %v4505_v3  ;;  %v4699_v6 = vsel %vm3927_vm2, %v3023_v60, %v4313_v2  ;;  %v2251_v7 = vpop.f32.mrb[40].mxu0  ;;  %v3027_v8 = vpop.f32.mrb[40].mxu1  ;;  %v9101_v3 = vld [vmem:[%s9287_s24 + $0x138] sm:$0xff]  }
 0x136   : > { %6629 = vst.msk [vmem:[%s9521_s29 + $0x350] sm:$0xf] %vm6416_vm4, %v7856_v4  ;;  %v7857_v9 = vpack.c.bf16 %v4699_v6, %v4699_v6  ;;  %v2252_v10 = vadd.f32 %v9504_v58, %v2251_v7  ;;  %v8274_v11 = vpop.f32.mrb[41].mxu0  ;;  %v3028_v12 = vadd.f32 %v9504_v58, %v3027_v8  ;;  %v8662_v14 = vpop.f32.mrb[41].mxu1 }
 0x137   : > { %6436 = vst.msk [vmem:[%s9521_s29 + $0x4c] sm:$0xf] %vm6416_vm4, %v7663_v5  ;;  %v2254_v16 = vpop.f32.mrb[42].mxu0  ;;  %v3030_v17 = vpop.f32.mrb[42].mxu1  ;;  %v9102_v5 = vld [vmem:[%s9287_s24 + $0x440] sm:$0xff]  }
 0x138   : > { %6630 = vst.msk [vmem:[%s9521_s29 + $0x354] sm:$0xf] %vm6416_vm4, %v7857_v9  ;;  %vm3734_vm3 = vcmp.ge.f32.partialorder %v2252_v10, 0.0  ;;  %v4120_v18 = vmul.f32 0.01, %v2252_v10  ;;  %v2255_v19 = vadd.f32 %v9504_v58, %v2254_v16  ;;  %v8275_v20 = vpop.f32.mrb[43].mxu0  ;;  %v3031_v23 = vadd.f32 %v9504_v58, %v3030_v17 }
 0x139   : > { %vm3928_vm5 = vcmp.ge.f32.partialorder %v3028_v12, 0.0  ;;  %v8663_v21 = vpop.f32.mrb[43].mxu1  ;;  %v4314_v22 = vmul.f32 0.01, %v3028_v12 }
 0x13a   : > { %v4506_v24 = vsel %vm3734_vm3, %v2252_v10, %v4120_v18  ;;  %vm3735_vm6 = vcmp.ge.f32.partialorder %v2255_v19, 0.0  ;;  %v4121_v25 = vmul.f32 0.01, %v2255_v19  ;;  %8381 = vmatmul.mubr.msk.bf16.gmra.mrb[148].mxu0 %vm1557_vm1, %v9097_v13  ;;  %8769 = vmatmul.mubr.msk.bf16.gmra.mrb[148].mxu1 %vm1557_vm1, %v9098_v15  ;;  %vm3929_vm7 = vcmp.ge.f32.partialorder %v3031_v23, 0.0 }
 0x13b   : > { %v7664_v26 = vpack.c.bf16 %v4506_v24, %v4506_v24  ;;  %v4700_v27 = vsel %vm3928_vm5, %v3028_v12, %v4314_v22  ;;  %v4315_v28 = vmul.f32 0.01, %v3031_v23  ;;  %8384 = vmatprep.mubr.msk.bf16.mxu0 %vm9231_vm0, %v9230_v1  ;;  %8772 = vmatprep.mubr.msk.bf16.mxu1 %vm9231_vm0, %v9230_v1 }
 0x13c   : > { %v4507_v29 = vsel %vm3735_vm6, %v2255_v19, %v4121_v25  ;;  %v7858_v30 = vpack.c.bf16 %v4700_v27, %v4700_v27 }
 0x13d   : > { %6437 = vst.msk [vmem:[%s9521_s29 + $0x50] sm:$0xf] %vm6416_vm4, %v7664_v26  ;;  %v7665_v31 = vpack.c.bf16 %v4507_v29, %v4507_v29  ;;  %v4701_v32 = vsel %vm3929_vm7, %v3031_v23, %v4315_v28  ;;  %v2259_v33 = vpop.f32.mrb[44].mxu0  ;;  %v3035_v34 = vpop.f32.mrb[44].mxu1  ;;  %v9103_v29 = vld [vmem:[%s9287_s24 + $0x140] sm:$0xff]  }
 0x13e   : > { %6631 = vst.msk [vmem:[%s9521_s29 + $0x358] sm:$0xf] %vm6416_vm4, %v7858_v30  ;;  %v7859_v35 = vpack.c.bf16 %v4701_v32, %v4701_v32  ;;  %v2260_v36 = vadd.f32 %v9504_v58, %v2259_v33  ;;  %v8278_v37 = vpop.f32.mrb[45].mxu0  ;;  %v3036_v38 = vadd.f32 %v9504_v58, %v3035_v34  ;;  %v8666_v40 = vpop.f32.mrb[45].mxu1 }
 0x13f   : > { %6438 = vst.msk [vmem:[%s9521_s29 + $0x54] sm:$0xf] %vm6416_vm4, %v7665_v31  ;;  %v2262_v42 = vpop.f32.mrb[46].mxu0  ;;  %v3038_v43 = vpop.f32.mrb[46].mxu1  ;;  %v9104_v31 = vld [vmem:[%s9287_s24 + $0x448] sm:$0xff]  }
 0x140   : > { %6632 = vst.msk [vmem:[%s9521_s29 + $0x35c] sm:$0xf] %vm6416_vm4, %v7859_v35  ;;  %vm3736_vm8 = vcmp.ge.f32.partialorder %v2260_v36, 0.0  ;;  %v4122_v44 = vmul.f32 0.01, %v2260_v36  ;;  %v2263_v45 = vadd.f32 %v9504_v58, %v2262_v42  ;;  %v8279_v46 = vpop.f32.mrb[47].mxu0  ;;  %v3039_v49 = vadd.f32 %v9504_v58, %v3038_v43 }
 0x141   : > { %vm3930_vm9 = vcmp.ge.f32.partialorder %v3036_v38, 0.0  ;;  %v8667_v47 = vpop.f32.mrb[47].mxu1  ;;  %v4316_v48 = vmul.f32 0.01, %v3036_v38 }
 0x142   : > { %v4508_v50 = vsel %vm3736_vm8, %v2260_v36, %v4122_v44  ;;  %vm3737_vm10 = vcmp.ge.f32.partialorder %v2263_v45, 0.0  ;;  %v4123_v51 = vmul.f32 0.01, %v2263_v45  ;;  %8385 = vmatmul.mubr.msk.bf16.gmra.mrb[152].mxu0 %vm1557_vm1, %v9099_v39  ;;  %8773 = vmatmul.mubr.msk.bf16.gmra.mrb[152].mxu1 %vm1557_vm1, %v9100_v41  ;;  %vm3931_vm11 = vcmp.ge.f32.partialorder %v3039_v49, 0.0  ;;  %v9785_v39 = vld [vmem:[%s11262_s2] ss:$0 sm:$0xff] }
 0x143   : > { %v7666_v52 = vpack.c.bf16 %v4508_v50, %v4508_v50  ;;  %v4702_v53 = vsel %vm3930_vm9, %v3036_v38, %v4316_v48  ;;  %v4317_v54 = vmul.f32 0.01, %v3039_v49  ;;  %8388 = vmatprep.mubr.msk.bf16.mxu0 %vm9231_vm0, %v9230_v1  ;;  %8776 = vmatprep.mubr.msk.bf16.mxu1 %vm9231_vm0, %v9230_v1 }
 0x144   : > { %v4509_v55 = vsel %vm3737_vm10, %v2263_v45, %v4123_v51  ;;  %v7860_v56 = vpack.c.bf16 %v4702_v53, %v4702_v53 }
 0x145   : > { %6439 = vst.msk [vmem:[%s9521_s29 + $0x58] sm:$0xf] %vm6416_vm4, %v7666_v52  ;;  %v7667_v57 = vpack.c.bf16 %v4509_v55, %v4509_v55  ;;  %v4703_v59 = vsel %vm3931_vm11, %v3039_v49, %v4317_v54  ;;  %v2267_v60 = vpop.f32.mrb[48].mxu0  ;;  %v3043_v61 = vpop.f32.mrb[48].mxu1  ;;  %v9105_v55 = vld [vmem:[%s9287_s24 + $0x148] sm:$0xff]  }
 0x146   : > { %6633 = vst.msk [vmem:[%s9521_s29 + $0x360] sm:$0xf] %vm6416_vm4, %v7860_v56  ;;  %v7861_v62 = vpack.c.bf16 %v4703_v59, %v4703_v59  ;;  %v2268_v63 = vadd.f32 %v9504_v58, %v2267_v60  ;;  %v8282_v0 = vpop.f32.mrb[49].mxu0  ;;  %v3044_v2 = vadd.f32 %v9504_v58, %v3043_v61  ;;  %v8670_v4 = vpop.f32.mrb[49].mxu1 }
 0x147   : > { %6440 = vst.msk [vmem:[%s9521_s29 + $0x5c] sm:$0xf] %vm6416_vm4, %v7667_v57  ;;  %v2270_v6 = vpop.f32.mrb[50].mxu0  ;;  %v3046_v7 = vpop.f32.mrb[50].mxu1  ;;  %v9106_v57 = vld [vmem:[%s9287_s24 + $0x450] sm:$0xff]  }
 0x148   : > { %6634 = vst.msk [vmem:[%s9521_s29 + $0x364] sm:$0xf] %vm6416_vm4, %v7861_v62  ;;  %vm3738_vm12 = vcmp.ge.f32.partialorder %v2268_v63, 0.0  ;;  %v4124_v8 = vmul.f32 0.01, %v2268_v63  ;;  %v2271_v9 = vadd.f32 %v9504_v58, %v2270_v6  ;;  %v8283_v10 = vpop.f32.mrb[51].mxu0  ;;  %v3047_v13 = vadd.f32 %v9504_v58, %v3046_v7 }
 0x149   : > { %vm3932_vm13 = vcmp.ge.f32.partialorder %v3044_v2, 0.0  ;;  %v8671_v11 = vpop.f32.mrb[51].mxu1  ;;  %v4318_v12 = vmul.f32 0.01, %v3044_v2 }
 0x14a   : > { %v4510_v14 = vsel %vm3738_vm12, %v2268_v63, %v4124_v8  ;;  %vm3739_vm14 = vcmp.ge.f32.partialorder %v2271_v9, 0.0  ;;  %v4125_v15 = vmul.f32 0.01, %v2271_v9  ;;  %8389 = vmatmul.mubr.msk.bf16.gmra.mrb[156].mxu0 %vm1557_vm1, %v9101_v3  ;;  %8777 = vmatmul.mubr.msk.bf16.gmra.mrb[156].mxu1 %vm1557_vm1, %v9102_v5  ;;  %vm3933_vm15 = vcmp.ge.f32.partialorder %v3047_v13, 0.0 }
 0x14b   : > { %v7668_v16 = vpack.c.bf16 %v4510_v14, %v4510_v14  ;;  %v4704_v17 = vsel %vm3932_vm13, %v3044_v2, %v4318_v12  ;;  %v4319_v18 = vmul.f32 0.01, %v3047_v13  ;;  %8392 = vmatprep.mubr.msk.bf16.mxu0 %vm9231_vm0, %v9230_v1  ;;  %8780 = vmatprep.mubr.msk.bf16.mxu1 %vm9231_vm0, %v9230_v1 }
 0x14c   : > { %v4511_v19 = vsel %vm3739_vm14, %v2271_v9, %v4125_v15  ;;  %v7862_v20 = vpack.c.bf16 %v4704_v17, %v4704_v17 }
 0x14d   : > { %6441 = vst.msk [vmem:[%s9521_s29 + $0x60] sm:$0xf] %vm6416_vm4, %v7668_v16  ;;  %v7669_v21 = vpack.c.bf16 %v4511_v19, %v4511_v19  ;;  %v4705_v22 = vsel %vm3933_vm15, %v3047_v13, %v4319_v18  ;;  %v2275_v23 = vpop.f32.mrb[52].mxu0  ;;  %v3051_v24 = vpop.f32.mrb[52].mxu1  ;;  %v9107_v19 = vld [vmem:[%s9287_s24 + $0x150] sm:$0xff]  }
 0x14e   : > { %6635 = vst.msk [vmem:[%s9521_s29 + $0x368] sm:$0xf] %vm6416_vm4, %v7862_v20  ;;  %v7863_v25 = vpack.c.bf16 %v4705_v22, %v4705_v22  ;;  %v2276_v26 = vadd.f32 %v9504_v58, %v2275_v23  ;;  %v8286_v27 = vpop.f32.mrb[53].mxu0  ;;  %v3052_v28 = vadd.f32 %v9504_v58, %v3051_v24  ;;  %v8674_v30 = vpop.f32.mrb[53].mxu1 }
 0x14f   : > { %6442 = vst.msk [vmem:[%s9521_s29 + $0x64] sm:$0xf] %vm6416_vm4, %v7669_v21  ;;  %v2278_v32 = vpop.f32.mrb[54].mxu0  ;;  %v3054_v33 = vpop.f32.mrb[54].mxu1  ;;  %v9108_v21 = vld [vmem:[%s9287_s24 + $0x458] sm:$0xff]  }
 0x150   : > { %6636 = vst.msk [vmem:[%s9521_s29 + $0x36c] sm:$0xf] %vm6416_vm4, %v7863_v25  ;;  %vm3740_vm2 = vcmp.ge.f32.partialorder %v2276_v26, 0.0  ;;  %v4126_v34 = vmul.f32 0.01, %v2276_v26  ;;  %v2279_v35 = vadd.f32 %v9504_v58, %v2278_v32  ;;  %v8287_v36 = vpop.f32.mrb[55].mxu0  ;;  %v3055_v40 = vadd.f32 %v9785_v39, %v3054_v33 }
 0x151   : > { %vm3934_vm3 = vcmp.ge.f32.partialorder %v3052_v28, 0.0  ;;  %v8675_v37 = vpop.f32.mrb[55].mxu1  ;;  %v4320_v38 = vmul.f32 0.01, %v3052_v28 }
 0x152   : > { %v4512_v41 = vsel %vm3740_vm2, %v2276_v26, %v4126_v34  ;;  %vm3741_vm5 = vcmp.ge.f32.partialorder %v2279_v35, 0.0  ;;  %v4127_v42 = vmul.f32 0.01, %v2279_v35  ;;  %8393 = vmatmul.mubr.msk.bf16.gmra.mrb[160].mxu0 %vm1557_vm1, %v9103_v29  ;;  %8781 = vmatmul.mubr.msk.bf16.gmra.mrb[160].mxu1 %vm1557_vm1, %v9104_v31  ;;  %vm3935_vm6 = vcmp.ge.f32.partialorder %v3055_v40, 0.0 }
 0x153   : > { %v7670_v58 = vpack.c.bf16 %v4512_v41, %v4512_v41  ;;  %v4706_v43 = vsel %vm3934_vm3, %v3052_v28, %v4320_v38  ;;  %v4321_v44 = vmul.f32 0.01, %v3055_v40  ;;  %8396 = vmatprep.mubr.msk.bf16.mxu0 %vm9231_vm0, %v9230_v1  ;;  %8784 = vmatprep.mubr.msk.bf16.mxu1 %vm9231_vm0, %v9230_v1 }
 0x154   : > { %v4513_v45 = vsel %vm3741_vm5, %v2279_v35, %v4127_v42  ;;  %v7864_v46 = vpack.c.bf16 %v4706_v43, %v4706_v43 }
 0x155   : > { %6443 = vst.msk [vmem:[%s9521_s29 + $0x68] sm:$0xf] %vm6416_vm4, %v7670_v58  ;;  %v7671_v47 = vpack.c.bf16 %v4513_v45, %v4513_v45  ;;  %v4707_v48 = vsel %vm3935_vm6, %v3055_v40, %v4321_v44  ;;  %v2283_v49 = vpop.f32.mrb[56].mxu0  ;;  %v3059_v50 = vpop.f32.mrb[56].mxu1  ;;  %v9109_v45 = vld [vmem:[%s9287_s24 + $0x158] sm:$0xff]  }
 0x156   : > { %6637 = vst.msk [vmem:[%s9521_s29 + $0x370] sm:$0xf] %vm6416_vm4, %v7864_v46  ;;  %v7865_v51 = vpack.c.bf16 %v4707_v48, %v4707_v48  ;;  %v2284_v52 = vadd.f32 %v9785_v39, %v2283_v49  ;;  %v8290_v53 = vpop.f32.mrb[57].mxu0  ;;  %v3060_v54 = vadd.f32 %v9785_v39, %v3059_v50  ;;  %v8678_v56 = vpop.f32.mrb[57].mxu1 }
 0x157   : > { %6444 = vst.msk [vmem:[%s9521_s29 + $0x6c] sm:$0xf] %vm6416_vm4, %v7671_v47  ;;  %v2286_v59 = vpop.f32.mrb[58].mxu0  ;;  %v3062_v60 = vpop.f32.mrb[58].mxu1  ;;  %v9110_v47 = vld [vmem:[%s9287_s24 + $0x460] sm:$0xff]  }
 0x158   : > { %6638 = vst.msk [vmem:[%s9521_s29 + $0x374] sm:$0xf] %vm6416_vm4, %v7865_v51  ;;  %vm3742_vm7 = vcmp.ge.f32.partialorder %v2284_v52, 0.0  ;;  %v4128_v61 = vmul.f32 0.01, %v2284_v52  ;;  %v2287_v62 = vadd.f32 %v9785_v39, %v2286_v59  ;;  %v8291_v63 = vpop.f32.mrb[59].mxu0  ;;  %v3063_v3 = vadd.f32 %v9785_v39, %v3062_v60 }
 0x159   : > { %vm3936_vm8 = vcmp.ge.f32.partialorder %v3060_v54, 0.0  ;;  %v8679_v0 = vpop.f32.mrb[59].mxu1  ;;  %v4322_v2 = vmul.f32 0.01, %v3060_v54 }
 0x15a   : > { %v4514_v4 = vsel %vm3742_vm7, %v2284_v52, %v4128_v61  ;;  %vm3743_vm9 = vcmp.ge.f32.partialorder %v2287_v62, 0.0  ;;  %v4129_v5 = vmul.f32 0.01, %v2287_v62  ;;  %8397 = vmatmul.mubr.msk.bf16.gmra.mrb[164].mxu0 %vm1557_vm1, %v9105_v55  ;;  %8785 = vmatmul.mubr.msk.bf16.gmra.mrb[164].mxu1 %vm1557_vm1, %v9106_v57  ;;  %vm3937_vm10 = vcmp.ge.f32.partialorder %v3063_v3, 0.0 }
 0x15b   : > { %v7672_v6 = vpack.c.bf16 %v4514_v4, %v4514_v4  ;;  %v4708_v7 = vsel %vm3936_vm8, %v3060_v54, %v4322_v2  ;;  %v4323_v8 = vmul.f32 0.01, %v3063_v3  ;;  %8400 = vmatprep.mubr.msk.bf16.mxu0 %vm9231_vm0, %v9230_v1  ;;  %8788 = vmatprep.mubr.msk.bf16.mxu1 %vm9231_vm0, %v9230_v1 }
 0x15c   : > { %v4515_v9 = vsel %vm3743_vm9, %v2287_v62, %v4129_v5  ;;  %v7866_v10 = vpack.c.bf16 %v4708_v7, %v4708_v7 }
 0x15d   : > { %6445 = vst.msk [vmem:[%s9521_s29 + $0x70] sm:$0xf] %vm6416_vm4, %v7672_v6  ;;  %v7673_v11 = vpack.c.bf16 %v4515_v9, %v4515_v9  ;;  %v4709_v12 = vsel %vm3937_vm10, %v3063_v3, %v4323_v8  ;;  %v2291_v13 = vpop.f32.mrb[60].mxu0  ;;  %v3067_v14 = vpop.f32.mrb[60].mxu1  ;;  %v9111_v9 = vld [vmem:[%s9287_s24 + $0x160] sm:$0xff]  }
 0x15e   : > { %6639 = vst.msk [vmem:[%s9521_s29 + $0x378] sm:$0xf] %vm6416_vm4, %v7866_v10  ;;  %v7867_v15 = vpack.c.bf16 %v4709_v12, %v4709_v12  ;;  %v2292_v16 = vadd.f32 %v9785_v39, %v2291_v13  ;;  %v8294_v17 = vpop.f32.mrb[61].mxu0  ;;  %v3068_v18 = vadd.f32 %v9785_v39, %v3067_v14  ;;  %v8682_v20 = vpop.f32.mrb[61].mxu1 }
 0x15f   : > { %6446 = vst.msk [vmem:[%s9521_s29 + $0x74] sm:$0xf] %vm6416_vm4, %v7673_v11  ;;  %v2294_v22 = vpop.f32.mrb[62].mxu0  ;;  %v3070_v23 = vpop.f32.mrb[62].mxu1  ;;  %v9112_v11 = vld [vmem:[%s9287_s24 + $0x468] sm:$0xff]  }
 0x160   : > { %6640 = vst.msk [vmem:[%s9521_s29 + $0x37c] sm:$0xf] %vm6416_vm4, %v7867_v15  ;;  %vm3744_vm11 = vcmp.ge.f32.partialorder %v2292_v16, 0.0  ;;  %v4130_v24 = vmul.f32 0.01, %v2292_v16  ;;  %v2295_v25 = vadd.f32 %v9785_v39, %v2294_v22  ;;  %v8295_v26 = vpop.f32.mrb[63].mxu0  ;;  %v3071_v29 = vadd.f32 %v9785_v39, %v3070_v23 }
 0x161   : > { %vm3938_vm12 = vcmp.ge.f32.partialorder %v3068_v18, 0.0  ;;  %v8683_v27 = vpop.f32.mrb[63].mxu1  ;;  %v4324_v28 = vmul.f32 0.01, %v3068_v18 }
 0x162   : > { %v4516_v30 = vsel %vm3744_vm11, %v2292_v16, %v4130_v24  ;;  %vm3745_vm13 = vcmp.ge.f32.partialorder %v2295_v25, 0.0  ;;  %v4131_v31 = vmul.f32 0.01, %v2295_v25  ;;  %8401 = vmatmul.mubr.msk.bf16.gmra.mrb[168].mxu0 %vm1557_vm1, %v9107_v19  ;;  %8789 = vmatmul.mubr.msk.bf16.gmra.mrb[168].mxu1 %vm1557_vm1, %v9108_v21  ;;  %vm3939_vm14 = vcmp.ge.f32.partialorder %v3071_v29, 0.0 }
 0x163   : > { %v7674_v32 = vpack.c.bf16 %v4516_v30, %v4516_v30  ;;  %v4710_v33 = vsel %vm3938_vm12, %v3068_v18, %v4324_v28  ;;  %v4325_v34 = vmul.f32 0.01, %v3071_v29  ;;  %8404 = vmatprep.mubr.msk.bf16.mxu0 %vm9231_vm0, %v9230_v1  ;;  %8792 = vmatprep.mubr.msk.bf16.mxu1 %vm9231_vm0, %v9230_v1 }
 0x164   : > { %v4517_v35 = vsel %vm3745_vm13, %v2295_v25, %v4131_v31  ;;  %v7868_v36 = vpack.c.bf16 %v4710_v33, %v4710_v33 }
 0x165   : > { %6447 = vst.msk [vmem:[%s9521_s29 + $0x78] sm:$0xf] %vm6416_vm4, %v7674_v32  ;;  %v7675_v37 = vpack.c.bf16 %v4517_v35, %v4517_v35  ;;  %v4711_v38 = vsel %vm3939_vm14, %v3071_v29, %v4325_v34  ;;  %v2299_v40 = vpop.f32.mrb[64].mxu0  ;;  %v3075_v41 = vpop.f32.mrb[64].mxu1  ;;  %v9113_v35 = vld [vmem:[%s9287_s24 + $0x168] sm:$0xff]  }
 0x166   : > { %6641 = vst.msk [vmem:[%s9521_s29 + $0x380] sm:$0xf] %vm6416_vm4, %v7868_v36  ;;  %v7869_v42 = vpack.c.bf16 %v4711_v38, %v4711_v38  ;;  %v2300_v58 = vadd.f32 %v9785_v39, %v2299_v40  ;;  %v8298_v43 = vpop.f32.mrb[65].mxu0  ;;  %v3076_v44 = vadd.f32 %v9785_v39, %v3075_v41  ;;  %v8686_v46 = vpop.f32.mrb[65].mxu1 }
 0x167   : > { %6448 = vst.msk [vmem:[%s9521_s29 + $0x7c] sm:$0xf] %vm6416_vm4, %v7675_v37  ;;  %v2302_v48 = vpop.f32.mrb[66].mxu0  ;;  %v3078_v49 = vpop.f32.mrb[66].mxu1  ;;  %v9114_v37 = vld [vmem:[%s9287_s24 + $0x470] sm:$0xff]  }
 0x168   : > { %6642 = vst.msk [vmem:[%s9521_s29 + $0x384] sm:$0xf] %vm6416_vm4, %v7869_v42  ;;  %vm3746_vm15 = vcmp.ge.f32.partialorder %v2300_v58, 0.0  ;;  %v4132_v50 = vmul.f32 0.01, %v2300_v58  ;;  %v2303_v51 = vadd.f32 %v9785_v39, %v2302_v48  ;;  %v8299_v52 = vpop.f32.mrb[67].mxu0  ;;  %v3079_v55 = vadd.f32 %v9785_v39, %v3078_v49 }
 0x169   : > { %vm3940_vm2 = vcmp.ge.f32.partialorder %v3076_v44, 0.0  ;;  %v8687_v53 = vpop.f32.mrb[67].mxu1  ;;  %v4326_v54 = vmul.f32 0.01, %v3076_v44 }
 0x16a   : > { %v4518_v56 = vsel %vm3746_vm15, %v2300_v58, %v4132_v50  ;;  %vm3747_vm3 = vcmp.ge.f32.partialorder %v2303_v51, 0.0  ;;  %v4133_v57 = vmul.f32 0.01, %v2303_v51  ;;  %8405 = vmatmul.mubr.msk.bf16.gmra.mrb[172].mxu0 %vm1557_vm1, %v9109_v45  ;;  %8793 = vmatmul.mubr.msk.bf16.gmra.mrb[172].mxu1 %vm1557_vm1, %v9110_v47  ;;  %vm3941_vm5 = vcmp.ge.f32.partialorder %v3079_v55, 0.0 }
 0x16b   : > { %v7676_v59 = vpack.c.bf16 %v4518_v56, %v4518_v56  ;;  %v4712_v60 = vsel %vm3940_vm2, %v3076_v44, %v4326_v54  ;;  %v4327_v61 = vmul.f32 0.01, %v3079_v55  ;;  %8408 = vmatprep.mubr.msk.bf16.mxu0 %vm9231_vm0, %v9230_v1  ;;  %8796 = vmatprep.mubr.msk.bf16.mxu1 %vm9231_vm0, %v9230_v1 }
 0x16c   : > { %v4519_v62 = vsel %vm3747_vm3, %v2303_v51, %v4133_v57  ;;  %v7870_v63 = vpack.c.bf16 %v4712_v60, %v4712_v60 }
 0x16d   : > { %6449 = vst.msk [vmem:[%s9521_s29 + $0x80] sm:$0xf] %vm6416_vm4, %v7676_v59  ;;  %v7677_v0 = vpack.c.bf16 %v4519_v62, %v4519_v62  ;;  %v4713_v2 = vsel %vm3941_vm5, %v3079_v55, %v4327_v61  ;;  %v2307_v3 = vpop.f32.mrb[68].mxu0  ;;  %v3083_v4 = vpop.f32.mrb[68].mxu1  ;;  %v9115_v62 = vld [vmem:[%s9287_s24 + $0x170] sm:$0xff]  }
 0x16e   : > { %6643 = vst.msk [vmem:[%s9521_s29 + $0x388] sm:$0xf] %vm6416_vm4, %v7870_v63  ;;  %v7871_v5 = vpack.c.bf16 %v4713_v2, %v4713_v2  ;;  %v2308_v6 = vadd.f32 %v9785_v39, %v2307_v3  ;;  %v8302_v7 = vpop.f32.mrb[69].mxu0  ;;  %v3084_v8 = vadd.f32 %v9785_v39, %v3083_v4  ;;  %v8690_v10 = vpop.f32.mrb[69].mxu1 }
 0x16f   : > { %6450 = vst.msk [vmem:[%s9521_s29 + $0x84] sm:$0xf] %vm6416_vm4, %v7677_v0  ;;  %v2310_v12 = vpop.f32.mrb[70].mxu0  ;;  %v3086_v13 = vpop.f32.mrb[70].mxu1  ;;  %v9116_v0 = vld [vmem:[%s9287_s24 + $0x478] sm:$0xff]  }
 0x170   : > { %6644 = vst.msk [vmem:[%s9521_s29 + $0x38c] sm:$0xf] %vm6416_vm4, %v7871_v5  ;;  %vm3748_vm6 = vcmp.ge.f32.partialorder %v2308_v6, 0.0  ;;  %v4134_v14 = vmul.f32 0.01, %v2308_v6  ;;  %v2311_v15 = vadd.f32 %v9785_v39, %v2310_v12  ;;  %v8303_v16 = vpop.f32.mrb[71].mxu0  ;;  %v3087_v19 = vadd.f32 %v9785_v39, %v3086_v13 }
 0x171   : > { %vm3942_vm7 = vcmp.ge.f32.partialorder %v3084_v8, 0.0  ;;  %v8691_v17 = vpop.f32.mrb[71].mxu1  ;;  %v4328_v18 = vmul.f32 0.01, %v3084_v8 }
 0x172   : > { %v4520_v20 = vsel %vm3748_vm6, %v2308_v6, %v4134_v14  ;;  %vm3749_vm8 = vcmp.ge.f32.partialorder %v2311_v15, 0.0  ;;  %v4135_v21 = vmul.f32 0.01, %v2311_v15  ;;  %8409 = vmatmul.mubr.msk.bf16.gmra.mrb[176].mxu0 %vm1557_vm1, %v9111_v9  ;;  %8797 = vmatmul.mubr.msk.bf16.gmra.mrb[176].mxu1 %vm1557_vm1, %v9112_v11  ;;  %vm3943_vm9 = vcmp.ge.f32.partialorder %v3087_v19, 0.0 }
 0x173   : > { %v7678_v22 = vpack.c.bf16 %v4520_v20, %v4520_v20  ;;  %v4714_v23 = vsel %vm3942_vm7, %v3084_v8, %v4328_v18  ;;  %v4329_v24 = vmul.f32 0.01, %v3087_v19  ;;  %8412 = vmatprep.mubr.msk.bf16.mxu0 %vm9231_vm0, %v9230_v1  ;;  %8800 = vmatprep.mubr.msk.bf16.mxu1 %vm9231_vm0, %v9230_v1 }
 0x174   : > { %v4521_v25 = vsel %vm3749_vm8, %v2311_v15, %v4135_v21  ;;  %v7872_v26 = vpack.c.bf16 %v4714_v23, %v4714_v23 }
 0x175   : > { %6451 = vst.msk [vmem:[%s9521_s29 + $0x88] sm:$0xf] %vm6416_vm4, %v7678_v22  ;;  %v7679_v27 = vpack.c.bf16 %v4521_v25, %v4521_v25  ;;  %v4715_v28 = vsel %vm3943_vm9, %v3087_v19, %v4329_v24  ;;  %v2315_v29 = vpop.f32.mrb[72].mxu0  ;;  %v3091_v30 = vpop.f32.mrb[72].mxu1  ;;  %v9117_v25 = vld [vmem:[%s9287_s24 + $0x178] sm:$0xff]  }
 0x176   : > { %6645 = vst.msk [vmem:[%s9521_s29 + $0x390] sm:$0xf] %vm6416_vm4, %v7872_v26  ;;  %v7873_v31 = vpack.c.bf16 %v4715_v28, %v4715_v28  ;;  %v2316_v32 = vadd.f32 %v9785_v39, %v2315_v29  ;;  %v8306_v33 = vpop.f32.mrb[73].mxu0  ;;  %v3092_v34 = vadd.f32 %v9785_v39, %v3091_v30  ;;  %v8694_v36 = vpop.f32.mrb[73].mxu1 }
 0x177   : > { %6452 = vst.msk [vmem:[%s9521_s29 + $0x8c] sm:$0xf] %vm6416_vm4, %v7679_v27  ;;  %v2318_v38 = vpop.f32.mrb[74].mxu0  ;;  %v3094_v40 = vpop.f32.mrb[74].mxu1  ;;  %v9118_v27 = vld [vmem:[%s9287_s24 + $0x480] sm:$0xff]  }
 0x178   : > { %6646 = vst.msk [vmem:[%s9521_s29 + $0x394] sm:$0xf] %vm6416_vm4, %v7873_v31  ;;  %vm3750_vm10 = vcmp.ge.f32.partialorder %v2316_v32, 0.0  ;;  %v4136_v41 = vmul.f32 0.01, %v2316_v32  ;;  %v2319_v42 = vadd.f32 %v9785_v39, %v2318_v38  ;;  %v8307_v58 = vpop.f32.mrb[75].mxu0  ;;  %v3095_v45 = vadd.f32 %v9785_v39, %v3094_v40 }
 0x179   : > { %vm3944_vm11 = vcmp.ge.f32.partialorder %v3092_v34, 0.0  ;;  %v8695_v43 = vpop.f32.mrb[75].mxu1  ;;  %v4330_v44 = vmul.f32 0.01, %v3092_v34 }
 0x17a   : > { %v4522_v46 = vsel %vm3750_vm10, %v2316_v32, %v4136_v41  ;;  %vm3751_vm12 = vcmp.ge.f32.partialorder %v2319_v42, 0.0  ;;  %v4137_v47 = vmul.f32 0.01, %v2319_v42  ;;  %8413 = vmatmul.mubr.msk.bf16.gmra.mrb[180].mxu0 %vm1557_vm1, %v9113_v35  ;;  %8801 = vmatmul.mubr.msk.bf16.gmra.mrb[180].mxu1 %vm1557_vm1, %v9114_v37  ;;  %vm3945_vm13 = vcmp.ge.f32.partialorder %v3095_v45, 0.0 }
 0x17b   : > { %v7680_v48 = vpack.c.bf16 %v4522_v46, %v4522_v46  ;;  %v4716_v49 = vsel %vm3944_vm11, %v3092_v34, %v4330_v44  ;;  %v4331_v50 = vmul.f32 0.01, %v3095_v45  ;;  %8416 = vmatprep.mubr.msk.bf16.mxu0 %vm9231_vm0, %v9230_v1  ;;  %8804 = vmatprep.mubr.msk.bf16.mxu1 %vm9231_vm0, %v9230_v1 }
 0x17c   : > { %v4523_v51 = vsel %vm3751_vm12, %v2319_v42, %v4137_v47  ;;  %v7874_v52 = vpack.c.bf16 %v4716_v49, %v4716_v49 }
 0x17d   : > { %6453 = vst.msk [vmem:[%s9521_s29 + $0x90] sm:$0xf] %vm6416_vm4, %v7680_v48  ;;  %v7681_v53 = vpack.c.bf16 %v4523_v51, %v4523_v51  ;;  %v4717_v54 = vsel %vm3945_vm13, %v3095_v45, %v4331_v50  ;;  %v2323_v55 = vpop.f32.mrb[76].mxu0  ;;  %v3099_v56 = vpop.f32.mrb[76].mxu1  ;;  %v9119_v51 = vld [vmem:[%s9287_s24 + $0x180] sm:$0xff]  }
 0x17e   : > { %6647 = vst.msk [vmem:[%s9521_s29 + $0x398] sm:$0xf] %vm6416_vm4, %v7874_v52  ;;  %v7875_v57 = vpack.c.bf16 %v4717_v54, %v4717_v54  ;;  %v2324_v59 = vadd.f32 %v9785_v39, %v2323_v55  ;;  %v8310_v60 = vpop.f32.mrb[77].mxu0  ;;  %v3100_v61 = vadd.f32 %v9785_v39, %v3099_v56  ;;  %v8698_v63 = vpop.f32.mrb[77].mxu1 }
 0x17f   : > { %6454 = vst.msk [vmem:[%s9521_s29 + $0x94] sm:$0xf] %vm6416_vm4, %v7681_v53  ;;  %v2326_v2 = vpop.f32.mrb[78].mxu0  ;;  %v3102_v3 = vpop.f32.mrb[78].mxu1  ;;  %v9120_v53 = vld [vmem:[%s9287_s24 + $0x488] sm:$0xff]  }
 0x180   : > { %6648 = vst.msk [vmem:[%s9521_s29 + $0x39c] sm:$0xf] %vm6416_vm4, %v7875_v57  ;;  %vm3752_vm14 = vcmp.ge.f32.partialorder %v2324_v59, 0.0  ;;  %v4138_v4 = vmul.f32 0.01, %v2324_v59  ;;  %v2327_v5 = vadd.f32 %v9785_v39, %v2326_v2  ;;  %v8311_v6 = vpop.f32.mrb[79].mxu0  ;;  %v3103_v9 = vadd.f32 %v9785_v39, %v3102_v3 }
 0x181   : > { %vm3946_vm15 = vcmp.ge.f32.partialorder %v3100_v61, 0.0  ;;  %v8699_v7 = vpop.f32.mrb[79].mxu1  ;;  %v4332_v8 = vmul.f32 0.01, %v3100_v61 }
 0x182   : > { %v4524_v10 = vsel %vm3752_vm14, %v2324_v59, %v4138_v4  ;;  %vm3753_vm2 = vcmp.ge.f32.partialorder %v2327_v5, 0.0  ;;  %v4139_v11 = vmul.f32 0.01, %v2327_v5  ;;  %8417 = vmatmul.mubr.msk.bf16.gmra.mrb[184].mxu0 %vm1557_vm1, %v9115_v62  ;;  %8805 = vmatmul.mubr.msk.bf16.gmra.mrb[184].mxu1 %vm1557_vm1, %v9116_v0  ;;  %vm3947_vm3 = vcmp.ge.f32.partialorder %v3103_v9, 0.0 }
 0x183   : > { %v7682_v12 = vpack.c.bf16 %v4524_v10, %v4524_v10  ;;  %v4718_v13 = vsel %vm3946_vm15, %v3100_v61, %v4332_v8  ;;  %v4333_v14 = vmul.f32 0.01, %v3103_v9  ;;  %8420 = vmatprep.mubr.msk.bf16.mxu0 %vm9231_vm0, %v9230_v1  ;;  %8808 = vmatprep.mubr.msk.bf16.mxu1 %vm9231_vm0, %v9230_v1 }
 0x184   : > { %v4525_v15 = vsel %vm3753_vm2, %v2327_v5, %v4139_v11  ;;  %v7876_v16 = vpack.c.bf16 %v4718_v13, %v4718_v13 }
 0x185   : > { %6455 = vst.msk [vmem:[%s9521_s29 + $0x98] sm:$0xf] %vm6416_vm4, %v7682_v12  ;;  %v7683_v17 = vpack.c.bf16 %v4525_v15, %v4525_v15  ;;  %v4719_v18 = vsel %vm3947_vm3, %v3103_v9, %v4333_v14  ;;  %v2331_v19 = vpop.f32.mrb[80].mxu0  ;;  %v3107_v20 = vpop.f32.mrb[80].mxu1  ;;  %v9121_v15 = vld [vmem:[%s9287_s24 + $0x188] sm:$0xff]  }
 0x186   : > { %6649 = vst.msk [vmem:[%s9521_s29 + $0x3a0] sm:$0xf] %vm6416_vm4, %v7876_v16  ;;  %v7877_v21 = vpack.c.bf16 %v4719_v18, %v4719_v18  ;;  %v2332_v22 = vadd.f32 %v9785_v39, %v2331_v19  ;;  %v8314_v23 = vpop.f32.mrb[81].mxu0  ;;  %v3108_v24 = vadd.f32 %v9785_v39, %v3107_v20  ;;  %v8702_v26 = vpop.f32.mrb[81].mxu1 }
 0x187   : > { %6456 = vst.msk [vmem:[%s9521_s29 + $0x9c] sm:$0xf] %vm6416_vm4, %v7683_v17  ;;  %v2334_v28 = vpop.f32.mrb[82].mxu0  ;;  %v3110_v29 = vpop.f32.mrb[82].mxu1  ;;  %v9122_v17 = vld [vmem:[%s9287_s24 + $0x490] sm:$0xff]  }
 0x188   : > { %6650 = vst.msk [vmem:[%s9521_s29 + $0x3a4] sm:$0xf] %vm6416_vm4, %v7877_v21  ;;  %vm3754_vm5 = vcmp.ge.f32.partialorder %v2332_v22, 0.0  ;;  %v4140_v30 = vmul.f32 0.01, %v2332_v22  ;;  %v2335_v31 = vadd.f32 %v9785_v39, %v2334_v28  ;;  %v8315_v32 = vpop.f32.mrb[83].mxu0  ;;  %v3111_v35 = vadd.f32 %v9785_v39, %v3110_v29 }
 0x189   : > { %vm3948_vm6 = vcmp.ge.f32.partialorder %v3108_v24, 0.0  ;;  %v8703_v33 = vpop.f32.mrb[83].mxu1  ;;  %v4334_v34 = vmul.f32 0.01, %v3108_v24 }
 0x18a   : > { %v4526_v36 = vsel %vm3754_vm5, %v2332_v22, %v4140_v30  ;;  %vm3755_vm7 = vcmp.ge.f32.partialorder %v2335_v31, 0.0  ;;  %v4141_v37 = vmul.f32 0.01, %v2335_v31  ;;  %8421 = vmatmul.mubr.msk.bf16.gmra.mrb[188].mxu0 %vm1557_vm1, %v9117_v25  ;;  %8809 = vmatmul.mubr.msk.bf16.gmra.mrb[188].mxu1 %vm1557_vm1, %v9118_v27  ;;  %vm3949_vm8 = vcmp.ge.f32.partialorder %v3111_v35, 0.0 }
 0x18b   : > { %v7684_v38 = vpack.c.bf16 %v4526_v36, %v4526_v36  ;;  %v4720_v40 = vsel %vm3948_vm6, %v3108_v24, %v4334_v34  ;;  %v4335_v41 = vmul.f32 0.01, %v3111_v35  ;;  %8424 = vmatprep.mubr.msk.bf16.mxu0 %vm9231_vm0, %v9230_v1  ;;  %8812 = vmatprep.mubr.msk.bf16.mxu1 %vm9231_vm0, %v9230_v1 }
 0x18c   : > { %v4527_v42 = vsel %vm3755_vm7, %v2335_v31, %v4141_v37  ;;  %v7878_v58 = vpack.c.bf16 %v4720_v40, %v4720_v40 }
 0x18d   : > { %6457 = vst.msk [vmem:[%s9521_s29 + $0xa0] sm:$0xf] %vm6416_vm4, %v7684_v38  ;;  %v7685_v43 = vpack.c.bf16 %v4527_v42, %v4527_v42  ;;  %v4721_v44 = vsel %vm3949_vm8, %v3111_v35, %v4335_v41  ;;  %v2339_v45 = vpop.f32.mrb[84].mxu0  ;;  %v3115_v46 = vpop.f32.mrb[84].mxu1  ;;  %v9123_v42 = vld [vmem:[%s9287_s24 + $0x190] sm:$0xff]  }
 0x18e   : > { %6651 = vst.msk [vmem:[%s9521_s29 + $0x3a8] sm:$0xf] %vm6416_vm4, %v7878_v58  ;;  %v7879_v47 = vpack.c.bf16 %v4721_v44, %v4721_v44  ;;  %v2340_v48 = vadd.f32 %v9785_v39, %v2339_v45  ;;  %v8318_v49 = vpop.f32.mrb[85].mxu0  ;;  %v3116_v50 = vadd.f32 %v9785_v39, %v3115_v46  ;;  %v8706_v52 = vpop.f32.mrb[85].mxu1 }
 0x18f   : > { %6458 = vst.msk [vmem:[%s9521_s29 + $0xa4] sm:$0xf] %vm6416_vm4, %v7685_v43  ;;  %v2342_v54 = vpop.f32.mrb[86].mxu0  ;;  %v3118_v55 = vpop.f32.mrb[86].mxu1  ;;  %v9124_v43 = vld [vmem:[%s9287_s24 + $0x498] sm:$0xff]  }
 0x190   : > { %6652 = vst.msk [vmem:[%s9521_s29 + $0x3ac] sm:$0xf] %vm6416_vm4, %v7879_v47  ;;  %vm3756_vm9 = vcmp.ge.f32.partialorder %v2340_v48, 0.0  ;;  %v4142_v56 = vmul.f32 0.01, %v2340_v48  ;;  %v2343_v57 = vadd.f32 %v9785_v39, %v2342_v54  ;;  %v8319_v59 = vpop.f32.mrb[87].mxu0  ;;  %v3119_v62 = vadd.f32 %v9785_v39, %v3118_v55 }
 0x191   : > { %vm3950_vm10 = vcmp.ge.f32.partialorder %v3116_v50, 0.0  ;;  %v8707_v60 = vpop.f32.mrb[87].mxu1  ;;  %v4336_v61 = vmul.f32 0.01, %v3116_v50 }
 0x192   : > { %v4528_v63 = vsel %vm3756_vm9, %v2340_v48, %v4142_v56  ;;  %vm3757_vm11 = vcmp.ge.f32.partialorder %v2343_v57, 0.0  ;;  %v4143_v0 = vmul.f32 0.01, %v2343_v57  ;;  %8425 = vmatmul.mubr.msk.bf16.gmra.mrb[192].mxu0 %vm1557_vm1, %v9119_v51  ;;  %8813 = vmatmul.mubr.msk.bf16.gmra.mrb[192].mxu1 %vm1557_vm1, %v9120_v53  ;;  %vm3951_vm12 = vcmp.ge.f32.partialorder %v3119_v62, 0.0 }
 0x193   : > { %v7686_v2 = vpack.c.bf16 %v4528_v63, %v4528_v63  ;;  %v4722_v3 = vsel %vm3950_vm10, %v3116_v50, %v4336_v61  ;;  %v4337_v4 = vmul.f32 0.01, %v3119_v62  ;;  %8428 = vmatprep.mubr.msk.bf16.mxu0 %vm9231_vm0, %v9230_v1  ;;  %8816 = vmatprep.mubr.msk.bf16.mxu1 %vm9231_vm0, %v9230_v1 }
 0x194   : > { %v4529_v5 = vsel %vm3757_vm11, %v2343_v57, %v4143_v0  ;;  %v7880_v6 = vpack.c.bf16 %v4722_v3, %v4722_v3 }
 0x195   : > { %6459 = vst.msk [vmem:[%s9521_s29 + $0xa8] sm:$0xf] %vm6416_vm4, %v7686_v2  ;;  %v7687_v7 = vpack.c.bf16 %v4529_v5, %v4529_v5  ;;  %v4723_v8 = vsel %vm3951_vm12, %v3119_v62, %v4337_v4  ;;  %v2347_v9 = vpop.f32.mrb[88].mxu0  ;;  %v3123_v10 = vpop.f32.mrb[88].mxu1  ;;  %v9125_v5 = vld [vmem:[%s9287_s24 + $0x198] sm:$0xff]  }
 0x196   : > { %6653 = vst.msk [vmem:[%s9521_s29 + $0x3b0] sm:$0xf] %vm6416_vm4, %v7880_v6  ;;  %v7881_v11 = vpack.c.bf16 %v4723_v8, %v4723_v8  ;;  %v2348_v12 = vadd.f32 %v9785_v39, %v2347_v9  ;;  %v8322_v13 = vpop.f32.mrb[89].mxu0  ;;  %v3124_v14 = vadd.f32 %v9785_v39, %v3123_v10  ;;  %v8710_v16 = vpop.f32.mrb[89].mxu1 }
 0x197   : > { %6460 = vst.msk [vmem:[%s9521_s29 + $0xac] sm:$0xf] %vm6416_vm4, %v7687_v7  ;;  %v2350_v18 = vpop.f32.mrb[90].mxu0  ;;  %v3126_v19 = vpop.f32.mrb[90].mxu1  ;;  %v9126_v7 = vld [vmem:[%s9287_s24 + $0x4a0] sm:$0xff]  }
 0x198   : > { %6654 = vst.msk [vmem:[%s9521_s29 + $0x3b4] sm:$0xf] %vm6416_vm4, %v7881_v11  ;;  %vm3758_vm13 = vcmp.ge.f32.partialorder %v2348_v12, 0.0  ;;  %v4144_v20 = vmul.f32 0.01, %v2348_v12  ;;  %v2351_v21 = vadd.f32 %v9785_v39, %v2350_v18  ;;  %v8323_v22 = vpop.f32.mrb[91].mxu0  ;;  %v3127_v25 = vadd.f32 %v9785_v39, %v3126_v19 }
 0x199   : > { %vm3952_vm14 = vcmp.ge.f32.partialorder %v3124_v14, 0.0  ;;  %v8711_v23 = vpop.f32.mrb[91].mxu1  ;;  %v4338_v24 = vmul.f32 0.01, %v3124_v14 }
 0x19a   : > { %v4530_v26 = vsel %vm3758_vm13, %v2348_v12, %v4144_v20  ;;  %vm3759_vm15 = vcmp.ge.f32.partialorder %v2351_v21, 0.0  ;;  %v4145_v27 = vmul.f32 0.01, %v2351_v21  ;;  %8429 = vmatmul.mubr.msk.bf16.gmra.mrb[196].mxu0 %vm1557_vm1, %v9121_v15  ;;  %8817 = vmatmul.mubr.msk.bf16.gmra.mrb[196].mxu1 %vm1557_vm1, %v9122_v17  ;;  %vm3953_vm2 = vcmp.ge.f32.partialorder %v3127_v25, 0.0 }
 0x19b   : > { %v7688_v28 = vpack.c.bf16 %v4530_v26, %v4530_v26  ;;  %v4724_v29 = vsel %vm3952_vm14, %v3124_v14, %v4338_v24  ;;  %v4339_v30 = vmul.f32 0.01, %v3127_v25  ;;  %8432 = vmatprep.mubr.msk.bf16.mxu0 %vm9231_vm0, %v9230_v1  ;;  %8820 = vmatprep.mubr.msk.bf16.mxu1 %vm9231_vm0, %v9230_v1 }
 0x19c   : > { %v4531_v31 = vsel %vm3759_vm15, %v2351_v21, %v4145_v27  ;;  %v7882_v32 = vpack.c.bf16 %v4724_v29, %v4724_v29 }
 0x19d   : > { %6461 = vst.msk [vmem:[%s9521_s29 + $0xb0] sm:$0xf] %vm6416_vm4, %v7688_v28  ;;  %v7689_v33 = vpack.c.bf16 %v4531_v31, %v4531_v31  ;;  %v4725_v34 = vsel %vm3953_vm2, %v3127_v25, %v4339_v30  ;;  %v2355_v35 = vpop.f32.mrb[92].mxu0  ;;  %v3131_v36 = vpop.f32.mrb[92].mxu1  ;;  %v9127_v31 = vld [vmem:[%s9287_s24 + $0x1a0] sm:$0xff]  }
 0x19e   : > { %6655 = vst.msk [vmem:[%s9521_s29 + $0x3b8] sm:$0xf] %vm6416_vm4, %v7882_v32  ;;  %v7883_v37 = vpack.c.bf16 %v4725_v34, %v4725_v34  ;;  %v2356_v38 = vadd.f32 %v9785_v39, %v2355_v35  ;;  %v8326_v40 = vpop.f32.mrb[93].mxu0  ;;  %v3132_v41 = vadd.f32 %v9785_v39, %v3131_v36  ;;  %v8714_v58 = vpop.f32.mrb[93].mxu1 }
 0x19f   : > { %6462 = vst.msk [vmem:[%s9521_s29 + $0xb4] sm:$0xf] %vm6416_vm4, %v7689_v33  ;;  %v2358_v44 = vpop.f32.mrb[94].mxu0  ;;  %v3134_v45 = vpop.f32.mrb[94].mxu1  ;;  %v9128_v33 = vld [vmem:[%s9287_s24 + $0x4a8] sm:$0xff]  }
 0x1a0   : > { %6656 = vst.msk [vmem:[%s9521_s29 + $0x3bc] sm:$0xf] %vm6416_vm4, %v7883_v37  ;;  %vm3760_vm3 = vcmp.ge.f32.partialorder %v2356_v38, 0.0  ;;  %v4146_v46 = vmul.f32 0.01, %v2356_v38  ;;  %v2359_v47 = vadd.f32 %v9785_v39, %v2358_v44  ;;  %v8327_v48 = vpop.f32.mrb[95].mxu0  ;;  %v3135_v51 = vadd.f32 %v9785_v39, %v3134_v45 }
 0x1a1   : > { %vm3954_vm5 = vcmp.ge.f32.partialorder %v3132_v41, 0.0  ;;  %v8715_v49 = vpop.f32.mrb[95].mxu1  ;;  %v4340_v50 = vmul.f32 0.01, %v3132_v41 }
 0x1a2   : > { %v4532_v52 = vsel %vm3760_vm3, %v2356_v38, %v4146_v46  ;;  %vm3761_vm6 = vcmp.ge.f32.partialorder %v2359_v47, 0.0  ;;  %v4147_v53 = vmul.f32 0.01, %v2359_v47  ;;  %8433 = vmatmul.mubr.msk.bf16.gmra.mrb[200].mxu0 %vm1557_vm1, %v9123_v42  ;;  %8821 = vmatmul.mubr.msk.bf16.gmra.mrb[200].mxu1 %vm1557_vm1, %v9124_v43  ;;  %vm3955_vm7 = vcmp.ge.f32.partialorder %v3135_v51, 0.0 }
 0x1a3   : > { %v7690_v54 = vpack.c.bf16 %v4532_v52, %v4532_v52  ;;  %v4726_v55 = vsel %vm3954_vm5, %v3132_v41, %v4340_v50  ;;  %v4341_v56 = vmul.f32 0.01, %v3135_v51  ;;  %8436 = vmatprep.mubr.msk.bf16.mxu0 %vm9231_vm0, %v9230_v1  ;;  %8824 = vmatprep.mubr.msk.bf16.mxu1 %vm9231_vm0, %v9230_v1 }
 0x1a4   : > { %v4533_v57 = vsel %vm3761_vm6, %v2359_v47, %v4147_v53  ;;  %v7884_v59 = vpack.c.bf16 %v4726_v55, %v4726_v55 }
 0x1a5   : > { %6463 = vst.msk [vmem:[%s9521_s29 + $0xb8] sm:$0xf] %vm6416_vm4, %v7690_v54  ;;  %v7691_v60 = vpack.c.bf16 %v4533_v57, %v4533_v57  ;;  %v4727_v61 = vsel %vm3955_vm7, %v3135_v51, %v4341_v56  ;;  %v2363_v62 = vpop.f32.mrb[96].mxu0  ;;  %v3139_v63 = vpop.f32.mrb[96].mxu1  ;;  %v9129_v57 = vld [vmem:[%s9287_s24 + $0x1a8] sm:$0xff]  }
 0x1a6   : > { %6657 = vst.msk [vmem:[%s9521_s29 + $0x3c0] sm:$0xf] %vm6416_vm4, %v7884_v59  ;;  %v7885_v0 = vpack.c.bf16 %v4727_v61, %v4727_v61  ;;  %v2364_v2 = vadd.f32 %v9785_v39, %v2363_v62  ;;  %v8330_v3 = vpop.f32.mrb[97].mxu0  ;;  %v3140_v4 = vadd.f32 %v9785_v39, %v3139_v63  ;;  %v8718_v6 = vpop.f32.mrb[97].mxu1 }
 0x1a7   : > { %6464 = vst.msk [vmem:[%s9521_s29 + $0xbc] sm:$0xf] %vm6416_vm4, %v7691_v60  ;;  %v2366_v8 = vpop.f32.mrb[98].mxu0  ;;  %v3142_v9 = vpop.f32.mrb[98].mxu1  ;;  %v9130_v60 = vld [vmem:[%s9287_s24 + $0x4b0] sm:$0xff]  }
 0x1a8   : > { %6658 = vst.msk [vmem:[%s9521_s29 + $0x3c4] sm:$0xf] %vm6416_vm4, %v7885_v0  ;;  %vm3762_vm8 = vcmp.ge.f32.partialorder %v2364_v2, 0.0  ;;  %v4148_v10 = vmul.f32 0.01, %v2364_v2  ;;  %v2367_v11 = vadd.f32 %v9785_v39, %v2366_v8  ;;  %v8331_v12 = vpop.f32.mrb[99].mxu0  ;;  %v3143_v15 = vadd.f32 %v9785_v39, %v3142_v9 }
 0x1a9   : > { %vm3956_vm9 = vcmp.ge.f32.partialorder %v3140_v4, 0.0  ;;  %v8719_v13 = vpop.f32.mrb[99].mxu1  ;;  %v4342_v14 = vmul.f32 0.01, %v3140_v4 }
 0x1aa   : > { %v4534_v16 = vsel %vm3762_vm8, %v2364_v2, %v4148_v10  ;;  %vm3763_vm10 = vcmp.ge.f32.partialorder %v2367_v11, 0.0  ;;  %v4149_v17 = vmul.f32 0.01, %v2367_v11  ;;  %8437 = vmatmul.mubr.msk.bf16.gmra.mrb[204].mxu0 %vm1557_vm1, %v9125_v5  ;;  %8825 = vmatmul.mubr.msk.bf16.gmra.mrb[204].mxu1 %vm1557_vm1, %v9126_v7  ;;  %vm3957_vm11 = vcmp.ge.f32.partialorder %v3143_v15, 0.0 }
 0x1ab   : > { %v7692_v18 = vpack.c.bf16 %v4534_v16, %v4534_v16  ;;  %v4728_v19 = vsel %vm3956_vm9, %v3140_v4, %v4342_v14  ;;  %v4343_v20 = vmul.f32 0.01, %v3143_v15  ;;  %8440 = vmatprep.mubr.msk.bf16.mxu0 %vm9231_vm0, %v9230_v1  ;;  %8828 = vmatprep.mubr.msk.bf16.mxu1 %vm9231_vm0, %v9230_v1 }
 0x1ac   : > { %v4535_v21 = vsel %vm3763_vm10, %v2367_v11, %v4149_v17  ;;  %v7886_v22 = vpack.c.bf16 %v4728_v19, %v4728_v19  ;;  %v10061_v17 = vld [vmem:[%s11262_s2] ss:$0 sm:$0xff] }
 0x1ad   : > { %6465 = vst.msk [vmem:[%s9521_s29 + $0xc0] sm:$0xf] %vm6416_vm4, %v7692_v18  ;;  %v7693_v23 = vpack.c.bf16 %v4535_v21, %v4535_v21  ;;  %v4729_v24 = vsel %vm3957_vm11, %v3143_v15, %v4343_v20  ;;  %v2371_v25 = vpop.f32.mrb[100].mxu0  ;;  %v3147_v26 = vpop.f32.mrb[100].mxu1  ;;  %v9131_v21 = vld [vmem:[%s9287_s24 + $0x1b0] sm:$0xff]  }
 0x1ae   : > { %6659 = vst.msk [vmem:[%s9521_s29 + $0x3c8] sm:$0xf] %vm6416_vm4, %v7886_v22  ;;  %v7887_v27 = vpack.c.bf16 %v4729_v24, %v4729_v24  ;;  %v2372_v28 = vadd.f32 %v9785_v39, %v2371_v25  ;;  %v8334_v29 = vpop.f32.mrb[101].mxu0  ;;  %v3148_v30 = vadd.f32 %v9785_v39, %v3147_v26  ;;  %v8722_v32 = vpop.f32.mrb[101].mxu1 }
 0x1af   : > { %6466 = vst.msk [vmem:[%s9521_s29 + $0xc4] sm:$0xf] %vm6416_vm4, %v7693_v23  ;;  %v2374_v34 = vpop.f32.mrb[102].mxu0  ;;  %v3150_v35 = vpop.f32.mrb[102].mxu1  ;;  %v9132_v23 = vld [vmem:[%s9287_s24 + $0x4b8] sm:$0xff]  }
 0x1b0   : > { %6660 = vst.msk [vmem:[%s9521_s29 + $0x3cc] sm:$0xf] %vm6416_vm4, %v7887_v27  ;;  %vm3764_vm12 = vcmp.ge.f32.partialorder %v2372_v28, 0.0  ;;  %v4150_v36 = vmul.f32 0.01, %v2372_v28  ;;  %v2375_v37 = vadd.f32 %v9785_v39, %v2374_v34  ;;  %v8335_v38 = vpop.f32.mrb[103].mxu0  ;;  %v3151_v42 = vadd.f32 %v9785_v39, %v3150_v35 }
 0x1b1   : > { %vm3958_vm13 = vcmp.ge.f32.partialorder %v3148_v30, 0.0  ;;  %v8723_v40 = vpop.f32.mrb[103].mxu1  ;;  %v4344_v41 = vmul.f32 0.01, %v3148_v30 }
 0x1b2   : > { %v4536_v58 = vsel %vm3764_vm12, %v2372_v28, %v4150_v36  ;;  %vm3765_vm14 = vcmp.ge.f32.partialorder %v2375_v37, 0.0  ;;  %v4151_v43 = vmul.f32 0.01, %v2375_v37  ;;  %8441 = vmatmul.mubr.msk.bf16.gmra.mrb[208].mxu0 %vm1557_vm1, %v9127_v31  ;;  %8829 = vmatmul.mubr.msk.bf16.gmra.mrb[208].mxu1 %vm1557_vm1, %v9128_v33  ;;  %vm3959_vm15 = vcmp.ge.f32.partialorder %v3151_v42, 0.0 }
 0x1b3   : > { %v7694_v44 = vpack.c.bf16 %v4536_v58, %v4536_v58  ;;  %v4730_v45 = vsel %vm3958_vm13, %v3148_v30, %v4344_v41  ;;  %v4345_v46 = vmul.f32 0.01, %v3151_v42  ;;  %8444 = vmatprep.mubr.msk.bf16.mxu0 %vm9231_vm0, %v9230_v1  ;;  %8832 = vmatprep.mubr.msk.bf16.mxu1 %vm9231_vm0, %v9230_v1 }
 0x1b4   : > { %v4537_v47 = vsel %vm3765_vm14, %v2375_v37, %v4151_v43  ;;  %v7888_v48 = vpack.c.bf16 %v4730_v45, %v4730_v45 }
 0x1b5   : > { %6467 = vst.msk [vmem:[%s9521_s29 + $0xc8] sm:$0xf] %vm6416_vm4, %v7694_v44  ;;  %v7695_v49 = vpack.c.bf16 %v4537_v47, %v4537_v47  ;;  %v4731_v50 = vsel %vm3959_vm15, %v3151_v42, %v4345_v46  ;;  %v2379_v51 = vpop.f32.mrb[104].mxu0  ;;  %v3155_v52 = vpop.f32.mrb[104].mxu1  ;;  %v9133_v47 = vld [vmem:[%s9287_s24 + $0x1b8] sm:$0xff]  }
 0x1b6   : > { %6661 = vst.msk [vmem:[%s9521_s29 + $0x3d0] sm:$0xf] %vm6416_vm4, %v7888_v48  ;;  %v7889_v53 = vpack.c.bf16 %v4731_v50, %v4731_v50  ;;  %v2380_v54 = vadd.f32 %v9785_v39, %v2379_v51  ;;  %v8338_v55 = vpop.f32.mrb[105].mxu0  ;;  %v3156_v56 = vadd.f32 %v9785_v39, %v3155_v52  ;;  %v8726_v59 = vpop.f32.mrb[105].mxu1 }
 0x1b7   : > { %6468 = vst.msk [vmem:[%s9521_s29 + $0xcc] sm:$0xf] %vm6416_vm4, %v7695_v49  ;;  %v2382_v61 = vpop.f32.mrb[106].mxu0  ;;  %v3158_v62 = vpop.f32.mrb[106].mxu1  ;;  %v9134_v49 = vld [vmem:[%s9287_s24 + $0x4c0] sm:$0xff]  }
 0x1b8   : > { %6662 = vst.msk [vmem:[%s9521_s29 + $0x3d4] sm:$0xf] %vm6416_vm4, %v7889_v53  ;;  %vm3766_vm2 = vcmp.ge.f32.partialorder %v2380_v54, 0.0  ;;  %v4152_v63 = vmul.f32 0.01, %v2380_v54  ;;  %v2383_v0 = vadd.f32 %v9785_v39, %v2382_v61  ;;  %v8339_v2 = vpop.f32.mrb[107].mxu0  ;;  %v3159_v5 = vadd.f32 %v9785_v39, %v3158_v62 }
 0x1b9   : > { %vm3960_vm3 = vcmp.ge.f32.partialorder %v3156_v56, 0.0  ;;  %v8727_v3 = vpop.f32.mrb[107].mxu1  ;;  %v4346_v4 = vmul.f32 0.01, %v3156_v56 }
 0x1ba   : > { %v4538_v6 = vsel %vm3766_vm2, %v2380_v54, %v4152_v63  ;;  %vm3767_vm5 = vcmp.ge.f32.partialorder %v2383_v0, 0.0  ;;  %v4153_v7 = vmul.f32 0.01, %v2383_v0  ;;  %8445 = vmatmul.mubr.msk.bf16.gmra.mrb[212].mxu0 %vm1557_vm1, %v9129_v57  ;;  %8833 = vmatmul.mubr.msk.bf16.gmra.mrb[212].mxu1 %vm1557_vm1, %v9130_v60  ;;  %vm3961_vm6 = vcmp.ge.f32.partialorder %v3159_v5, 0.0 }
 0x1bb   : > { %v7696_v8 = vpack.c.bf16 %v4538_v6, %v4538_v6  ;;  %v4732_v9 = vsel %vm3960_vm3, %v3156_v56, %v4346_v4  ;;  %v4347_v10 = vmul.f32 0.01, %v3159_v5  ;;  %8448 = vmatprep.mubr.msk.bf16.mxu0 %vm9231_vm0, %v9230_v1  ;;  %8836 = vmatprep.mubr.msk.bf16.mxu1 %vm9231_vm0, %v9230_v1 }
 0x1bc   : > { %v4539_v39 = vsel %vm3767_vm5, %v2383_v0, %v4153_v7  ;;  %v7890_v11 = vpack.c.bf16 %v4732_v9, %v4732_v9 }
 0x1bd   : > { %6469 = vst.msk [vmem:[%s9521_s29 + $0xd0] sm:$0xf] %vm6416_vm4, %v7696_v8  ;;  %v7697_v12 = vpack.c.bf16 %v4539_v39, %v4539_v39  ;;  %v4733_v13 = vsel %vm3961_vm6, %v3159_v5, %v4347_v10  ;;  %v2387_v14 = vpop.f32.mrb[108].mxu0  ;;  %v3163_v15 = vpop.f32.mrb[108].mxu1  ;;  %v9135_v39 = vld [vmem:[%s9287_s24 + $0x1c0] sm:$0xff]  }
 0x1be   : > { %6663 = vst.msk [vmem:[%s9521_s29 + $0x3d8] sm:$0xf] %vm6416_vm4, %v7890_v11  ;;  %v7891_v16 = vpack.c.bf16 %v4733_v13, %v4733_v13  ;;  %v2388_v18 = vadd.f32 %v10061_v17, %v2387_v14  ;;  %v8342_v19 = vpop.f32.mrb[109].mxu0  ;;  %v3164_v20 = vadd.f32 %v10061_v17, %v3163_v15  ;;  %v8730_v22 = vpop.f32.mrb[109].mxu1 }
 0x1bf   : > { %6470 = vst.msk [vmem:[%s9521_s29 + $0xd4] sm:$0xf] %vm6416_vm4, %v7697_v12  ;;  %v2390_v24 = vpop.f32.mrb[110].mxu0  ;;  %v3166_v25 = vpop.f32.mrb[110].mxu1  ;;  %v9136_v12 = vld [vmem:[%s9287_s24 + $0x4c8] sm:$0xff]  }
 0x1c0   : > { %6664 = vst.msk [vmem:[%s9521_s29 + $0x3dc] sm:$0xf] %vm6416_vm4, %v7891_v16  ;;  %vm3768_vm7 = vcmp.ge.f32.partialorder %v2388_v18, 0.0  ;;  %v4154_v26 = vmul.f32 0.01, %v2388_v18  ;;  %v2391_v27 = vadd.f32 %v10061_v17, %v2390_v24  ;;  %v8343_v28 = vpop.f32.mrb[111].mxu0  ;;  %v3167_v31 = vadd.f32 %v10061_v17, %v3166_v25 }
 0x1c1   : > { %vm3962_vm8 = vcmp.ge.f32.partialorder %v3164_v20, 0.0  ;;  %v8731_v29 = vpop.f32.mrb[111].mxu1  ;;  %v4348_v30 = vmul.f32 0.01, %v3164_v20 }
 0x1c2   : > { %v4540_v32 = vsel %vm3768_vm7, %v2388_v18, %v4154_v26  ;;  %vm3769_vm9 = vcmp.ge.f32.partialorder %v2391_v27, 0.0  ;;  %v4155_v33 = vmul.f32 0.01, %v2391_v27  ;;  %8449 = vmatmul.mubr.msk.bf16.gmra.mrb[216].mxu0 %vm1557_vm1, %v9131_v21  ;;  %8837 = vmatmul.mubr.msk.bf16.gmra.mrb[216].mxu1 %vm1557_vm1, %v9132_v23  ;;  %vm3963_vm10 = vcmp.ge.f32.partialorder %v3167_v31, 0.0 }
 0x1c3   : > { %v7698_v34 = vpack.c.bf16 %v4540_v32, %v4540_v32  ;;  %v4734_v35 = vsel %vm3962_vm8, %v3164_v20, %v4348_v30  ;;  %v4349_v36 = vmul.f32 0.01, %v3167_v31  ;;  %8452 = vmatprep.mubr.msk.bf16.mxu0 %vm9231_vm0, %v9230_v1  ;;  %8840 = vmatprep.mubr.msk.bf16.mxu1 %vm9231_vm0, %v9230_v1 }
 0x1c4   : > { %v4541_v37 = vsel %vm3769_vm9, %v2391_v27, %v4155_v33  ;;  %v7892_v38 = vpack.c.bf16 %v4734_v35, %v4734_v35 }
 0x1c5   : > { %6471 = vst.msk [vmem:[%s9521_s29 + $0xd8] sm:$0xf] %vm6416_vm4, %v7698_v34  ;;  %v7699_v40 = vpack.c.bf16 %v4541_v37, %v4541_v37  ;;  %v4735_v41 = vsel %vm3963_vm10, %v3167_v31, %v4349_v36  ;;  %v2395_v42 = vpop.f32.mrb[112].mxu0  ;;  %v3171_v58 = vpop.f32.mrb[112].mxu1  ;;  %v9137_v37 = vld [vmem:[%s9287_s24 + $0x1c8] sm:$0xff]  }
 0x1c6   : > { %6665 = vst.msk [vmem:[%s9521_s29 + $0x3e0] sm:$0xf] %vm6416_vm4, %v7892_v38  ;;  %v7893_v43 = vpack.c.bf16 %v4735_v41, %v4735_v41  ;;  %v2396_v44 = vadd.f32 %v10061_v17, %v2395_v42  ;;  %v8346_v45 = vpop.f32.mrb[113].mxu0  ;;  %v3172_v46 = vadd.f32 %v10061_v17, %v3171_v58  ;;  %v8734_v48 = vpop.f32.mrb[113].mxu1 }
 0x1c7   : > { %6472 = vst.msk [vmem:[%s9521_s29 + $0xdc] sm:$0xf] %vm6416_vm4, %v7699_v40  ;;  %v2398_v50 = vpop.f32.mrb[114].mxu0  ;;  %v3174_v51 = vpop.f32.mrb[114].mxu1  ;;  %v9138_v40 = vld [vmem:[%s9287_s24 + $0x4d0] sm:$0xff]  }
 0x1c8   : > { %6666 = vst.msk [vmem:[%s9521_s29 + $0x3e4] sm:$0xf] %vm6416_vm4, %v7893_v43  ;;  %vm3770_vm11 = vcmp.ge.f32.partialorder %v2396_v44, 0.0  ;;  %v4156_v52 = vmul.f32 0.01, %v2396_v44  ;;  %v2399_v53 = vadd.f32 %v10061_v17, %v2398_v50  ;;  %v8347_v54 = vpop.f32.mrb[115].mxu0  ;;  %v3175_v57 = vadd.f32 %v10061_v17, %v3174_v51 }
 0x1c9   : > { %vm3964_vm12 = vcmp.ge.f32.partialorder %v3172_v46, 0.0  ;;  %v8735_v55 = vpop.f32.mrb[115].mxu1  ;;  %v4350_v56 = vmul.f32 0.01, %v3172_v46 }
 0x1ca   : > { %v4542_v59 = vsel %vm3770_vm11, %v2396_v44, %v4156_v52  ;;  %vm3771_vm13 = vcmp.ge.f32.partialorder %v2399_v53, 0.0  ;;  %v4157_v60 = vmul.f32 0.01, %v2399_v53  ;;  %8453 = vmatmul.mubr.msk.bf16.gmra.mrb[220].mxu0 %vm1557_vm1, %v9133_v47  ;;  %8841 = vmatmul.mubr.msk.bf16.gmra.mrb[220].mxu1 %vm1557_vm1, %v9134_v49  ;;  %vm3965_vm14 = vcmp.ge.f32.partialorder %v3175_v57, 0.0 }
 0x1cb   : > { %v7700_v61 = vpack.c.bf16 %v4542_v59, %v4542_v59  ;;  %v4736_v62 = vsel %vm3964_vm12, %v3172_v46, %v4350_v56  ;;  %v4351_v63 = vmul.f32 0.01, %v3175_v57  ;;  %8456 = vmatprep.mubr.msk.bf16.mxu0 %vm9231_vm0, %v9230_v1  ;;  %8844 = vmatprep.mubr.msk.bf16.mxu1 %vm9231_vm0, %v9230_v1 }
 0x1cc   : > { %v4543_v0 = vsel %vm3771_vm13, %v2399_v53, %v4157_v60  ;;  %v7894_v2 = vpack.c.bf16 %v4736_v62, %v4736_v62 }
 0x1cd   : > { %6473 = vst.msk [vmem:[%s9521_s29 + $0xe0] sm:$0xf] %vm6416_vm4, %v7700_v61  ;;  %v7701_v3 = vpack.c.bf16 %v4543_v0, %v4543_v0  ;;  %v4737_v4 = vsel %vm3965_vm14, %v3175_v57, %v4351_v63  ;;  %v2403_v5 = vpop.f32.mrb[116].mxu0  ;;  %v3179_v6 = vpop.f32.mrb[116].mxu1  ;;  %v9139_v0 = vld [vmem:[%s9287_s24 + $0x1d0] sm:$0xff]  }
 0x1ce   : > { %6667 = vst.msk [vmem:[%s9521_s29 + $0x3e8] sm:$0xf] %vm6416_vm4, %v7894_v2  ;;  %v7895_v7 = vpack.c.bf16 %v4737_v4, %v4737_v4  ;;  %v2404_v8 = vadd.f32 %v10061_v17, %v2403_v5  ;;  %v8350_v9 = vpop.f32.mrb[117].mxu0  ;;  %v3180_v10 = vadd.f32 %v10061_v17, %v3179_v6  ;;  %v8738_v11 = vpop.f32.mrb[117].mxu1 }
 0x1cf   : > { %6474 = vst.msk [vmem:[%s9521_s29 + $0xe4] sm:$0xf] %vm6416_vm4, %v7701_v3  ;;  %v2406_v13 = vpop.f32.mrb[118].mxu0  ;;  %v3182_v14 = vpop.f32.mrb[118].mxu1  ;;  %v9140_v3 = vld [vmem:[%s9287_s24 + $0x4d8] sm:$0xff]  }
 0x1d0   : > { %6668 = vst.msk [vmem:[%s9521_s29 + $0x3ec] sm:$0xf] %vm6416_vm4, %v7895_v7  ;;  %vm3772_vm15 = vcmp.ge.f32.partialorder %v2404_v8, 0.0  ;;  %v4158_v15 = vmul.f32 0.01, %v2404_v8  ;;  %v2407_v16 = vadd.f32 %v10061_v17, %v2406_v13  ;;  %v8351_v18 = vpop.f32.mrb[119].mxu0  ;;  %v3183_v21 = vadd.f32 %v10061_v17, %v3182_v14 }
 0x1d1   : > { %vm3966_vm2 = vcmp.ge.f32.partialorder %v3180_v10, 0.0  ;;  %v8739_v19 = vpop.f32.mrb[119].mxu1  ;;  %v4352_v20 = vmul.f32 0.01, %v3180_v10 }
 0x1d2   : > { %v4544_v22 = vsel %vm3772_vm15, %v2404_v8, %v4158_v15  ;;  %vm3773_vm3 = vcmp.ge.f32.partialorder %v2407_v16, 0.0  ;;  %v4159_v23 = vmul.f32 0.01, %v2407_v16  ;;  %8457 = vmatmul.mubr.msk.bf16.gmra.mrb[224].mxu0 %vm1557_vm1, %v9135_v39  ;;  %8845 = vmatmul.mubr.msk.bf16.gmra.mrb[224].mxu1 %vm1557_vm1, %v9136_v12  ;;  %vm3967_vm5 = vcmp.ge.f32.partialorder %v3183_v21, 0.0 }
 0x1d3   : > { %v7702_v24 = vpack.c.bf16 %v4544_v22, %v4544_v22  ;;  %v4738_v25 = vsel %vm3966_vm2, %v3180_v10, %v4352_v20  ;;  %v4353_v26 = vmul.f32 0.01, %v3183_v21  ;;  %8460 = vmatprep.mubr.msk.bf16.mxu0 %vm9231_vm0, %v9230_v1  ;;  %8848 = vmatprep.mubr.msk.bf16.mxu1 %vm9231_vm0, %v9230_v1 }
 0x1d4   : > { %v4545_v27 = vsel %vm3773_vm3, %v2407_v16, %v4159_v23  ;;  %v7896_v28 = vpack.c.bf16 %v4738_v25, %v4738_v25 }
 0x1d5   : > { %6475 = vst.msk [vmem:[%s9521_s29 + $0xe8] sm:$0xf] %vm6416_vm4, %v7702_v24  ;;  %v7703_v29 = vpack.c.bf16 %v4545_v27, %v4545_v27  ;;  %v4739_v30 = vsel %vm3967_vm5, %v3183_v21, %v4353_v26  ;;  %v2411_v31 = vpop.f32.mrb[120].mxu0  ;;  %v3187_v32 = vpop.f32.mrb[120].mxu1  ;;  %v9141_v27 = vld [vmem:[%s9287_s24 + $0x1d8] sm:$0xff]  }
 0x1d6   : > { %6669 = vst.msk [vmem:[%s9521_s29 + $0x3f0] sm:$0xf] %vm6416_vm4, %v7896_v28  ;;  %v7897_v33 = vpack.c.bf16 %v4739_v30, %v4739_v30  ;;  %v2412_v34 = vadd.f32 %v10061_v17, %v2411_v31  ;;  %v8354_v35 = vpop.f32.mrb[121].mxu0  ;;  %v3188_v36 = vadd.f32 %v10061_v17, %v3187_v32  ;;  %v8742_v38 = vpop.f32.mrb[121].mxu1 }
 0x1d7   : > { %6476 = vst.msk [vmem:[%s9521_s29 + $0xec] sm:$0xf] %vm6416_vm4, %v7703_v29  ;;  %v2414_v41 = vpop.f32.mrb[122].mxu0  ;;  %v3190_v42 = vpop.f32.mrb[122].mxu1  ;;  %v9142_v29 = vld [vmem:[%s9287_s24 + $0x4e0] sm:$0xff]  }
 0x1d8   : > { %6670 = vst.msk [vmem:[%s9521_s29 + $0x3f4] sm:$0xf] %vm6416_vm4, %v7897_v33  ;;  %vm3774_vm6 = vcmp.ge.f32.partialorder %v2412_v34, 0.0  ;;  %v4160_v58 = vmul.f32 0.01, %v2412_v34  ;;  %v2415_v43 = vadd.f32 %v10061_v17, %v2414_v41  ;;  %v8355_v44 = vpop.f32.mrb[123].mxu0  ;;  %v3191_v47 = vadd.f32 %v10061_v17, %v3190_v42 }
 0x1d9   : > { %vm3968_vm7 = vcmp.ge.f32.partialorder %v3188_v36, 0.0  ;;  %v8743_v45 = vpop.f32.mrb[123].mxu1  ;;  %v4354_v46 = vmul.f32 0.01, %v3188_v36 }
 0x1da   : > { %v4546_v48 = vsel %vm3774_vm6, %v2412_v34, %v4160_v58  ;;  %vm3775_vm8 = vcmp.ge.f32.partialorder %v2415_v43, 0.0  ;;  %v4161_v49 = vmul.f32 0.01, %v2415_v43  ;;  %8461 = vmatmul.mubr.msk.bf16.gmra.mrb[228].mxu0 %vm1557_vm1, %v9137_v37  ;;  %8849 = vmatmul.mubr.msk.bf16.gmra.mrb[228].mxu1 %vm1557_vm1, %v9138_v40  ;;  %vm3969_vm9 = vcmp.ge.f32.partialorder %v3191_v47, 0.0 }
 0x1db   : > { %v7704_v50 = vpack.c.bf16 %v4546_v48, %v4546_v48  ;;  %v4740_v51 = vsel %vm3968_vm7, %v3188_v36, %v4354_v46  ;;  %v4355_v52 = vmul.f32 0.01, %v3191_v47  ;;  %8464 = vmatprep.mubr.msk.bf16.mxu0 %vm9231_vm0, %v9230_v1  ;;  %8852 = vmatprep.mubr.msk.bf16.mxu1 %vm9231_vm0, %v9230_v1 }
 0x1dc   : > { %v4547_v53 = vsel %vm3775_vm8, %v2415_v43, %v4161_v49  ;;  %v7898_v54 = vpack.c.bf16 %v4740_v51, %v4740_v51 }
 0x1dd   : > { %6477 = vst.msk [vmem:[%s9521_s29 + $0xf0] sm:$0xf] %vm6416_vm4, %v7704_v50  ;;  %v7705_v55 = vpack.c.bf16 %v4547_v53, %v4547_v53  ;;  %v4741_v56 = vsel %vm3969_vm9, %v3191_v47, %v4355_v52  ;;  %v2419_v57 = vpop.f32.mrb[124].mxu0  ;;  %v3195_v59 = vpop.f32.mrb[124].mxu1  ;;  %v9143_v53 = vld [vmem:[%s9287_s24 + $0x1e0] sm:$0xff]  }
 0x1de   : > { %6671 = vst.msk [vmem:[%s9521_s29 + $0x3f8] sm:$0xf] %vm6416_vm4, %v7898_v54  ;;  %v7899_v60 = vpack.c.bf16 %v4741_v56, %v4741_v56  ;;  %v2420_v61 = vadd.f32 %v10061_v17, %v2419_v57  ;;  %v8358_v62 = vpop.f32.mrb[125].mxu0  ;;  %v3196_v63 = vadd.f32 %v10061_v17, %v3195_v59  ;;  %v8746_v2 = vpop.f32.mrb[125].mxu1 }
 0x1df   : > { %6478 = vst.msk [vmem:[%s9521_s29 + $0xf4] sm:$0xf] %vm6416_vm4, %v7705_v55  ;;  %v2422_v4 = vpop.f32.mrb[126].mxu0  ;;  %v3198_v5 = vpop.f32.mrb[126].mxu1  ;;  %v9144_v55 = vld [vmem:[%s9287_s24 + $0x4e8] sm:$0xff]  }
 0x1e0   : > { %6672 = vst.msk [vmem:[%s9521_s29 + $0x3fc] sm:$0xf] %vm6416_vm4, %v7899_v60  ;;  %vm3776_vm10 = vcmp.ge.f32.partialorder %v2420_v61, 0.0  ;;  %v4162_v6 = vmul.f32 0.01, %v2420_v61  ;;  %v2423_v7 = vadd.f32 %v10061_v17, %v2422_v4  ;;  %v8359_v8 = vpop.f32.mrb[127].mxu0  ;;  %v3199_v39 = vadd.f32 %v10061_v17, %v3198_v5 }
 0x1e1   : > { %vm3970_vm11 = vcmp.ge.f32.partialorder %v3196_v63, 0.0  ;;  %v8747_v9 = vpop.f32.mrb[127].mxu1  ;;  %v4356_v10 = vmul.f32 0.01, %v3196_v63 }
 0x1e2   : > { %v4548_v11 = vsel %vm3776_vm10, %v2420_v61, %v4162_v6  ;;  %vm3777_vm12 = vcmp.ge.f32.partialorder %v2423_v7, 0.0  ;;  %v4163_v12 = vmul.f32 0.01, %v2423_v7  ;;  %8465 = vmatmul.mubr.msk.bf16.gmra.mrb[232].mxu0 %vm1557_vm1, %v9139_v0  ;;  %8853 = vmatmul.mubr.msk.bf16.gmra.mrb[232].mxu1 %vm1557_vm1, %v9140_v3  ;;  %vm3971_vm13 = vcmp.ge.f32.partialorder %v3199_v39, 0.0 }
 0x1e3   : > { %v7706_v13 = vpack.c.bf16 %v4548_v11, %v4548_v11  ;;  %v4742_v14 = vsel %vm3970_vm11, %v3196_v63, %v4356_v10  ;;  %v4357_v15 = vmul.f32 0.01, %v3199_v39  ;;  %8468 = vmatprep.mubr.msk.bf16.mxu0 %vm9231_vm0, %v9230_v1  ;;  %8856 = vmatprep.mubr.msk.bf16.mxu1 %vm9231_vm0, %v9230_v1 }
 0x1e4   : > { %v4549_v16 = vsel %vm3777_vm12, %v2423_v7, %v4163_v12  ;;  %v7900_v18 = vpack.c.bf16 %v4742_v14, %v4742_v14 }
 0x1e5   : > { %6479 = vst.msk [vmem:[%s9521_s29 + $0xf8] sm:$0xf] %vm6416_vm4, %v7706_v13  ;;  %v7707_v19 = vpack.c.bf16 %v4549_v16, %v4549_v16  ;;  %v4743_v20 = vsel %vm3971_vm13, %v3199_v39, %v4357_v15  ;;  %v2427_v21 = vpop.f32.mrb[128].mxu0  ;;  %v3203_v22 = vpop.f32.mrb[128].mxu1  ;;  %v9145_v16 = vld [vmem:[%s9287_s24 + $0x1e8] sm:$0xff]  }
 0x1e6   : > { %6673 = vst.msk [vmem:[%s9521_s29 + $0x400] sm:$0xf] %vm6416_vm4, %v7900_v18  ;;  %v7901_v23 = vpack.c.bf16 %v4743_v20, %v4743_v20  ;;  %v2428_v24 = vadd.f32 %v10061_v17, %v2427_v21  ;;  %v8362_v25 = vpop.f32.mrb[129].mxu0  ;;  %v3204_v26 = vadd.f32 %v10061_v17, %v3203_v22  ;;  %v8750_v28 = vpop.f32.mrb[129].mxu1 }
 0x1e7   : > { %6480 = vst.msk [vmem:[%s9521_s29 + $0xfc] sm:$0xf] %vm6416_vm4, %v7707_v19  ;;  %v2430_v30 = vpop.f32.mrb[130].mxu0  ;;  %v3206_v31 = vpop.f32.mrb[130].mxu1  ;;  %v9146_v19 = vld [vmem:[%s9287_s24 + $0x4f0] sm:$0xff]  }
 0x1e8   : > { %6674 = vst.msk [vmem:[%s9521_s29 + $0x404] sm:$0xf] %vm6416_vm4, %v7901_v23  ;;  %vm3778_vm14 = vcmp.ge.f32.partialorder %v2428_v24, 0.0  ;;  %v4164_v32 = vmul.f32 0.01, %v2428_v24  ;;  %v2431_v33 = vadd.f32 %v10061_v17, %v2430_v30  ;;  %v8363_v34 = vpop.f32.mrb[131].mxu0  ;;  %v3207_v37 = vadd.f32 %v10061_v17, %v3206_v31 }
 0x1e9   : > { %vm3972_vm15 = vcmp.ge.f32.partialorder %v3204_v26, 0.0  ;;  %v8751_v35 = vpop.f32.mrb[131].mxu1  ;;  %v4358_v36 = vmul.f32 0.01, %v3204_v26 }
 0x1ea   : > { %v4550_v38 = vsel %vm3778_vm14, %v2428_v24, %v4164_v32  ;;  %vm3779_vm2 = vcmp.ge.f32.partialorder %v2431_v33, 0.0  ;;  %v4165_v40 = vmul.f32 0.01, %v2431_v33  ;;  %8469 = vmatmul.mubr.msk.bf16.gmra.mrb[236].mxu0 %vm1557_vm1, %v9141_v27  ;;  %8857 = vmatmul.mubr.msk.bf16.gmra.mrb[236].mxu1 %vm1557_vm1, %v9142_v29  ;;  %vm3973_vm3 = vcmp.ge.f32.partialorder %v3207_v37, 0.0 }
 0x1eb   : > { %v7708_v41 = vpack.c.bf16 %v4550_v38, %v4550_v38  ;;  %v4744_v42 = vsel %vm3972_vm15, %v3204_v26, %v4358_v36  ;;  %v4359_v58 = vmul.f32 0.01, %v3207_v37  ;;  %8472 = vmatprep.mubr.msk.bf16.mxu0 %vm9231_vm0, %v9230_v1  ;;  %8860 = vmatprep.mubr.msk.bf16.mxu1 %vm9231_vm0, %v9230_v1 }
 0x1ec   : > { %v4551_v43 = vsel %vm3779_vm2, %v2431_v33, %v4165_v40  ;;  %v7902_v44 = vpack.c.bf16 %v4744_v42, %v4744_v42 }
 0x1ed   : > { %6481 = vst.msk [vmem:[%s9521_s29 + $0x100] sm:$0xf] %vm6416_vm4, %v7708_v41  ;;  %v7709_v45 = vpack.c.bf16 %v4551_v43, %v4551_v43  ;;  %v4745_v46 = vsel %vm3973_vm3, %v3207_v37, %v4359_v58  ;;  %v2435_v47 = vpop.f32.mrb[132].mxu0  ;;  %v3211_v48 = vpop.f32.mrb[132].mxu1  ;;  %v9147_v43 = vld [vmem:[%s9287_s24 + $0x1f0] sm:$0xff]  }
 0x1ee   : > { %6675 = vst.msk [vmem:[%s9521_s29 + $0x408] sm:$0xf] %vm6416_vm4, %v7902_v44  ;;  %v7903_v49 = vpack.c.bf16 %v4745_v46, %v4745_v46  ;;  %v2436_v50 = vadd.f32 %v10061_v17, %v2435_v47  ;;  %v8366_v51 = vpop.f32.mrb[133].mxu0  ;;  %v3212_v52 = vadd.f32 %v10061_v17, %v3211_v48  ;;  %v8754_v54 = vpop.f32.mrb[133].mxu1 }
 0x1ef   : > { %6482 = vst.msk [vmem:[%s9521_s29 + $0x104] sm:$0xf] %vm6416_vm4, %v7709_v45  ;;  %v2438_v56 = vpop.f32.mrb[134].mxu0  ;;  %v3214_v57 = vpop.f32.mrb[134].mxu1  ;;  %v9148_v45 = vld [vmem:[%s9287_s24 + $0x4f8] sm:$0xff]  }
 0x1f0   : > { %6676 = vst.msk [vmem:[%s9521_s29 + $0x40c] sm:$0xf] %vm6416_vm4, %v7903_v49  ;;  %vm3780_vm5 = vcmp.ge.f32.partialorder %v2436_v50, 0.0  ;;  %v4166_v59 = vmul.f32 0.01, %v2436_v50  ;;  %v2439_v60 = vadd.f32 %v10061_v17, %v2438_v56  ;;  %v8367_v61 = vpop.f32.mrb[135].mxu0  ;;  %v3215_v0 = vadd.f32 %v10061_v17, %v3214_v57 }
 0x1f1   : > { %vm3974_vm6 = vcmp.ge.f32.partialorder %v3212_v52, 0.0  ;;  %v8755_v62 = vpop.f32.mrb[135].mxu1  ;;  %v4360_v63 = vmul.f32 0.01, %v3212_v52 }
 0x1f2   : > { %v4552_v2 = vsel %vm3780_vm5, %v2436_v50, %v4166_v59  ;;  %vm3781_vm7 = vcmp.ge.f32.partialorder %v2439_v60, 0.0  ;;  %v4167_v3 = vmul.f32 0.01, %v2439_v60  ;;  %8473 = vmatmul.mubr.msk.bf16.gmra.mrb[240].mxu0 %vm1557_vm1, %v9143_v53  ;;  %8861 = vmatmul.mubr.msk.bf16.gmra.mrb[240].mxu1 %vm1557_vm1, %v9144_v55  ;;  %vm3975_vm8 = vcmp.ge.f32.partialorder %v3215_v0, 0.0 }
 0x1f3   : > { %v7710_v4 = vpack.c.bf16 %v4552_v2, %v4552_v2  ;;  %v4746_v5 = vsel %vm3974_vm6, %v3212_v52, %v4360_v63  ;;  %v4361_v6 = vmul.f32 0.01, %v3215_v0  ;;  %8476 = vmatprep.mubr.msk.bf16.mxu0 %vm9231_vm0, %v9230_v1  ;;  %8864 = vmatprep.mubr.msk.bf16.mxu1 %vm9231_vm0, %v9230_v1 }
 0x1f4   : > { %v4553_v7 = vsel %vm3781_vm7, %v2439_v60, %v4167_v3  ;;  %v7904_v8 = vpack.c.bf16 %v4746_v5, %v4746_v5 }
 0x1f5   : > { %6483 = vst.msk [vmem:[%s9521_s29 + $0x108] sm:$0xf] %vm6416_vm4, %v7710_v4  ;;  %v7711_v9 = vpack.c.bf16 %v4553_v7, %v4553_v7  ;;  %v4747_v10 = vsel %vm3975_vm8, %v3215_v0, %v4361_v6  ;;  %v2443_v39 = vpop.f32.mrb[136].mxu0  ;;  %v3219_v11 = vpop.f32.mrb[136].mxu1  ;;  %v9149_v7 = vld [vmem:[%s9287_s24 + $0x1f8] sm:$0xff]  }
 0x1f6   : > { %6677 = vst.msk [vmem:[%s9521_s29 + $0x410] sm:$0xf] %vm6416_vm4, %v7904_v8  ;;  %v7905_v12 = vpack.c.bf16 %v4747_v10, %v4747_v10  ;;  %v2444_v13 = vadd.f32 %v10061_v17, %v2443_v39  ;;  %v8370_v14 = vpop.f32.mrb[137].mxu0  ;;  %v3220_v15 = vadd.f32 %v10061_v17, %v3219_v11  ;;  %v8758_v18 = vpop.f32.mrb[137].mxu1 }
 0x1f7   : > { %6484 = vst.msk [vmem:[%s9521_s29 + $0x10c] sm:$0xf] %vm6416_vm4, %v7711_v9  ;;  %v2446_v20 = vpop.f32.mrb[138].mxu0  ;;  %v3222_v21 = vpop.f32.mrb[138].mxu1  ;;  %v9150_v9 = vld [vmem:[%s9287_s24 + $0x500] sm:$0xff]  }
 0x1f8   : > { %6678 = vst.msk [vmem:[%s9521_s29 + $0x414] sm:$0xf] %vm6416_vm4, %v7905_v12  ;;  %vm3782_vm9 = vcmp.ge.f32.partialorder %v2444_v13, 0.0  ;;  %v4168_v22 = vmul.f32 0.01, %v2444_v13  ;;  %v2447_v23 = vadd.f32 %v10061_v17, %v2446_v20  ;;  %v8371_v24 = vpop.f32.mrb[139].mxu0  ;;  %v3223_v27 = vadd.f32 %v10061_v17, %v3222_v21 }
 0x1f9   : > { %vm3976_vm10 = vcmp.ge.f32.partialorder %v3220_v15, 0.0  ;;  %v8759_v25 = vpop.f32.mrb[139].mxu1  ;;  %v4362_v26 = vmul.f32 0.01, %v3220_v15 }
 0x1fa   : > { %v4554_v28 = vsel %vm3782_vm9, %v2444_v13, %v4168_v22  ;;  %vm3783_vm11 = vcmp.ge.f32.partialorder %v2447_v23, 0.0  ;;  %v4169_v29 = vmul.f32 0.01, %v2447_v23  ;;  %8477 = vmatmul.mubr.msk.bf16.gmra.mrb[244].mxu0 %vm1557_vm1, %v9145_v16  ;;  %8865 = vmatmul.mubr.msk.bf16.gmra.mrb[244].mxu1 %vm1557_vm1, %v9146_v19  ;;  %vm3977_vm12 = vcmp.ge.f32.partialorder %v3223_v27, 0.0 }
 0x1fb   : > { %v7712_v30 = vpack.c.bf16 %v4554_v28, %v4554_v28  ;;  %v4748_v31 = vsel %vm3976_vm10, %v3220_v15, %v4362_v26  ;;  %v4363_v32 = vmul.f32 0.01, %v3223_v27  ;;  %8480 = vmatprep.mubr.msk.bf16.mxu0 %vm9231_vm0, %v9230_v1  ;;  %8868 = vmatprep.mubr.msk.bf16.mxu1 %vm9231_vm0, %v9230_v1 }
 0x1fc   : > { %v4555_v33 = vsel %vm3783_vm11, %v2447_v23, %v4169_v29  ;;  %v7906_v34 = vpack.c.bf16 %v4748_v31, %v4748_v31 }
 0x1fd   : > { %6485 = vst.msk [vmem:[%s9521_s29 + $0x110] sm:$0xf] %vm6416_vm4, %v7712_v30  ;;  %v7713_v35 = vpack.c.bf16 %v4555_v33, %v4555_v33  ;;  %v4749_v36 = vsel %vm3977_vm12, %v3223_v27, %v4363_v32  ;;  %v2451_v37 = vpop.f32.mrb[140].mxu0  ;;  %v3227_v38 = vpop.f32.mrb[140].mxu1  ;;  %v9151_v33 = vld [vmem:[%s9287_s24 + $0x200] sm:$0xff]  }
 0x1fe   : > { %6679 = vst.msk [vmem:[%s9521_s29 + $0x418] sm:$0xf] %vm6416_vm4, %v7906_v34  ;;  %v7907_v40 = vpack.c.bf16 %v4749_v36, %v4749_v36  ;;  %v2452_v41 = vadd.f32 %v10061_v17, %v2451_v37  ;;  %v8374_v42 = vpop.f32.mrb[141].mxu0  ;;  %v3228_v58 = vadd.f32 %v10061_v17, %v3227_v38  ;;  %v8762_v44 = vpop.f32.mrb[141].mxu1 }
 0x1ff   : > { %6486 = vst.msk [vmem:[%s9521_s29 + $0x114] sm:$0xf] %vm6416_vm4, %v7713_v35  ;;  %v2454_v46 = vpop.f32.mrb[142].mxu0  ;;  %v3230_v47 = vpop.f32.mrb[142].mxu1  ;;  %v9152_v35 = vld [vmem:[%s9287_s24 + $0x508] sm:$0xff]  }
 0x200   : > { %6680 = vst.msk [vmem:[%s9521_s29 + $0x41c] sm:$0xf] %vm6416_vm4, %v7907_v40  ;;  %vm3784_vm13 = vcmp.ge.f32.partialorder %v2452_v41, 0.0  ;;  %v4170_v48 = vmul.f32 0.01, %v2452_v41  ;;  %v2455_v49 = vadd.f32 %v10061_v17, %v2454_v46  ;;  %v8375_v50 = vpop.f32.mrb[143].mxu0  ;;  %v3231_v53 = vadd.f32 %v10061_v17, %v3230_v47 }
 0x201   : > { %vm3978_vm14 = vcmp.ge.f32.partialorder %v3228_v58, 0.0  ;;  %v8763_v51 = vpop.f32.mrb[143].mxu1  ;;  %v4364_v52 = vmul.f32 0.01, %v3228_v58 }
 0x202   : > { %v4556_v54 = vsel %vm3784_vm13, %v2452_v41, %v4170_v48  ;;  %vm3785_vm15 = vcmp.ge.f32.partialorder %v2455_v49, 0.0  ;;  %v4171_v55 = vmul.f32 0.01, %v2455_v49  ;;  %8481 = vmatmul.mubr.msk.bf16.gmra.mrb[248].mxu0 %vm1557_vm1, %v9147_v43  ;;  %8869 = vmatmul.mubr.msk.bf16.gmra.mrb[248].mxu1 %vm1557_vm1, %v9148_v45  ;;  %vm3979_vm2 = vcmp.ge.f32.partialorder %v3231_v53, 0.0 }
 0x203   : > { %v7714_v56 = vpack.c.bf16 %v4556_v54, %v4556_v54  ;;  %v4750_v57 = vsel %vm3978_vm14, %v3228_v58, %v4364_v52  ;;  %v4365_v59 = vmul.f32 0.01, %v3231_v53  ;;  %8484 = vmatprep.mubr.msk.bf16.mxu0 %vm9231_vm0, %v9230_v1  ;;  %8872 = vmatprep.mubr.msk.bf16.mxu1 %vm9231_vm0, %v9230_v1 }
 0x204   : > { %v4557_v60 = vsel %vm3785_vm15, %v2455_v49, %v4171_v55  ;;  %v7908_v61 = vpack.c.bf16 %v4750_v57, %v4750_v57 }
 0x205   : > { %6487 = vst.msk [vmem:[%s9521_s29 + $0x118] sm:$0xf] %vm6416_vm4, %v7714_v56  ;;  %v7715_v62 = vpack.c.bf16 %v4557_v60, %v4557_v60  ;;  %v4751_v63 = vsel %vm3979_vm2, %v3231_v53, %v4365_v59  ;;  %v2459_v0 = vpop.f32.mrb[144].mxu0  ;;  %v3235_v2 = vpop.f32.mrb[144].mxu1  ;;  %v9153_v60 = vld [vmem:[%s9287_s24 + $0x208] sm:$0xff]  }
 0x206   : > { %6681 = vst.msk [vmem:[%s9521_s29 + $0x420] sm:$0xf] %vm6416_vm4, %v7908_v61  ;;  %v7909_v3 = vpack.c.bf16 %v4751_v63, %v4751_v63  ;;  %v2460_v4 = vadd.f32 %v10061_v17, %v2459_v0  ;;  %v8378_v5 = vpop.f32.mrb[145].mxu0  ;;  %v3236_v6 = vadd.f32 %v10061_v17, %v3235_v2  ;;  %v8766_v8 = vpop.f32.mrb[145].mxu1 }
 0x207   : > { %6488 = vst.msk [vmem:[%s9521_s29 + $0x11c] sm:$0xf] %vm6416_vm4, %v7715_v62  ;;  %v2462_v10 = vpop.f32.mrb[146].mxu0  ;;  %v3238_v39 = vpop.f32.mrb[146].mxu1  ;;  %v9154_v62 = vld [vmem:[%s9287_s24 + $0x510] sm:$0xff]  }
 0x208   : > { %6682 = vst.msk [vmem:[%s9521_s29 + $0x424] sm:$0xf] %vm6416_vm4, %v7909_v3  ;;  %vm3786_vm3 = vcmp.ge.f32.partialorder %v2460_v4, 0.0  ;;  %v4172_v11 = vmul.f32 0.01, %v2460_v4  ;;  %v2463_v12 = vadd.f32 %v10061_v17, %v2462_v10  ;;  %v8379_v13 = vpop.f32.mrb[147].mxu0  ;;  %v3239_v16 = vadd.f32 %v10061_v17, %v3238_v39 }
 0x209   : > { %vm3980_vm5 = vcmp.ge.f32.partialorder %v3236_v6, 0.0  ;;  %v8767_v14 = vpop.f32.mrb[147].mxu1  ;;  %v4366_v15 = vmul.f32 0.01, %v3236_v6 }
 0x20a   : > { %v4558_v18 = vsel %vm3786_vm3, %v2460_v4, %v4172_v11  ;;  %vm3787_vm6 = vcmp.ge.f32.partialorder %v2463_v12, 0.0  ;;  %v4173_v19 = vmul.f32 0.01, %v2463_v12  ;;  %8485 = vmatmul.mubr.msk.bf16.gmra.mrb[252].mxu0 %vm1557_vm1, %v9149_v7  ;;  %8873 = vmatmul.mubr.msk.bf16.gmra.mrb[252].mxu1 %vm1557_vm1, %v9150_v9  ;;  %vm3981_vm7 = vcmp.ge.f32.partialorder %v3239_v16, 0.0 }
 0x20b   : > { %v7716_v20 = vpack.c.bf16 %v4558_v18, %v4558_v18  ;;  %v4752_v21 = vsel %vm3980_vm5, %v3236_v6, %v4366_v15  ;;  %v4367_v22 = vmul.f32 0.01, %v3239_v16  ;;  %8488 = vmatprep.mubr.msk.bf16.mxu0 %vm9231_vm0, %v9230_v1  ;;  %8876 = vmatprep.mubr.msk.bf16.mxu1 %vm9231_vm0, %v9230_v1 }
 0x20c   : > { %v4559_v23 = vsel %vm3787_vm6, %v2463_v12, %v4173_v19  ;;  %v7910_v24 = vpack.c.bf16 %v4752_v21, %v4752_v21 }
 0x20d   : > { %6489 = vst.msk [vmem:[%s9521_s29 + $0x120] sm:$0xf] %vm6416_vm4, %v7716_v20  ;;  %v7717_v25 = vpack.c.bf16 %v4559_v23, %v4559_v23  ;;  %v4753_v26 = vsel %vm3981_vm7, %v3239_v16, %v4367_v22  ;;  %v2467_v27 = vpop.f32.mrb[148].mxu0  ;;  %v3243_v28 = vpop.f32.mrb[148].mxu1  ;;  %v9155_v23 = vld [vmem:[%s9287_s24 + $0x210] sm:$0xff]  }
 0x20e   : > { %6683 = vst.msk [vmem:[%s9521_s29 + $0x428] sm:$0xf] %vm6416_vm4, %v7910_v24  ;;  %v7911_v29 = vpack.c.bf16 %v4753_v26, %v4753_v26  ;;  %v2468_v30 = vadd.f32 %v10061_v17, %v2467_v27  ;;  %v8382_v31 = vpop.f32.mrb[149].mxu0  ;;  %v3244_v32 = vadd.f32 %v10061_v17, %v3243_v28  ;;  %v8770_v34 = vpop.f32.mrb[149].mxu1 }
 0x20f   : > { %6490 = vst.msk [vmem:[%s9521_s29 + $0x124] sm:$0xf] %vm6416_vm4, %v7717_v25  ;;  %v2470_v36 = vpop.f32.mrb[150].mxu0  ;;  %v3246_v37 = vpop.f32.mrb[150].mxu1  ;;  %v9156_v25 = vld [vmem:[%s9287_s24 + $0x518] sm:$0xff]  }
 0x210   : > { %6684 = vst.msk [vmem:[%s9521_s29 + $0x42c] sm:$0xf] %vm6416_vm4, %v7911_v29  ;;  %vm3788_vm8 = vcmp.ge.f32.partialorder %v2468_v30, 0.0  ;;  %v4174_v38 = vmul.f32 0.01, %v2468_v30  ;;  %v2471_v40 = vadd.f32 %v10061_v17, %v2470_v36  ;;  %v8383_v41 = vpop.f32.mrb[151].mxu0  ;;  %v3247_v43 = vadd.f32 %v10061_v17, %v3246_v37 }
 0x211   : > { %vm3982_vm9 = vcmp.ge.f32.partialorder %v3244_v32, 0.0  ;;  %v8771_v42 = vpop.f32.mrb[151].mxu1  ;;  %v4368_v58 = vmul.f32 0.01, %v3244_v32 }
 0x212   : > { %v4560_v44 = vsel %vm3788_vm8, %v2468_v30, %v4174_v38  ;;  %vm3789_vm10 = vcmp.ge.f32.partialorder %v2471_v40, 0.0  ;;  %v4175_v45 = vmul.f32 0.01, %v2471_v40  ;;  %8489 = vmatmul.mubr.msk.bf16.gmra.mrb[0].mxu0 %vm1557_vm1, %v9151_v33  ;;  %8877 = vmatmul.mubr.msk.bf16.gmra.mrb[0].mxu1 %vm1557_vm1, %v9152_v35  ;;  %vm3983_vm11 = vcmp.ge.f32.partialorder %v3247_v43, 0.0 }
 0x213   : > { %v7718_v46 = vpack.c.bf16 %v4560_v44, %v4560_v44  ;;  %v4754_v47 = vsel %vm3982_vm9, %v3244_v32, %v4368_v58  ;;  %v4369_v48 = vmul.f32 0.01, %v3247_v43  ;;  %8492 = vmatprep.mubr.msk.bf16.mxu0 %vm9231_vm0, %v9230_v1  ;;  %8880 = vmatprep.mubr.msk.bf16.mxu1 %vm9231_vm0, %v9230_v1 }
 0x214   : > { %v4561_v49 = vsel %vm3789_vm10, %v2471_v40, %v4175_v45  ;;  %v7912_v50 = vpack.c.bf16 %v4754_v47, %v4754_v47 }
 0x215   : > { %6491 = vst.msk [vmem:[%s9521_s29 + $0x128] sm:$0xf] %vm6416_vm4, %v7718_v46  ;;  %v7719_v51 = vpack.c.bf16 %v4561_v49, %v4561_v49  ;;  %v4755_v52 = vsel %vm3983_vm11, %v3247_v43, %v4369_v48  ;;  %v2475_v53 = vpop.f32.mrb[152].mxu0  ;;  %v3251_v54 = vpop.f32.mrb[152].mxu1  ;;  %v9157_v49 = vld [vmem:[%s9287_s24 + $0x218] sm:$0xff]  }
 0x216   : > { %6685 = vst.msk [vmem:[%s9521_s29 + $0x430] sm:$0xf] %vm6416_vm4, %v7912_v50  ;;  %v7913_v55 = vpack.c.bf16 %v4755_v52, %v4755_v52  ;;  %v2476_v56 = vadd.f32 %v10061_v17, %v2475_v53  ;;  %v8386_v57 = vpop.f32.mrb[153].mxu0  ;;  %v3252_v59 = vadd.f32 %v10061_v17, %v3251_v54  ;;  %v8774_v61 = vpop.f32.mrb[153].mxu1 }
 0x217   : > { %6492 = vst.msk [vmem:[%s9521_s29 + $0x12c] sm:$0xf] %vm6416_vm4, %v7719_v51  ;;  %v2478_v63 = vpop.f32.mrb[154].mxu0  ;;  %v3254_v0 = vpop.f32.mrb[154].mxu1  ;;  %v9158_v51 = vld [vmem:[%s9287_s24 + $0x520] sm:$0xff]  }
 0x218   : > { %6686 = vst.msk [vmem:[%s9521_s29 + $0x434] sm:$0xf] %vm6416_vm4, %v7913_v55  ;;  %vm3790_vm12 = vcmp.ge.f32.partialorder %v2476_v56, 0.0  ;;  %v4176_v2 = vmul.f32 0.01, %v2476_v56  ;;  %v2479_v3 = vadd.f32 %v10061_v17, %v2478_v63  ;;  %v8387_v4 = vpop.f32.mrb[155].mxu0  ;;  %v3255_v7 = vadd.f32 %v10061_v17, %v3254_v0 }
 0x219   : > { %vm3984_vm13 = vcmp.ge.f32.partialorder %v3252_v59, 0.0  ;;  %v8775_v5 = vpop.f32.mrb[155].mxu1  ;;  %v4370_v6 = vmul.f32 0.01, %v3252_v59 }
 0x21a   : > { %v4562_v8 = vsel %vm3790_vm12, %v2476_v56, %v4176_v2  ;;  %vm3791_vm14 = vcmp.ge.f32.partialorder %v2479_v3, 0.0  ;;  %v4177_v9 = vmul.f32 0.01, %v2479_v3  ;;  %8493 = vmatmul.mubr.msk.bf16.gmra.mrb[4].mxu0 %vm1557_vm1, %v9153_v60  ;;  %8881 = vmatmul.mubr.msk.bf16.gmra.mrb[4].mxu1 %vm1557_vm1, %v9154_v62  ;;  %vm3985_vm15 = vcmp.ge.f32.partialorder %v3255_v7, 0.0 }
 0x21b   : > { %v7720_v10 = vpack.c.bf16 %v4562_v8, %v4562_v8  ;;  %v4756_v39 = vsel %vm3984_vm13, %v3252_v59, %v4370_v6  ;;  %v4371_v11 = vmul.f32 0.01, %v3255_v7  ;;  %8496 = vmatprep.mubr.msk.bf16.mxu0 %vm9231_vm0, %v9230_v1  ;;  %8884 = vmatprep.mubr.msk.bf16.mxu1 %vm9231_vm0, %v9230_v1 }
 0x21c   : > { %v4563_v12 = vsel %vm3791_vm14, %v2479_v3, %v4177_v9  ;;  %v7914_v13 = vpack.c.bf16 %v4756_v39, %v4756_v39  ;;  %v10346_v9 = vld [vmem:[%s11262_s2] ss:$0 sm:$0xff] }
 0x21d   : > { %6493 = vst.msk [vmem:[%s9521_s29 + $0x130] sm:$0xf] %vm6416_vm4, %v7720_v10  ;;  %v7721_v14 = vpack.c.bf16 %v4563_v12, %v4563_v12  ;;  %v4757_v15 = vsel %vm3985_vm15, %v3255_v7, %v4371_v11  ;;  %v2483_v16 = vpop.f32.mrb[156].mxu0  ;;  %v3259_v18 = vpop.f32.mrb[156].mxu1  ;;  %v9159_v12 = vld [vmem:[%s9287_s24 + $0x220] sm:$0xff]  }
 0x21e   : > { %6687 = vst.msk [vmem:[%s9521_s29 + $0x438] sm:$0xf] %vm6416_vm4, %v7914_v13  ;;  %v7915_v19 = vpack.c.bf16 %v4757_v15, %v4757_v15  ;;  %v2484_v20 = vadd.f32 %v10061_v17, %v2483_v16  ;;  %v8390_v21 = vpop.f32.mrb[157].mxu0  ;;  %v3260_v22 = vadd.f32 %v10061_v17, %v3259_v18  ;;  %v8778_v24 = vpop.f32.mrb[157].mxu1 }
 0x21f   : > { %6494 = vst.msk [vmem:[%s9521_s29 + $0x134] sm:$0xf] %vm6416_vm4, %v7721_v14  ;;  %v2486_v26 = vpop.f32.mrb[158].mxu0  ;;  %v3262_v27 = vpop.f32.mrb[158].mxu1  ;;  %v9160_v14 = vld [vmem:[%s9287_s24 + $0x528] sm:$0xff]  }
 0x220   : > { %6688 = vst.msk [vmem:[%s9521_s29 + $0x43c] sm:$0xf] %vm6416_vm4, %v7915_v19  ;;  %vm3792_vm2 = vcmp.ge.f32.partialorder %v2484_v20, 0.0  ;;  %v4178_v28 = vmul.f32 0.01, %v2484_v20  ;;  %v2487_v29 = vadd.f32 %v10061_v17, %v2486_v26  ;;  %v8391_v30 = vpop.f32.mrb[159].mxu0  ;;  %v3263_v33 = vadd.f32 %v10061_v17, %v3262_v27 }
 0x221   : > { %vm3986_vm3 = vcmp.ge.f32.partialorder %v3260_v22, 0.0  ;;  %v8779_v31 = vpop.f32.mrb[159].mxu1  ;;  %v4372_v32 = vmul.f32 0.01, %v3260_v22 }
 0x222   : > { %v4564_v34 = vsel %vm3792_vm2, %v2484_v20, %v4178_v28  ;;  %vm3793_vm5 = vcmp.ge.f32.partialorder %v2487_v29, 0.0  ;;  %v4179_v35 = vmul.f32 0.01, %v2487_v29  ;;  %8497 = vmatmul.mubr.msk.bf16.gmra.mrb[8].mxu0 %vm1557_vm1, %v9155_v23  ;;  %8885 = vmatmul.mubr.msk.bf16.gmra.mrb[8].mxu1 %vm1557_vm1, %v9156_v25  ;;  %vm3987_vm6 = vcmp.ge.f32.partialorder %v3263_v33, 0.0 }
 0x223   : > { %v7722_v36 = vpack.c.bf16 %v4564_v34, %v4564_v34  ;;  %v4758_v37 = vsel %vm3986_vm3, %v3260_v22, %v4372_v32  ;;  %v4373_v38 = vmul.f32 0.01, %v3263_v33  ;;  %8500 = vmatprep.mubr.msk.bf16.mxu0 %vm9231_vm0, %v9230_v1  ;;  %8888 = vmatprep.mubr.msk.bf16.mxu1 %vm9231_vm0, %v9230_v1 }
 0x224   : > { %v4565_v40 = vsel %vm3793_vm5, %v2487_v29, %v4179_v35  ;;  %v7916_v41 = vpack.c.bf16 %v4758_v37, %v4758_v37 }
 0x225   : > { %6495 = vst.msk [vmem:[%s9521_s29 + $0x138] sm:$0xf] %vm6416_vm4, %v7722_v36  ;;  %v7723_v42 = vpack.c.bf16 %v4565_v40, %v4565_v40  ;;  %v4759_v58 = vsel %vm3987_vm6, %v3263_v33, %v4373_v38  ;;  %v2491_v43 = vpop.f32.mrb[160].mxu0  ;;  %v3267_v44 = vpop.f32.mrb[160].mxu1  ;;  %v9161_v40 = vld [vmem:[%s9287_s24 + $0x228] sm:$0xff]  }
 0x226   : > { %6689 = vst.msk [vmem:[%s9521_s29 + $0x440] sm:$0xf] %vm6416_vm4, %v7916_v41  ;;  %v7917_v45 = vpack.c.bf16 %v4759_v58, %v4759_v58  ;;  %v2492_v46 = vadd.f32 %v10061_v17, %v2491_v43  ;;  %v8394_v47 = vpop.f32.mrb[161].mxu0  ;;  %v3268_v48 = vadd.f32 %v10061_v17, %v3267_v44  ;;  %v8782_v50 = vpop.f32.mrb[161].mxu1 }
 0x227   : > { %6496 = vst.msk [vmem:[%s9521_s29 + $0x13c] sm:$0xf] %vm6416_vm4, %v7723_v42  ;;  %v2494_v52 = vpop.f32.mrb[162].mxu0  ;;  %v3270_v53 = vpop.f32.mrb[162].mxu1  ;;  %v9162_v42 = vld [vmem:[%s9287_s24 + $0x530] sm:$0xff]  }
 0x228   : > { %6690 = vst.msk [vmem:[%s9521_s29 + $0x444] sm:$0xf] %vm6416_vm4, %v7917_v45  ;;  %vm3794_vm7 = vcmp.ge.f32.partialorder %v2492_v46, 0.0  ;;  %v4180_v54 = vmul.f32 0.01, %v2492_v46  ;;  %v2495_v55 = vadd.f32 %v10061_v17, %v2494_v52  ;;  %v8395_v56 = vpop.f32.mrb[163].mxu0  ;;  %v3271_v60 = vadd.f32 %v10061_v17, %v3270_v53 }
 0x229   : > { %vm3988_vm8 = vcmp.ge.f32.partialorder %v3268_v48, 0.0  ;;  %v8783_v57 = vpop.f32.mrb[163].mxu1  ;;  %v4374_v59 = vmul.f32 0.01, %v3268_v48 }
 0x22a   : > { %v4566_v61 = vsel %vm3794_vm7, %v2492_v46, %v4180_v54  ;;  %vm3795_vm9 = vcmp.ge.f32.partialorder %v2495_v55, 0.0  ;;  %v4181_v62 = vmul.f32 0.01, %v2495_v55  ;;  %8501 = vmatmul.mubr.msk.bf16.gmra.mrb[12].mxu0 %vm1557_vm1, %v9157_v49  ;;  %8889 = vmatmul.mubr.msk.bf16.gmra.mrb[12].mxu1 %vm1557_vm1, %v9158_v51  ;;  %vm3989_vm10 = vcmp.ge.f32.partialorder %v3271_v60, 0.0 }
 0x22b   : > { %v7724_v63 = vpack.c.bf16 %v4566_v61, %v4566_v61  ;;  %v4760_v0 = vsel %vm3988_vm8, %v3268_v48, %v4374_v59  ;;  %v4375_v2 = vmul.f32 0.01, %v3271_v60  ;;  %8504 = vmatprep.mubr.msk.bf16.mxu0 %vm9231_vm0, %v9230_v1  ;;  %8892 = vmatprep.mubr.msk.bf16.mxu1 %vm9231_vm0, %v9230_v1 }
 0x22c   : > { %v4567_v17 = vsel %vm3795_vm9, %v2495_v55, %v4181_v62  ;;  %v7918_v3 = vpack.c.bf16 %v4760_v0, %v4760_v0 }
 0x22d   : > { %6497 = vst.msk [vmem:[%s9521_s29 + $0x140] sm:$0xf] %vm6416_vm4, %v7724_v63  ;;  %v7725_v4 = vpack.c.bf16 %v4567_v17, %v4567_v17  ;;  %v4761_v5 = vsel %vm3989_vm10, %v3271_v60, %v4375_v2  ;;  %v2499_v6 = vpop.f32.mrb[164].mxu0  ;;  %v3275_v7 = vpop.f32.mrb[164].mxu1  ;;  %v9163_v17 = vld [vmem:[%s9287_s24 + $0x230] sm:$0xff]  }
 0x22e   : > { %6691 = vst.msk [vmem:[%s9521_s29 + $0x448] sm:$0xf] %vm6416_vm4, %v7918_v3  ;;  %v7919_v8 = vpack.c.bf16 %v4761_v5, %v4761_v5  ;;  %v2500_v10 = vadd.f32 %v10346_v9, %v2499_v6  ;;  %v8398_v39 = vpop.f32.mrb[165].mxu0  ;;  %v3276_v11 = vadd.f32 %v10346_v9, %v3275_v7  ;;  %v8786_v13 = vpop.f32.mrb[165].mxu1 }
 0x22f   : > { %6498 = vst.msk [vmem:[%s9521_s29 + $0x144] sm:$0xf] %vm6416_vm4, %v7725_v4  ;;  %v2502_v15 = vpop.f32.mrb[166].mxu0  ;;  %v3278_v16 = vpop.f32.mrb[166].mxu1  ;;  %v9164_v4 = vld [vmem:[%s9287_s24 + $0x538] sm:$0xff]  }
 0x230   : > { %6692 = vst.msk [vmem:[%s9521_s29 + $0x44c] sm:$0xf] %vm6416_vm4, %v7919_v8  ;;  %vm3796_vm11 = vcmp.ge.f32.partialorder %v2500_v10, 0.0  ;;  %v4182_v18 = vmul.f32 0.01, %v2500_v10  ;;  %v2503_v19 = vadd.f32 %v10346_v9, %v2502_v15  ;;  %v8399_v20 = vpop.f32.mrb[167].mxu0  ;;  %v3279_v23 = vadd.f32 %v10346_v9, %v3278_v16 }
 0x231   : > { %vm3990_vm12 = vcmp.ge.f32.partialorder %v3276_v11, 0.0  ;;  %v8787_v21 = vpop.f32.mrb[167].mxu1  ;;  %v4376_v22 = vmul.f32 0.01, %v3276_v11 }
 0x232   : > { %v4568_v24 = vsel %vm3796_vm11, %v2500_v10, %v4182_v18  ;;  %vm3797_vm13 = vcmp.ge.f32.partialorder %v2503_v19, 0.0  ;;  %v4183_v25 = vmul.f32 0.01, %v2503_v19  ;;  %8505 = vmatmul.mubr.msk.bf16.gmra.mrb[16].mxu0 %vm1557_vm1, %v9159_v12  ;;  %8893 = vmatmul.mubr.msk.bf16.gmra.mrb[16].mxu1 %vm1557_vm1, %v9160_v14  ;;  %vm3991_vm14 = vcmp.ge.f32.partialorder %v3279_v23, 0.0 }
 0x233   : > { %v7726_v26 = vpack.c.bf16 %v4568_v24, %v4568_v24  ;;  %v4762_v27 = vsel %vm3990_vm12, %v3276_v11, %v4376_v22  ;;  %v4377_v28 = vmul.f32 0.01, %v3279_v23  ;;  %8508 = vmatprep.mubr.msk.bf16.mxu0 %vm9231_vm0, %v9230_v1  ;;  %8896 = vmatprep.mubr.msk.bf16.mxu1 %vm9231_vm0, %v9230_v1 }
 0x234   : > { %v4569_v29 = vsel %vm3797_vm13, %v2503_v19, %v4183_v25  ;;  %v7920_v30 = vpack.c.bf16 %v4762_v27, %v4762_v27 }
 0x235   : > { %6499 = vst.msk [vmem:[%s9521_s29 + $0x148] sm:$0xf] %vm6416_vm4, %v7726_v26  ;;  %v7727_v31 = vpack.c.bf16 %v4569_v29, %v4569_v29  ;;  %v4763_v32 = vsel %vm3991_vm14, %v3279_v23, %v4377_v28  ;;  %v2507_v33 = vpop.f32.mrb[168].mxu0  ;;  %v3283_v34 = vpop.f32.mrb[168].mxu1  ;;  %v9165_v29 = vld [vmem:[%s9287_s24 + $0x238] sm:$0xff]  }
 0x236   : > { %6693 = vst.msk [vmem:[%s9521_s29 + $0x450] sm:$0xf] %vm6416_vm4, %v7920_v30  ;;  %v7921_v35 = vpack.c.bf16 %v4763_v32, %v4763_v32  ;;  %v2508_v36 = vadd.f32 %v10346_v9, %v2507_v33  ;;  %v8402_v37 = vpop.f32.mrb[169].mxu0  ;;  %v3284_v38 = vadd.f32 %v10346_v9, %v3283_v34  ;;  %v8790_v41 = vpop.f32.mrb[169].mxu1 }
 0x237   : > { %6500 = vst.msk [vmem:[%s9521_s29 + $0x14c] sm:$0xf] %vm6416_vm4, %v7727_v31  ;;  %v2510_v58 = vpop.f32.mrb[170].mxu0  ;;  %v3286_v43 = vpop.f32.mrb[170].mxu1  ;;  %v9166_v31 = vld [vmem:[%s9287_s24 + $0x540] sm:$0xff]  }
 0x238   : > { %6694 = vst.msk [vmem:[%s9521_s29 + $0x454] sm:$0xf] %vm6416_vm4, %v7921_v35  ;;  %vm3798_vm15 = vcmp.ge.f32.partialorder %v2508_v36, 0.0  ;;  %v4184_v44 = vmul.f32 0.01, %v2508_v36  ;;  %v2511_v45 = vadd.f32 %v10346_v9, %v2510_v58  ;;  %v8403_v46 = vpop.f32.mrb[171].mxu0  ;;  %v3287_v49 = vadd.f32 %v10346_v9, %v3286_v43 }
 0x239   : > { %vm3992_vm2 = vcmp.ge.f32.partialorder %v3284_v38, 0.0  ;;  %v8791_v47 = vpop.f32.mrb[171].mxu1  ;;  %v4378_v48 = vmul.f32 0.01, %v3284_v38 }
 0x23a   : > { %v4570_v50 = vsel %vm3798_vm15, %v2508_v36, %v4184_v44  ;;  %vm3799_vm3 = vcmp.ge.f32.partialorder %v2511_v45, 0.0  ;;  %v4185_v51 = vmul.f32 0.01, %v2511_v45  ;;  %8509 = vmatmul.mubr.msk.bf16.gmra.mrb[20].mxu0 %vm1557_vm1, %v9161_v40  ;;  %8897 = vmatmul.mubr.msk.bf16.gmra.mrb[20].mxu1 %vm1557_vm1, %v9162_v42  ;;  %vm3993_vm5 = vcmp.ge.f32.partialorder %v3287_v49, 0.0 }
 0x23b   : > { %v7728_v52 = vpack.c.bf16 %v4570_v50, %v4570_v50  ;;  %v4764_v53 = vsel %vm3992_vm2, %v3284_v38, %v4378_v48  ;;  %v4379_v54 = vmul.f32 0.01, %v3287_v49  ;;  %8512 = vmatprep.mubr.msk.bf16.mxu0 %vm9231_vm0, %v9230_v1  ;;  %8900 = vmatprep.mubr.msk.bf16.mxu1 %vm9231_vm0, %v9230_v1 }
 0x23c   : > { %v4571_v55 = vsel %vm3799_vm3, %v2511_v45, %v4185_v51  ;;  %v7922_v56 = vpack.c.bf16 %v4764_v53, %v4764_v53 }
 0x23d   : > { %6501 = vst.msk [vmem:[%s9521_s29 + $0x150] sm:$0xf] %vm6416_vm4, %v7728_v52  ;;  %v7729_v57 = vpack.c.bf16 %v4571_v55, %v4571_v55  ;;  %v4765_v59 = vsel %vm3993_vm5, %v3287_v49, %v4379_v54  ;;  %v2515_v60 = vpop.f32.mrb[172].mxu0  ;;  %v3291_v61 = vpop.f32.mrb[172].mxu1  ;;  %v9167_v55 = vld [vmem:[%s9287_s24 + $0x240] sm:$0xff]  }
 0x23e   : > { %6695 = vst.msk [vmem:[%s9521_s29 + $0x458] sm:$0xf] %vm6416_vm4, %v7922_v56  ;;  %v7923_v62 = vpack.c.bf16 %v4765_v59, %v4765_v59  ;;  %v2516_v63 = vadd.f32 %v10346_v9, %v2515_v60  ;;  %v8406_v0 = vpop.f32.mrb[173].mxu0  ;;  %v3292_v2 = vadd.f32 %v10346_v9, %v3291_v61  ;;  %v8794_v3 = vpop.f32.mrb[173].mxu1 }
 0x23f   : > { %6502 = vst.msk [vmem:[%s9521_s29 + $0x154] sm:$0xf] %vm6416_vm4, %v7729_v57  ;;  %v2518_v5 = vpop.f32.mrb[174].mxu0  ;;  %v3294_v6 = vpop.f32.mrb[174].mxu1  ;;  %v9168_v57 = vld [vmem:[%s9287_s24 + $0x548] sm:$0xff]  }
 0x240   : > { %6696 = vst.msk [vmem:[%s9521_s29 + $0x45c] sm:$0xf] %vm6416_vm4, %v7923_v62  ;;  %vm3800_vm6 = vcmp.ge.f32.partialorder %v2516_v63, 0.0  ;;  %v4186_v7 = vmul.f32 0.01, %v2516_v63  ;;  %v2519_v8 = vadd.f32 %v10346_v9, %v2518_v5  ;;  %v8407_v10 = vpop.f32.mrb[175].mxu0  ;;  %v3295_v12 = vadd.f32 %v10346_v9, %v3294_v6 }
 0x241   : > { %vm3994_vm7 = vcmp.ge.f32.partialorder %v3292_v2, 0.0  ;;  %v8795_v39 = vpop.f32.mrb[175].mxu1  ;;  %v4380_v11 = vmul.f32 0.01, %v3292_v2 }
 0x242   : > { %v4572_v13 = vsel %vm3800_vm6, %v2516_v63, %v4186_v7  ;;  %vm3801_vm8 = vcmp.ge.f32.partialorder %v2519_v8, 0.0  ;;  %v4187_v14 = vmul.f32 0.01, %v2519_v8  ;;  %8513 = vmatmul.mubr.msk.bf16.gmra.mrb[24].mxu0 %vm1557_vm1, %v9163_v17  ;;  %8901 = vmatmul.mubr.msk.bf16.gmra.mrb[24].mxu1 %vm1557_vm1, %v9164_v4  ;;  %vm3995_vm9 = vcmp.ge.f32.partialorder %v3295_v12, 0.0 }
 0x243   : > { %v7730_v15 = vpack.c.bf16 %v4572_v13, %v4572_v13  ;;  %v4766_v16 = vsel %vm3994_vm7, %v3292_v2, %v4380_v11  ;;  %v4381_v18 = vmul.f32 0.01, %v3295_v12  ;;  %8516 = vmatprep.mubr.msk.bf16.mxu0 %vm9231_vm0, %v9230_v1  ;;  %8904 = vmatprep.mubr.msk.bf16.mxu1 %vm9231_vm0, %v9230_v1 }
 0x244   : > { %v4573_v19 = vsel %vm3801_vm8, %v2519_v8, %v4187_v14  ;;  %v7924_v20 = vpack.c.bf16 %v4766_v16, %v4766_v16 }
 0x245   : > { %6503 = vst.msk [vmem:[%s9521_s29 + $0x158] sm:$0xf] %vm6416_vm4, %v7730_v15  ;;  %v7731_v21 = vpack.c.bf16 %v4573_v19, %v4573_v19  ;;  %v4767_v22 = vsel %vm3995_vm9, %v3295_v12, %v4381_v18  ;;  %v2523_v23 = vpop.f32.mrb[176].mxu0  ;;  %v3299_v24 = vpop.f32.mrb[176].mxu1  ;;  %v9169_v19 = vld [vmem:[%s9287_s24 + $0x248] sm:$0xff]  }
 0x246   : > { %6697 = vst.msk [vmem:[%s9521_s29 + $0x460] sm:$0xf] %vm6416_vm4, %v7924_v20  ;;  %v7925_v25 = vpack.c.bf16 %v4767_v22, %v4767_v22  ;;  %v2524_v26 = vadd.f32 %v10346_v9, %v2523_v23  ;;  %v8410_v27 = vpop.f32.mrb[177].mxu0  ;;  %v3300_v28 = vadd.f32 %v10346_v9, %v3299_v24  ;;  %v8798_v30 = vpop.f32.mrb[177].mxu1 }
 0x247   : > { %6504 = vst.msk [vmem:[%s9521_s29 + $0x15c] sm:$0xf] %vm6416_vm4, %v7731_v21  ;;  %v2526_v32 = vpop.f32.mrb[178].mxu0  ;;  %v3302_v33 = vpop.f32.mrb[178].mxu1  ;;  %v9170_v21 = vld [vmem:[%s9287_s24 + $0x550] sm:$0xff]  }
 0x248   : > { %6698 = vst.msk [vmem:[%s9521_s29 + $0x464] sm:$0xf] %vm6416_vm4, %v7925_v25  ;;  %vm3802_vm10 = vcmp.ge.f32.partialorder %v2524_v26, 0.0  ;;  %v4188_v34 = vmul.f32 0.01, %v2524_v26  ;;  %v2527_v35 = vadd.f32 %v10346_v9, %v2526_v32  ;;  %v8411_v36 = vpop.f32.mrb[179].mxu0  ;;  %v3303_v40 = vadd.f32 %v10346_v9, %v3302_v33 }
 0x249   : > { %vm3996_vm11 = vcmp.ge.f32.partialorder %v3300_v28, 0.0  ;;  %v8799_v37 = vpop.f32.mrb[179].mxu1  ;;  %v4382_v38 = vmul.f32 0.01, %v3300_v28 }
 0x24a   : > { %v4574_v41 = vsel %vm3802_vm10, %v2524_v26, %v4188_v34  ;;  %vm3803_vm12 = vcmp.ge.f32.partialorder %v2527_v35, 0.0  ;;  %v4189_v42 = vmul.f32 0.01, %v2527_v35  ;;  %8517 = vmatmul.mubr.msk.bf16.gmra.mrb[28].mxu0 %vm1557_vm1, %v9165_v29  ;;  %8905 = vmatmul.mubr.msk.bf16.gmra.mrb[28].mxu1 %vm1557_vm1, %v9166_v31  ;;  %vm3997_vm13 = vcmp.ge.f32.partialorder %v3303_v40, 0.0 }
 0x24b   : > { %v7732_v58 = vpack.c.bf16 %v4574_v41, %v4574_v41  ;;  %v4768_v43 = vsel %vm3996_vm11, %v3300_v28, %v4382_v38  ;;  %v4383_v44 = vmul.f32 0.01, %v3303_v40  ;;  %8520 = vmatprep.mubr.msk.bf16.mxu0 %vm9231_vm0, %v9230_v1  ;;  %8908 = vmatprep.mubr.msk.bf16.mxu1 %vm9231_vm0, %v9230_v1 }
 0x24c   : > { %v4575_v45 = vsel %vm3803_vm12, %v2527_v35, %v4189_v42  ;;  %v7926_v46 = vpack.c.bf16 %v4768_v43, %v4768_v43 }
 0x24d   : > { %6505 = vst.msk [vmem:[%s9521_s29 + $0x160] sm:$0xf] %vm6416_vm4, %v7732_v58  ;;  %v7733_v47 = vpack.c.bf16 %v4575_v45, %v4575_v45  ;;  %v4769_v48 = vsel %vm3997_vm13, %v3303_v40, %v4383_v44  ;;  %v2531_v49 = vpop.f32.mrb[180].mxu0  ;;  %v3307_v50 = vpop.f32.mrb[180].mxu1  ;;  %v9171_v45 = vld [vmem:[%s9287_s24 + $0x250] sm:$0xff]  }
 0x24e   : > { %6699 = vst.msk [vmem:[%s9521_s29 + $0x468] sm:$0xf] %vm6416_vm4, %v7926_v46  ;;  %v7927_v51 = vpack.c.bf16 %v4769_v48, %v4769_v48  ;;  %v2532_v52 = vadd.f32 %v10346_v9, %v2531_v49  ;;  %v8414_v53 = vpop.f32.mrb[181].mxu0  ;;  %v3308_v54 = vadd.f32 %v10346_v9, %v3307_v50  ;;  %v8802_v56 = vpop.f32.mrb[181].mxu1 }
 0x24f   : > { %6506 = vst.msk [vmem:[%s9521_s29 + $0x164] sm:$0xf] %vm6416_vm4, %v7733_v47  ;;  %v2534_v59 = vpop.f32.mrb[182].mxu0  ;;  %v3310_v60 = vpop.f32.mrb[182].mxu1  ;;  %v9172_v47 = vld [vmem:[%s9287_s24 + $0x558] sm:$0xff]  }
 0x250   : > { %6700 = vst.msk [vmem:[%s9521_s29 + $0x46c] sm:$0xf] %vm6416_vm4, %v7927_v51  ;;  %vm3804_vm14 = vcmp.ge.f32.partialorder %v2532_v52, 0.0  ;;  %v4190_v61 = vmul.f32 0.01, %v2532_v52  ;;  %v2535_v62 = vadd.f32 %v10346_v9, %v2534_v59  ;;  %v8415_v63 = vpop.f32.mrb[183].mxu0  ;;  %v3311_v17 = vadd.f32 %v10346_v9, %v3310_v60 }
 0x251   : > { %vm3998_vm15 = vcmp.ge.f32.partialorder %v3308_v54, 0.0  ;;  %v8803_v0 = vpop.f32.mrb[183].mxu1  ;;  %v4384_v2 = vmul.f32 0.01, %v3308_v54 }
 0x252   : > { %v4576_v3 = vsel %vm3804_vm14, %v2532_v52, %v4190_v61  ;;  %vm3805_vm2 = vcmp.ge.f32.partialorder %v2535_v62, 0.0  ;;  %v4191_v4 = vmul.f32 0.01, %v2535_v62  ;;  %8521 = vmatmul.mubr.msk.bf16.gmra.mrb[32].mxu0 %vm1557_vm1, %v9167_v55  ;;  %8909 = vmatmul.mubr.msk.bf16.gmra.mrb[32].mxu1 %vm1557_vm1, %v9168_v57  ;;  %vm3999_vm3 = vcmp.ge.f32.partialorder %v3311_v17, 0.0 }
 0x253   : > { %v7734_v5 = vpack.c.bf16 %v4576_v3, %v4576_v3  ;;  %v4770_v6 = vsel %vm3998_vm15, %v3308_v54, %v4384_v2  ;;  %v4385_v7 = vmul.f32 0.01, %v3311_v17  ;;  %8524 = vmatprep.mubr.msk.bf16.mxu0 %vm9231_vm0, %v9230_v1  ;;  %8912 = vmatprep.mubr.msk.bf16.mxu1 %vm9231_vm0, %v9230_v1 }
 0x254   : > { %v4577_v8 = vsel %vm3805_vm2, %v2535_v62, %v4191_v4  ;;  %v7928_v10 = vpack.c.bf16 %v4770_v6, %v4770_v6 }
 0x255   : > { %6507 = vst.msk [vmem:[%s9521_s29 + $0x168] sm:$0xf] %vm6416_vm4, %v7734_v5  ;;  %v7735_v39 = vpack.c.bf16 %v4577_v8, %v4577_v8  ;;  %v4771_v11 = vsel %vm3999_vm3, %v3311_v17, %v4385_v7  ;;  %v2539_v12 = vpop.f32.mrb[184].mxu0  ;;  %v3315_v13 = vpop.f32.mrb[184].mxu1  ;;  %v9173_v8 = vld [vmem:[%s9287_s24 + $0x258] sm:$0xff]  }
 0x256   : > { %6701 = vst.msk [vmem:[%s9521_s29 + $0x470] sm:$0xf] %vm6416_vm4, %v7928_v10  ;;  %v7929_v14 = vpack.c.bf16 %v4771_v11, %v4771_v11  ;;  %v2540_v15 = vadd.f32 %v10346_v9, %v2539_v12  ;;  %v8418_v16 = vpop.f32.mrb[185].mxu0  ;;  %v3316_v18 = vadd.f32 %v10346_v9, %v3315_v13  ;;  %v8806_v20 = vpop.f32.mrb[185].mxu1 }
 0x257   : > { %6508 = vst.msk [vmem:[%s9521_s29 + $0x16c] sm:$0xf] %vm6416_vm4, %v7735_v39  ;;  %v2542_v22 = vpop.f32.mrb[186].mxu0  ;;  %v3318_v23 = vpop.f32.mrb[186].mxu1  ;;  %v9174_v39 = vld [vmem:[%s9287_s24 + $0x560] sm:$0xff]  }
 0x258   : > { %6702 = vst.msk [vmem:[%s9521_s29 + $0x474] sm:$0xf] %vm6416_vm4, %v7929_v14  ;;  %vm3806_vm5 = vcmp.ge.f32.partialorder %v2540_v15, 0.0  ;;  %v4192_v24 = vmul.f32 0.01, %v2540_v15  ;;  %v2543_v25 = vadd.f32 %v10346_v9, %v2542_v22  ;;  %v8419_v26 = vpop.f32.mrb[187].mxu0  ;;  %v3319_v29 = vadd.f32 %v10346_v9, %v3318_v23 }
 0x259   : > { %vm4000_vm6 = vcmp.ge.f32.partialorder %v3316_v18, 0.0  ;;  %v8807_v27 = vpop.f32.mrb[187].mxu1  ;;  %v4386_v28 = vmul.f32 0.01, %v3316_v18 }
 0x25a   : > { %v4578_v30 = vsel %vm3806_vm5, %v2540_v15, %v4192_v24  ;;  %vm3807_vm7 = vcmp.ge.f32.partialorder %v2543_v25, 0.0  ;;  %v4193_v31 = vmul.f32 0.01, %v2543_v25  ;;  %8525 = vmatmul.mubr.msk.bf16.gmra.mrb[36].mxu0 %vm1557_vm1, %v9169_v19  ;;  %8913 = vmatmul.mubr.msk.bf16.gmra.mrb[36].mxu1 %vm1557_vm1, %v9170_v21  ;;  %vm4001_vm8 = vcmp.ge.f32.partialorder %v3319_v29, 0.0 }
 0x25b   : > { %v7736_v32 = vpack.c.bf16 %v4578_v30, %v4578_v30  ;;  %v4772_v33 = vsel %vm4000_vm6, %v3316_v18, %v4386_v28  ;;  %v4387_v34 = vmul.f32 0.01, %v3319_v29  ;;  %8528 = vmatprep.mubr.msk.bf16.mxu0 %vm9231_vm0, %v9230_v1  ;;  %8916 = vmatprep.mubr.msk.bf16.mxu1 %vm9231_vm0, %v9230_v1 }
 0x25c   : > { %v4579_v35 = vsel %vm3807_vm7, %v2543_v25, %v4193_v31  ;;  %v7930_v36 = vpack.c.bf16 %v4772_v33, %v4772_v33 }
 0x25d   : > { %6509 = vst.msk [vmem:[%s9521_s29 + $0x170] sm:$0xf] %vm6416_vm4, %v7736_v32  ;;  %v7737_v37 = vpack.c.bf16 %v4579_v35, %v4579_v35  ;;  %v4773_v38 = vsel %vm4001_vm8, %v3319_v29, %v4387_v34  ;;  %v2547_v40 = vpop.f32.mrb[188].mxu0  ;;  %v3323_v41 = vpop.f32.mrb[188].mxu1  ;;  %v9175_v35 = vld [vmem:[%s9287_s24 + $0x260] sm:$0xff]  }
 0x25e   : > { %6703 = vst.msk [vmem:[%s9521_s29 + $0x478] sm:$0xf] %vm6416_vm4, %v7930_v36  ;;  %v7931_v42 = vpack.c.bf16 %v4773_v38, %v4773_v38  ;;  %v2548_v58 = vadd.f32 %v10346_v9, %v2547_v40  ;;  %v8422_v43 = vpop.f32.mrb[189].mxu0  ;;  %v3324_v44 = vadd.f32 %v10346_v9, %v3323_v41  ;;  %v8810_v46 = vpop.f32.mrb[189].mxu1 }
 0x25f   : > { %6510 = vst.msk [vmem:[%s9521_s29 + $0x174] sm:$0xf] %vm6416_vm4, %v7737_v37  ;;  %v2550_v48 = vpop.f32.mrb[190].mxu0  ;;  %v3326_v49 = vpop.f32.mrb[190].mxu1  ;;  %v9176_v37 = vld [vmem:[%s9287_s24 + $0x568] sm:$0xff]  }
 0x260   : > { %6704 = vst.msk [vmem:[%s9521_s29 + $0x47c] sm:$0xf] %vm6416_vm4, %v7931_v42  ;;  %vm3808_vm9 = vcmp.ge.f32.partialorder %v2548_v58, 0.0  ;;  %v4194_v50 = vmul.f32 0.01, %v2548_v58  ;;  %v2551_v51 = vadd.f32 %v10346_v9, %v2550_v48  ;;  %v8423_v52 = vpop.f32.mrb[191].mxu0  ;;  %v3327_v55 = vadd.f32 %v10346_v9, %v3326_v49 }
 0x261   : > { %vm4002_vm10 = vcmp.ge.f32.partialorder %v3324_v44, 0.0  ;;  %v8811_v53 = vpop.f32.mrb[191].mxu1  ;;  %v4388_v54 = vmul.f32 0.01, %v3324_v44 }
 0x262   : > { %v4580_v56 = vsel %vm3808_vm9, %v2548_v58, %v4194_v50  ;;  %vm3809_vm11 = vcmp.ge.f32.partialorder %v2551_v51, 0.0  ;;  %v4195_v57 = vmul.f32 0.01, %v2551_v51  ;;  %8529 = vmatmul.mubr.msk.bf16.gmra.mrb[40].mxu0 %vm1557_vm1, %v9171_v45  ;;  %8917 = vmatmul.mubr.msk.bf16.gmra.mrb[40].mxu1 %vm1557_vm1, %v9172_v47  ;;  %vm4003_vm12 = vcmp.ge.f32.partialorder %v3327_v55, 0.0 }
 0x263   : > { %v7738_v59 = vpack.c.bf16 %v4580_v56, %v4580_v56  ;;  %v4774_v60 = vsel %vm4002_vm10, %v3324_v44, %v4388_v54  ;;  %v4389_v61 = vmul.f32 0.01, %v3327_v55  ;;  %8532 = vmatprep.mubr.msk.bf16.mxu0 %vm9231_vm0, %v9230_v1  ;;  %8920 = vmatprep.mubr.msk.bf16.mxu1 %vm9231_vm0, %v9230_v1 }
 0x264   : > { %v4581_v62 = vsel %vm3809_vm11, %v2551_v51, %v4195_v57  ;;  %v7932_v63 = vpack.c.bf16 %v4774_v60, %v4774_v60 }
 0x265   : > { %6511 = vst.msk [vmem:[%s9521_s29 + $0x178] sm:$0xf] %vm6416_vm4, %v7738_v59  ;;  %v7739_v0 = vpack.c.bf16 %v4581_v62, %v4581_v62  ;;  %v4775_v2 = vsel %vm4003_vm12, %v3327_v55, %v4389_v61  ;;  %v2555_v17 = vpop.f32.mrb[192].mxu0  ;;  %v3331_v3 = vpop.f32.mrb[192].mxu1  ;;  %v9177_v62 = vld [vmem:[%s9287_s24 + $0x268] sm:$0xff]  }
 0x266   : > { %6705 = vst.msk [vmem:[%s9521_s29 + $0x480] sm:$0xf] %vm6416_vm4, %v7932_v63  ;;  %v7933_v4 = vpack.c.bf16 %v4775_v2, %v4775_v2  ;;  %v2556_v5 = vadd.f32 %v10346_v9, %v2555_v17  ;;  %v8426_v6 = vpop.f32.mrb[193].mxu0  ;;  %v3332_v7 = vadd.f32 %v10346_v9, %v3331_v3  ;;  %v8814_v10 = vpop.f32.mrb[193].mxu1 }
 0x267   : > { %6512 = vst.msk [vmem:[%s9521_s29 + $0x17c] sm:$0xf] %vm6416_vm4, %v7739_v0  ;;  %v2558_v11 = vpop.f32.mrb[194].mxu0  ;;  %v3334_v12 = vpop.f32.mrb[194].mxu1  ;;  %v9178_v0 = vld [vmem:[%s9287_s24 + $0x570] sm:$0xff]  }
 0x268   : > { %6706 = vst.msk [vmem:[%s9521_s29 + $0x484] sm:$0xf] %vm6416_vm4, %v7933_v4  ;;  %vm3810_vm13 = vcmp.ge.f32.partialorder %v2556_v5, 0.0  ;;  %v4196_v13 = vmul.f32 0.01, %v2556_v5  ;;  %v2559_v14 = vadd.f32 %v10346_v9, %v2558_v11  ;;  %v8427_v15 = vpop.f32.mrb[195].mxu0  ;;  %v3335_v19 = vadd.f32 %v10346_v9, %v3334_v12 }
 0x269   : > { %vm4004_vm14 = vcmp.ge.f32.partialorder %v3332_v7, 0.0  ;;  %v8815_v16 = vpop.f32.mrb[195].mxu1  ;;  %v4390_v18 = vmul.f32 0.01, %v3332_v7 }
 0x26a   : > { %v4582_v20 = vsel %vm3810_vm13, %v2556_v5, %v4196_v13  ;;  %vm3811_vm15 = vcmp.ge.f32.partialorder %v2559_v14, 0.0  ;;  %v4197_v21 = vmul.f32 0.01, %v2559_v14  ;;  %8533 = vmatmul.mubr.msk.bf16.gmra.mrb[44].mxu0 %vm1557_vm1, %v9173_v8  ;;  %8921 = vmatmul.mubr.msk.bf16.gmra.mrb[44].mxu1 %vm1557_vm1, %v9174_v39  ;;  %vm4005_vm2 = vcmp.ge.f32.partialorder %v3335_v19, 0.0 }
 0x26b   : > { %v7740_v22 = vpack.c.bf16 %v4582_v20, %v4582_v20  ;;  %v4776_v23 = vsel %vm4004_vm14, %v3332_v7, %v4390_v18  ;;  %v4391_v24 = vmul.f32 0.01, %v3335_v19  ;;  %8536 = vmatprep.mubr.msk.bf16.mxu0 %vm9231_vm0, %v9230_v1  ;;  %8924 = vmatprep.mubr.msk.bf16.mxu1 %vm9231_vm0, %v9230_v1 }
 0x26c   : > { %v4583_v25 = vsel %vm3811_vm15, %v2559_v14, %v4197_v21  ;;  %v7934_v26 = vpack.c.bf16 %v4776_v23, %v4776_v23 }
 0x26d   : > { %6513 = vst.msk [vmem:[%s9521_s29 + $0x180] sm:$0xf] %vm6416_vm4, %v7740_v22  ;;  %v7741_v27 = vpack.c.bf16 %v4583_v25, %v4583_v25  ;;  %v4777_v28 = vsel %vm4005_vm2, %v3335_v19, %v4391_v24  ;;  %v2563_v29 = vpop.f32.mrb[196].mxu0  ;;  %v3339_v30 = vpop.f32.mrb[196].mxu1  ;;  %v9179_v25 = vld [vmem:[%s9287_s24 + $0x270] sm:$0xff]  }
 0x26e   : > { %6707 = vst.msk [vmem:[%s9521_s29 + $0x488] sm:$0xf] %vm6416_vm4, %v7934_v26  ;;  %v7935_v31 = vpack.c.bf16 %v4777_v28, %v4777_v28  ;;  %v2564_v32 = vadd.f32 %v10346_v9, %v2563_v29  ;;  %v8430_v33 = vpop.f32.mrb[197].mxu0  ;;  %v3340_v34 = vadd.f32 %v10346_v9, %v3339_v30  ;;  %v8818_v36 = vpop.f32.mrb[197].mxu1 }
 0x26f   : > { %6514 = vst.msk [vmem:[%s9521_s29 + $0x184] sm:$0xf] %vm6416_vm4, %v7741_v27  ;;  %v2566_v38 = vpop.f32.mrb[198].mxu0  ;;  %v3342_v40 = vpop.f32.mrb[198].mxu1  ;;  %v9180_v27 = vld [vmem:[%s9287_s24 + $0x578] sm:$0xff]  }
 0x270   : > { %6708 = vst.msk [vmem:[%s9521_s29 + $0x48c] sm:$0xf] %vm6416_vm4, %v7935_v31  ;;  %vm3812_vm3 = vcmp.ge.f32.partialorder %v2564_v32, 0.0  ;;  %v4198_v41 = vmul.f32 0.01, %v2564_v32  ;;  %v2567_v42 = vadd.f32 %v10346_v9, %v2566_v38  ;;  %v8431_v58 = vpop.f32.mrb[199].mxu0  ;;  %v3343_v45 = vadd.f32 %v10346_v9, %v3342_v40 }
 0x271   : > { %vm4006_vm5 = vcmp.ge.f32.partialorder %v3340_v34, 0.0  ;;  %v8819_v43 = vpop.f32.mrb[199].mxu1  ;;  %v4392_v44 = vmul.f32 0.01, %v3340_v34 }
 0x272   : > { %v4584_v46 = vsel %vm3812_vm3, %v2564_v32, %v4198_v41  ;;  %vm3813_vm6 = vcmp.ge.f32.partialorder %v2567_v42, 0.0  ;;  %v4199_v47 = vmul.f32 0.01, %v2567_v42  ;;  %8537 = vmatmul.mubr.msk.bf16.gmra.mrb[48].mxu0 %vm1557_vm1, %v9175_v35  ;;  %8925 = vmatmul.mubr.msk.bf16.gmra.mrb[48].mxu1 %vm1557_vm1, %v9176_v37  ;;  %vm4007_vm7 = vcmp.ge.f32.partialorder %v3343_v45, 0.0 }
 0x273   : > { %v7742_v48 = vpack.c.bf16 %v4584_v46, %v4584_v46  ;;  %v4778_v49 = vsel %vm4006_vm5, %v3340_v34, %v4392_v44  ;;  %v4393_v50 = vmul.f32 0.01, %v3343_v45  ;;  %8540 = vmatprep.mubr.msk.bf16.mxu0 %vm9231_vm0, %v9230_v1  ;;  %8928 = vmatprep.mubr.msk.bf16.mxu1 %vm9231_vm0, %v9230_v1 }
 0x274   : > { %v4585_v51 = vsel %vm3813_vm6, %v2567_v42, %v4199_v47  ;;  %v7936_v52 = vpack.c.bf16 %v4778_v49, %v4778_v49 }
 0x275   : > { %6515 = vst.msk [vmem:[%s9521_s29 + $0x188] sm:$0xf] %vm6416_vm4, %v7742_v48  ;;  %v7743_v53 = vpack.c.bf16 %v4585_v51, %v4585_v51  ;;  %v4779_v54 = vsel %vm4007_vm7, %v3343_v45, %v4393_v50  ;;  %v2571_v55 = vpop.f32.mrb[200].mxu0  ;;  %v3347_v56 = vpop.f32.mrb[200].mxu1  ;;  %v9181_v51 = vld [vmem:[%s9287_s24 + $0x278] sm:$0xff]  }
 0x276   : > { %6709 = vst.msk [vmem:[%s9521_s29 + $0x490] sm:$0xf] %vm6416_vm4, %v7936_v52  ;;  %v7937_v57 = vpack.c.bf16 %v4779_v54, %v4779_v54  ;;  %v2572_v59 = vadd.f32 %v10346_v9, %v2571_v55  ;;  %v8434_v60 = vpop.f32.mrb[201].mxu0  ;;  %v3348_v61 = vadd.f32 %v10346_v9, %v3347_v56  ;;  %v8822_v63 = vpop.f32.mrb[201].mxu1 }
 0x277   : > { %6516 = vst.msk [vmem:[%s9521_s29 + $0x18c] sm:$0xf] %vm6416_vm4, %v7743_v53  ;;  %v2574_v2 = vpop.f32.mrb[202].mxu0  ;;  %v3350_v17 = vpop.f32.mrb[202].mxu1  ;;  %v9182_v53 = vld [vmem:[%s9287_s24 + $0x580] sm:$0xff]  }
 0x278   : > { %6710 = vst.msk [vmem:[%s9521_s29 + $0x494] sm:$0xf] %vm6416_vm4, %v7937_v57  ;;  %vm3814_vm8 = vcmp.ge.f32.partialorder %v2572_v59, 0.0  ;;  %v4200_v3 = vmul.f32 0.01, %v2572_v59  ;;  %v2575_v4 = vadd.f32 %v10346_v9, %v2574_v2  ;;  %v8435_v5 = vpop.f32.mrb[203].mxu0  ;;  %v3351_v8 = vadd.f32 %v10346_v9, %v3350_v17 }
 0x279   : > { %vm4008_vm9 = vcmp.ge.f32.partialorder %v3348_v61, 0.0  ;;  %v8823_v6 = vpop.f32.mrb[203].mxu1  ;;  %v4394_v7 = vmul.f32 0.01, %v3348_v61 }
 0x27a   : > { %v4586_v10 = vsel %vm3814_vm8, %v2572_v59, %v4200_v3  ;;  %vm3815_vm10 = vcmp.ge.f32.partialorder %v2575_v4, 0.0  ;;  %v4201_v39 = vmul.f32 0.01, %v2575_v4  ;;  %8541 = vmatmul.mubr.msk.bf16.gmra.mrb[52].mxu0 %vm1557_vm1, %v9177_v62  ;;  %8929 = vmatmul.mubr.msk.bf16.gmra.mrb[52].mxu1 %vm1557_vm1, %v9178_v0  ;;  %vm4009_vm11 = vcmp.ge.f32.partialorder %v3351_v8, 0.0 }
 0x27b   : > { %v7744_v11 = vpack.c.bf16 %v4586_v10, %v4586_v10  ;;  %v4780_v12 = vsel %vm4008_vm9, %v3348_v61, %v4394_v7  ;;  %v4395_v13 = vmul.f32 0.01, %v3351_v8  ;;  %8544 = vmatprep.mubr.msk.bf16.mxu0 %vm9231_vm0, %v9230_v1  ;;  %8932 = vmatprep.mubr.msk.bf16.mxu1 %vm9231_vm0, %v9230_v1 }
 0x27c   : > { %v4587_v14 = vsel %vm3815_vm10, %v2575_v4, %v4201_v39  ;;  %v7938_v15 = vpack.c.bf16 %v4780_v12, %v4780_v12 }
 0x27d   : > { %6517 = vst.msk [vmem:[%s9521_s29 + $0x190] sm:$0xf] %vm6416_vm4, %v7744_v11  ;;  %v7745_v16 = vpack.c.bf16 %v4587_v14, %v4587_v14  ;;  %v4781_v18 = vsel %vm4009_vm11, %v3351_v8, %v4395_v13  ;;  %v2579_v19 = vpop.f32.mrb[204].mxu0  ;;  %v3355_v20 = vpop.f32.mrb[204].mxu1  ;;  %v9183_v14 = vld [vmem:[%s9287_s24 + $0x280] sm:$0xff]  }
 0x27e   : > { %6711 = vst.msk [vmem:[%s9521_s29 + $0x498] sm:$0xf] %vm6416_vm4, %v7938_v15  ;;  %v7939_v21 = vpack.c.bf16 %v4781_v18, %v4781_v18  ;;  %v2580_v22 = vadd.f32 %v10346_v9, %v2579_v19  ;;  %v8438_v23 = vpop.f32.mrb[205].mxu0  ;;  %v3356_v24 = vadd.f32 %v10346_v9, %v3355_v20  ;;  %v8826_v26 = vpop.f32.mrb[205].mxu1 }
 0x27f   : > { %6518 = vst.msk [vmem:[%s9521_s29 + $0x194] sm:$0xf] %vm6416_vm4, %v7745_v16  ;;  %v2582_v28 = vpop.f32.mrb[206].mxu0  ;;  %v3358_v29 = vpop.f32.mrb[206].mxu1  ;;  %v9184_v16 = vld [vmem:[%s9287_s24 + $0x588] sm:$0xff]  }
 0x280   : > { %6712 = vst.msk [vmem:[%s9521_s29 + $0x49c] sm:$0xf] %vm6416_vm4, %v7939_v21  ;;  %vm3816_vm12 = vcmp.ge.f32.partialorder %v2580_v22, 0.0  ;;  %v4202_v30 = vmul.f32 0.01, %v2580_v22  ;;  %v2583_v31 = vadd.f32 %v10346_v9, %v2582_v28  ;;  %v8439_v32 = vpop.f32.mrb[207].mxu0  ;;  %v3359_v35 = vadd.f32 %v10346_v9, %v3358_v29 }
 0x281   : > { %vm4010_vm13 = vcmp.ge.f32.partialorder %v3356_v24, 0.0  ;;  %v8827_v33 = vpop.f32.mrb[207].mxu1  ;;  %v4396_v34 = vmul.f32 0.01, %v3356_v24 }
 0x282   : > { %v4588_v36 = vsel %vm3816_vm12, %v2580_v22, %v4202_v30  ;;  %vm3817_vm14 = vcmp.ge.f32.partialorder %v2583_v31, 0.0  ;;  %v4203_v37 = vmul.f32 0.01, %v2583_v31  ;;  %8545 = vmatmul.mubr.msk.bf16.gmra.mrb[56].mxu0 %vm1557_vm1, %v9179_v25  ;;  %8933 = vmatmul.mubr.msk.bf16.gmra.mrb[56].mxu1 %vm1557_vm1, %v9180_v27  ;;  %vm4011_vm15 = vcmp.ge.f32.partialorder %v3359_v35, 0.0 }
 0x283   : > { %v7746_v38 = vpack.c.bf16 %v4588_v36, %v4588_v36  ;;  %v4782_v40 = vsel %vm4010_vm13, %v3356_v24, %v4396_v34  ;;  %v4397_v41 = vmul.f32 0.01, %v3359_v35  ;;  %8548 = vmatprep.mubr.msk.bf16.mxu0 %vm9231_vm0, %v9230_v1  ;;  %8936 = vmatprep.mubr.msk.bf16.mxu1 %vm9231_vm0, %v9230_v1 }
 0x284   : > { %v4589_v42 = vsel %vm3817_vm14, %v2583_v31, %v4203_v37  ;;  %v7940_v58 = vpack.c.bf16 %v4782_v40, %v4782_v40 }
 0x285   : > { %6519 = vst.msk [vmem:[%s9521_s29 + $0x198] sm:$0xf] %vm6416_vm4, %v7746_v38  ;;  %v7747_v43 = vpack.c.bf16 %v4589_v42, %v4589_v42  ;;  %v4783_v44 = vsel %vm4011_vm15, %v3359_v35, %v4397_v41  ;;  %v2587_v45 = vpop.f32.mrb[208].mxu0  ;;  %v3363_v46 = vpop.f32.mrb[208].mxu1  ;;  %v9185_v42 = vld [vmem:[%s9287_s24 + $0x288] sm:$0xff]  }
 0x286   : > { %6713 = vst.msk [vmem:[%s9521_s29 + $0x4a0] sm:$0xf] %vm6416_vm4, %v7940_v58  ;;  %v7941_v47 = vpack.c.bf16 %v4783_v44, %v4783_v44  ;;  %v2588_v48 = vadd.f32 %v10346_v9, %v2587_v45  ;;  %v8442_v49 = vpop.f32.mrb[209].mxu0  ;;  %v3364_v50 = vadd.f32 %v10346_v9, %v3363_v46  ;;  %v8830_v52 = vpop.f32.mrb[209].mxu1 }
 0x287   : > { %6520 = vst.msk [vmem:[%s9521_s29 + $0x19c] sm:$0xf] %vm6416_vm4, %v7747_v43  ;;  %v2590_v54 = vpop.f32.mrb[210].mxu0  ;;  %v3366_v55 = vpop.f32.mrb[210].mxu1  ;;  %v9186_v43 = vld [vmem:[%s9287_s24 + $0x590] sm:$0xff]  }
 0x288   : > { %6714 = vst.msk [vmem:[%s9521_s29 + $0x4a4] sm:$0xf] %vm6416_vm4, %v7941_v47  ;;  %vm3818_vm2 = vcmp.ge.f32.partialorder %v2588_v48, 0.0  ;;  %v4204_v56 = vmul.f32 0.01, %v2588_v48  ;;  %v2591_v57 = vadd.f32 %v10346_v9, %v2590_v54  ;;  %v8443_v59 = vpop.f32.mrb[211].mxu0  ;;  %v3367_v62 = vadd.f32 %v10346_v9, %v3366_v55 }
 0x289   : > { %vm4012_vm3 = vcmp.ge.f32.partialorder %v3364_v50, 0.0  ;;  %v8831_v60 = vpop.f32.mrb[211].mxu1  ;;  %v4398_v61 = vmul.f32 0.01, %v3364_v50 }
 0x28a   : > { %v4590_v63 = vsel %vm3818_vm2, %v2588_v48, %v4204_v56  ;;  %vm3819_vm5 = vcmp.ge.f32.partialorder %v2591_v57, 0.0  ;;  %v4205_v0 = vmul.f32 0.01, %v2591_v57  ;;  %8549 = vmatmul.mubr.msk.bf16.gmra.mrb[60].mxu0 %vm1557_vm1, %v9181_v51  ;;  %8937 = vmatmul.mubr.msk.bf16.gmra.mrb[60].mxu1 %vm1557_vm1, %v9182_v53  ;;  %vm4013_vm6 = vcmp.ge.f32.partialorder %v3367_v62, 0.0 }
 0x28b   : > { %v7748_v2 = vpack.c.bf16 %v4590_v63, %v4590_v63  ;;  %v4784_v17 = vsel %vm4012_vm3, %v3364_v50, %v4398_v61  ;;  %v4399_v3 = vmul.f32 0.01, %v3367_v62  ;;  %8552 = vmatprep.mubr.msk.bf16.mxu0 %vm9231_vm0, %v9230_v1  ;;  %8940 = vmatprep.mubr.msk.bf16.mxu1 %vm9231_vm0, %v9230_v1 }
 0x28c   : > { %v4591_v4 = vsel %vm3819_vm5, %v2591_v57, %v4205_v0  ;;  %v7942_v5 = vpack.c.bf16 %v4784_v17, %v4784_v17  ;;  %v10631_v0 = vld [vmem:[%s11262_s2] ss:$0 sm:$0xff] }
 0x28d   : > { %6521 = vst.msk [vmem:[%s9521_s29 + $0x1a0] sm:$0xf] %vm6416_vm4, %v7748_v2  ;;  %v7749_v6 = vpack.c.bf16 %v4591_v4, %v4591_v4  ;;  %v4785_v7 = vsel %vm4013_vm6, %v3367_v62, %v4399_v3  ;;  %v2595_v8 = vpop.f32.mrb[212].mxu0  ;;  %v3371_v10 = vpop.f32.mrb[212].mxu1  ;;  %v9187_v4 = vld [vmem:[%s9287_s24 + $0x290] sm:$0xff]  }
 0x28e   : > { %6715 = vst.msk [vmem:[%s9521_s29 + $0x4a8] sm:$0xf] %vm6416_vm4, %v7942_v5  ;;  %v7943_v39 = vpack.c.bf16 %v4785_v7, %v4785_v7  ;;  %v2596_v11 = vadd.f32 %v10346_v9, %v2595_v8  ;;  %v8446_v12 = vpop.f32.mrb[213].mxu0  ;;  %v3372_v13 = vadd.f32 %v10346_v9, %v3371_v10  ;;  %v8834_v15 = vpop.f32.mrb[213].mxu1 }
 0x28f   : > { %6522 = vst.msk [vmem:[%s9521_s29 + $0x1a4] sm:$0xf] %vm6416_vm4, %v7749_v6  ;;  %v2598_v18 = vpop.f32.mrb[214].mxu0  ;;  %v3374_v19 = vpop.f32.mrb[214].mxu1  ;;  %v9188_v6 = vld [vmem:[%s9287_s24 + $0x598] sm:$0xff]  }
 0x290   : > { %6716 = vst.msk [vmem:[%s9521_s29 + $0x4ac] sm:$0xf] %vm6416_vm4, %v7943_v39  ;;  %vm3820_vm7 = vcmp.ge.f32.partialorder %v2596_v11, 0.0  ;;  %v4206_v20 = vmul.f32 0.01, %v2596_v11  ;;  %v2599_v21 = vadd.f32 %v10346_v9, %v2598_v18  ;;  %v8447_v22 = vpop.f32.mrb[215].mxu0  ;;  %v3375_v25 = vadd.f32 %v10346_v9, %v3374_v19 }
 0x291   : > { %vm4014_vm8 = vcmp.ge.f32.partialorder %v3372_v13, 0.0  ;;  %v8835_v23 = vpop.f32.mrb[215].mxu1  ;;  %v4400_v24 = vmul.f32 0.01, %v3372_v13 }
 0x292   : > { %v4592_v26 = vsel %vm3820_vm7, %v2596_v11, %v4206_v20  ;;  %vm3821_vm9 = vcmp.ge.f32.partialorder %v2599_v21, 0.0  ;;  %v4207_v27 = vmul.f32 0.01, %v2599_v21  ;;  %8553 = vmatmul.mubr.msk.bf16.gmra.mrb[64].mxu0 %vm1557_vm1, %v9183_v14  ;;  %8941 = vmatmul.mubr.msk.bf16.gmra.mrb[64].mxu1 %vm1557_vm1, %v9184_v16  ;;  %vm4015_vm10 = vcmp.ge.f32.partialorder %v3375_v25, 0.0 }
 0x293   : > { %v7750_v28 = vpack.c.bf16 %v4592_v26, %v4592_v26  ;;  %v4786_v29 = vsel %vm4014_vm8, %v3372_v13, %v4400_v24  ;;  %v4401_v30 = vmul.f32 0.01, %v3375_v25  ;;  %8556 = vmatprep.mubr.msk.bf16.mxu0 %vm9231_vm0, %v9230_v1  ;;  %8944 = vmatprep.mubr.msk.bf16.mxu1 %vm9231_vm0, %v9230_v1 }
 0x294   : > { %v4593_v31 = vsel %vm3821_vm9, %v2599_v21, %v4207_v27  ;;  %v7944_v32 = vpack.c.bf16 %v4786_v29, %v4786_v29 }
 0x295   : > { %6523 = vst.msk [vmem:[%s9521_s29 + $0x1a8] sm:$0xf] %vm6416_vm4, %v7750_v28  ;;  %v7751_v33 = vpack.c.bf16 %v4593_v31, %v4593_v31  ;;  %v4787_v34 = vsel %vm4015_vm10, %v3375_v25, %v4401_v30  ;;  %v2603_v35 = vpop.f32.mrb[216].mxu0  ;;  %v3379_v36 = vpop.f32.mrb[216].mxu1  ;;  %v9189_v31 = vld [vmem:[%s9287_s24 + $0x298] sm:$0xff]  }
 0x296   : > { %6717 = vst.msk [vmem:[%s9521_s29 + $0x4b0] sm:$0xf] %vm6416_vm4, %v7944_v32  ;;  %v7945_v37 = vpack.c.bf16 %v4787_v34, %v4787_v34  ;;  %v2604_v38 = vadd.f32 %v10346_v9, %v2603_v35  ;;  %v8450_v40 = vpop.f32.mrb[217].mxu0  ;;  %v3380_v41 = vadd.f32 %v10346_v9, %v3379_v36  ;;  %v8838_v58 = vpop.f32.mrb[217].mxu1 }
 0x297   : > { %6524 = vst.msk [vmem:[%s9521_s29 + $0x1ac] sm:$0xf] %vm6416_vm4, %v7751_v33  ;;  %v2606_v44 = vpop.f32.mrb[218].mxu0  ;;  %v3382_v45 = vpop.f32.mrb[218].mxu1  ;;  %v9190_v33 = vld [vmem:[%s9287_s24 + $0x5a0] sm:$0xff]  }
 0x298   : > { %6718 = vst.msk [vmem:[%s9521_s29 + $0x4b4] sm:$0xf] %vm6416_vm4, %v7945_v37  ;;  %vm3822_vm11 = vcmp.ge.f32.partialorder %v2604_v38, 0.0  ;;  %v4208_v46 = vmul.f32 0.01, %v2604_v38  ;;  %v2607_v47 = vadd.f32 %v10346_v9, %v2606_v44  ;;  %v8451_v48 = vpop.f32.mrb[219].mxu0  ;;  %v3383_v51 = vadd.f32 %v10346_v9, %v3382_v45 }
 0x299   : > { %vm4016_vm12 = vcmp.ge.f32.partialorder %v3380_v41, 0.0  ;;  %v8839_v49 = vpop.f32.mrb[219].mxu1  ;;  %v4402_v50 = vmul.f32 0.01, %v3380_v41 }
 0x29a   : > { %v4594_v52 = vsel %vm3822_vm11, %v2604_v38, %v4208_v46  ;;  %vm3823_vm13 = vcmp.ge.f32.partialorder %v2607_v47, 0.0  ;;  %v4209_v53 = vmul.f32 0.01, %v2607_v47  ;;  %8557 = vmatmul.mubr.msk.bf16.gmra.mrb[68].mxu0 %vm1557_vm1, %v9185_v42  ;;  %8945 = vmatmul.mubr.msk.bf16.gmra.mrb[68].mxu1 %vm1557_vm1, %v9186_v43  ;;  %vm4017_vm14 = vcmp.ge.f32.partialorder %v3383_v51, 0.0 }
 0x29b   : > { %v7752_v54 = vpack.c.bf16 %v4594_v52, %v4594_v52  ;;  %v4788_v55 = vsel %vm4016_vm12, %v3380_v41, %v4402_v50  ;;  %v4403_v56 = vmul.f32 0.01, %v3383_v51  ;;  %8560 = vmatprep.mubr.msk.bf16.mxu0 %vm9231_vm0, %v9230_v1  ;;  %8948 = vmatprep.mubr.msk.bf16.mxu1 %vm9231_vm0, %v9230_v1 }
 0x29c   : > { %v4595_v9 = vsel %vm3823_vm13, %v2607_v47, %v4209_v53  ;;  %v7946_v57 = vpack.c.bf16 %v4788_v55, %v4788_v55 }
 0x29d   : > { %6525 = vst.msk [vmem:[%s9521_s29 + $0x1b0] sm:$0xf] %vm6416_vm4, %v7752_v54  ;;  %v7753_v59 = vpack.c.bf16 %v4595_v9, %v4595_v9  ;;  %v4789_v60 = vsel %vm4017_vm14, %v3383_v51, %v4403_v56  ;;  %v2611_v61 = vpop.f32.mrb[220].mxu0  ;;  %v3387_v62 = vpop.f32.mrb[220].mxu1  ;;  %v9191_v9 = vld [vmem:[%s9287_s24 + $0x2a0] sm:$0xff]  }
 0x29e   : > { %6719 = vst.msk [vmem:[%s9521_s29 + $0x4b8] sm:$0xf] %vm6416_vm4, %v7946_v57  ;;  %v7947_v63 = vpack.c.bf16 %v4789_v60, %v4789_v60  ;;  %v2612_v2 = vadd.f32 %v10631_v0, %v2611_v61  ;;  %v8454_v17 = vpop.f32.mrb[221].mxu0  ;;  %v3388_v3 = vadd.f32 %v10631_v0, %v3387_v62  ;;  %v8842_v5 = vpop.f32.mrb[221].mxu1 }
 0x29f   : > { %6526 = vst.msk [vmem:[%s9521_s29 + $0x1b4] sm:$0xf] %vm6416_vm4, %v7753_v59  ;;  %v2614_v7 = vpop.f32.mrb[222].mxu0  ;;  %v3390_v8 = vpop.f32.mrb[222].mxu1  ;;  %v9192_v59 = vld [vmem:[%s9287_s24 + $0x5a8] sm:$0xff]  }
 0x2a0   : > { %6720 = vst.msk [vmem:[%s9521_s29 + $0x4bc] sm:$0xf] %vm6416_vm4, %v7947_v63  ;;  %vm3824_vm15 = vcmp.ge.f32.partialorder %v2612_v2, 0.0  ;;  %v4210_v10 = vmul.f32 0.01, %v2612_v2  ;;  %v2615_v39 = vadd.f32 %v10631_v0, %v2614_v7  ;;  %v8455_v11 = vpop.f32.mrb[223].mxu0  ;;  %v3391_v14 = vadd.f32 %v10631_v0, %v3390_v8 }
 0x2a1   : > { %vm4018_vm2 = vcmp.ge.f32.partialorder %v3388_v3, 0.0  ;;  %v8843_v12 = vpop.f32.mrb[223].mxu1  ;;  %v4404_v13 = vmul.f32 0.01, %v3388_v3 }
 0x2a2   : > { %v4596_v15 = vsel %vm3824_vm15, %v2612_v2, %v4210_v10  ;;  %vm3825_vm3 = vcmp.ge.f32.partialorder %v2615_v39, 0.0  ;;  %v4211_v16 = vmul.f32 0.01, %v2615_v39  ;;  %8561 = vmatmul.mubr.msk.bf16.gmra.mrb[72].mxu0 %vm1557_vm1, %v9187_v4  ;;  %8949 = vmatmul.mubr.msk.bf16.gmra.mrb[72].mxu1 %vm1557_vm1, %v9188_v6  ;;  %vm4019_vm5 = vcmp.ge.f32.partialorder %v3391_v14, 0.0 }
 0x2a3   : > { %v7754_v18 = vpack.c.bf16 %v4596_v15, %v4596_v15  ;;  %v4790_v19 = vsel %vm4018_vm2, %v3388_v3, %v4404_v13  ;;  %v4405_v20 = vmul.f32 0.01, %v3391_v14  ;;  %8564 = vmatprep.mubr.msk.bf16.mxu0 %vm9231_vm0, %v9230_v1  ;;  %8952 = vmatprep.mubr.msk.bf16.mxu1 %vm9231_vm0, %v9230_v1 }
 0x2a4   : > { %v4597_v21 = vsel %vm3825_vm3, %v2615_v39, %v4211_v16  ;;  %v7948_v22 = vpack.c.bf16 %v4790_v19, %v4790_v19 }
 0x2a5   : > { %6527 = vst.msk [vmem:[%s9521_s29 + $0x1b8] sm:$0xf] %vm6416_vm4, %v7754_v18  ;;  %v7755_v23 = vpack.c.bf16 %v4597_v21, %v4597_v21  ;;  %v4791_v24 = vsel %vm4019_vm5, %v3391_v14, %v4405_v20  ;;  %v2619_v25 = vpop.f32.mrb[224].mxu0  ;;  %v3395_v26 = vpop.f32.mrb[224].mxu1  ;;  %v9193_v21 = vld [vmem:[%s9287_s24 + $0x2a8] sm:$0xff]  }
 0x2a6   : > { %6721 = vst.msk [vmem:[%s9521_s29 + $0x4c0] sm:$0xf] %vm6416_vm4, %v7948_v22  ;;  %v7949_v27 = vpack.c.bf16 %v4791_v24, %v4791_v24  ;;  %v2620_v28 = vadd.f32 %v10631_v0, %v2619_v25  ;;  %v8458_v29 = vpop.f32.mrb[225].mxu0  ;;  %v3396_v30 = vadd.f32 %v10631_v0, %v3395_v26  ;;  %v8846_v32 = vpop.f32.mrb[225].mxu1 }
 0x2a7   : > { %6528 = vst.msk [vmem:[%s9521_s29 + $0x1bc] sm:$0xf] %vm6416_vm4, %v7755_v23  ;;  %v2622_v34 = vpop.f32.mrb[226].mxu0  ;;  %v3398_v35 = vpop.f32.mrb[226].mxu1  ;;  %v9194_v23 = vld [vmem:[%s9287_s24 + $0x5b0] sm:$0xff]  }
 0x2a8   : > { %6722 = vst.msk [vmem:[%s9521_s29 + $0x4c4] sm:$0xf] %vm6416_vm4, %v7949_v27  ;;  %vm3826_vm6 = vcmp.ge.f32.partialorder %v2620_v28, 0.0  ;;  %v4212_v36 = vmul.f32 0.01, %v2620_v28  ;;  %v2623_v37 = vadd.f32 %v10631_v0, %v2622_v34  ;;  %v8459_v38 = vpop.f32.mrb[227].mxu0  ;;  %v3399_v42 = vadd.f32 %v10631_v0, %v3398_v35 }
 0x2a9   : > { %vm4020_vm7 = vcmp.ge.f32.partialorder %v3396_v30, 0.0  ;;  %v8847_v40 = vpop.f32.mrb[227].mxu1  ;;  %v4406_v41 = vmul.f32 0.01, %v3396_v30 }
 0x2aa   : > { %v4598_v58 = vsel %vm3826_vm6, %v2620_v28, %v4212_v36  ;;  %vm3827_vm8 = vcmp.ge.f32.partialorder %v2623_v37, 0.0  ;;  %v4213_v43 = vmul.f32 0.01, %v2623_v37  ;;  %8565 = vmatmul.mubr.msk.bf16.gmra.mrb[76].mxu0 %vm1557_vm1, %v9189_v31  ;;  %8953 = vmatmul.mubr.msk.bf16.gmra.mrb[76].mxu1 %vm1557_vm1, %v9190_v33  ;;  %vm4021_vm9 = vcmp.ge.f32.partialorder %v3399_v42, 0.0 }
 0x2ab   : > { %v7756_v44 = vpack.c.bf16 %v4598_v58, %v4598_v58  ;;  %v4792_v45 = vsel %vm4020_vm7, %v3396_v30, %v4406_v41  ;;  %v4407_v46 = vmul.f32 0.01, %v3399_v42  ;;  %8568 = vmatprep.mubr.msk.bf16.mxu0 %vm9231_vm0, %v9230_v1  ;;  %8956 = vmatprep.mubr.msk.bf16.mxu1 %vm9231_vm0, %v9230_v1 }
 0x2ac   : > { %v4599_v47 = vsel %vm3827_vm8, %v2623_v37, %v4213_v43  ;;  %v7950_v48 = vpack.c.bf16 %v4792_v45, %v4792_v45 }
 0x2ad   : > { %6529 = vst.msk [vmem:[%s9521_s29 + $0x1c0] sm:$0xf] %vm6416_vm4, %v7756_v44  ;;  %v7757_v49 = vpack.c.bf16 %v4599_v47, %v4599_v47  ;;  %v4793_v50 = vsel %vm4021_vm9, %v3399_v42, %v4407_v46  ;;  %v2627_v51 = vpop.f32.mrb[228].mxu0  ;;  %v3403_v52 = vpop.f32.mrb[228].mxu1  ;;  %v9195_v47 = vld [vmem:[%s9287_s24 + $0x2b0] sm:$0xff]  }
 0x2ae   : > { %6723 = vst.msk [vmem:[%s9521_s29 + $0x4c8] sm:$0xf] %vm6416_vm4, %v7950_v48  ;;  %v7951_v53 = vpack.c.bf16 %v4793_v50, %v4793_v50  ;;  %v2628_v54 = vadd.f32 %v10631_v0, %v2627_v51  ;;  %v8462_v55 = vpop.f32.mrb[229].mxu0  ;;  %v3404_v56 = vadd.f32 %v10631_v0, %v3403_v52  ;;  %v8850_v57 = vpop.f32.mrb[229].mxu1 }
 0x2af   : > { %6530 = vst.msk [vmem:[%s9521_s29 + $0x1c4] sm:$0xf] %vm6416_vm4, %v7757_v49  ;;  %v2630_v60 = vpop.f32.mrb[230].mxu0  ;;  %v3406_v61 = vpop.f32.mrb[230].mxu1  ;;  %v9196_v49 = vld [vmem:[%s9287_s24 + $0x5b8] sm:$0xff]  }
 0x2b0   : > { %6724 = vst.msk [vmem:[%s9521_s29 + $0x4cc] sm:$0xf] %vm6416_vm4, %v7951_v53  ;;  %vm3828_vm10 = vcmp.ge.f32.partialorder %v2628_v54, 0.0  ;;  %v4214_v62 = vmul.f32 0.01, %v2628_v54  ;;  %v2631_v63 = vadd.f32 %v10631_v0, %v2630_v60  ;;  %v8463_v2 = vpop.f32.mrb[231].mxu0  ;;  %v3407_v4 = vadd.f32 %v10631_v0, %v3406_v61 }
 0x2b1   : > { %vm4022_vm11 = vcmp.ge.f32.partialorder %v3404_v56, 0.0  ;;  %v8851_v17 = vpop.f32.mrb[231].mxu1  ;;  %v4408_v3 = vmul.f32 0.01, %v3404_v56 }
 0x2b2   : > { %v4600_v5 = vsel %vm3828_vm10, %v2628_v54, %v4214_v62  ;;  %vm3829_vm12 = vcmp.ge.f32.partialorder %v2631_v63, 0.0  ;;  %v4215_v6 = vmul.f32 0.01, %v2631_v63  ;;  %8569 = vmatmul.mubr.msk.bf16.gmra.mrb[80].mxu0 %vm1557_vm1, %v9191_v9  ;;  %8957 = vmatmul.mubr.msk.bf16.gmra.mrb[80].mxu1 %vm1557_vm1, %v9192_v59  ;;  %vm4023_vm13 = vcmp.ge.f32.partialorder %v3407_v4, 0.0 }
 0x2b3   : > { %v7758_v7 = vpack.c.bf16 %v4600_v5, %v4600_v5  ;;  %v4794_v8 = vsel %vm4022_vm11, %v3404_v56, %v4408_v3  ;;  %v4409_v10 = vmul.f32 0.01, %v3407_v4  ;;  %8572 = vmatprep.mubr.msk.bf16.mxu0 %vm9231_vm0, %v9230_v1  ;;  %8960 = vmatprep.mubr.msk.bf16.mxu1 %vm9231_vm0, %v9230_v1 }
 0x2b4   : > { %v4601_v39 = vsel %vm3829_vm12, %v2631_v63, %v4215_v6  ;;  %v7952_v11 = vpack.c.bf16 %v4794_v8, %v4794_v8 }
 0x2b5   : > { %6531 = vst.msk [vmem:[%s9521_s29 + $0x1c8] sm:$0xf] %vm6416_vm4, %v7758_v7  ;;  %v7759_v12 = vpack.c.bf16 %v4601_v39, %v4601_v39  ;;  %v4795_v13 = vsel %vm4023_vm13, %v3407_v4, %v4409_v10  ;;  %v2635_v14 = vpop.f32.mrb[232].mxu0  ;;  %v3411_v15 = vpop.f32.mrb[232].mxu1  ;;  %v9197_v39 = vld [vmem:[%s9287_s24 + $0x2b8] sm:$0xff]  }
 0x2b6   : > { %6725 = vst.msk [vmem:[%s9521_s29 + $0x4d0] sm:$0xf] %vm6416_vm4, %v7952_v11  ;;  %v7953_v16 = vpack.c.bf16 %v4795_v13, %v4795_v13  ;;  %v2636_v18 = vadd.f32 %v10631_v0, %v2635_v14  ;;  %v8466_v19 = vpop.f32.mrb[233].mxu0  ;;  %v3412_v20 = vadd.f32 %v10631_v0, %v3411_v15  ;;  %v8854_v22 = vpop.f32.mrb[233].mxu1 }
 0x2b7   : > { %6532 = vst.msk [vmem:[%s9521_s29 + $0x1cc] sm:$0xf] %vm6416_vm4, %v7759_v12  ;;  %v2638_v24 = vpop.f32.mrb[234].mxu0  ;;  %v3414_v25 = vpop.f32.mrb[234].mxu1  ;;  %v9198_v12 = vld [vmem:[%s9287_s24 + $0x5c0] sm:$0xff]  }
 0x2b8   : > { %6726 = vst.msk [vmem:[%s9521_s29 + $0x4d4] sm:$0xf] %vm6416_vm4, %v7953_v16  ;;  %vm3830_vm14 = vcmp.ge.f32.partialorder %v2636_v18, 0.0  ;;  %v4216_v26 = vmul.f32 0.01, %v2636_v18  ;;  %v2639_v27 = vadd.f32 %v10631_v0, %v2638_v24  ;;  %v8467_v28 = vpop.f32.mrb[235].mxu0  ;;  %v3415_v31 = vadd.f32 %v10631_v0, %v3414_v25 }
 0x2b9   : > { %vm4024_vm15 = vcmp.ge.f32.partialorder %v3412_v20, 0.0  ;;  %v8855_v29 = vpop.f32.mrb[235].mxu1  ;;  %v4410_v30 = vmul.f32 0.01, %v3412_v20 }
 0x2ba   : > { %v4602_v32 = vsel %vm3830_vm14, %v2636_v18, %v4216_v26  ;;  %vm3831_vm2 = vcmp.ge.f32.partialorder %v2639_v27, 0.0  ;;  %v4217_v33 = vmul.f32 0.01, %v2639_v27  ;;  %8573 = vmatmul.mubr.msk.bf16.gmra.mrb[84].mxu0 %vm1557_vm1, %v9193_v21  ;;  %8961 = vmatmul.mubr.msk.bf16.gmra.mrb[84].mxu1 %vm1557_vm1, %v9194_v23  ;;  %vm4025_vm3 = vcmp.ge.f32.partialorder %v3415_v31, 0.0 }
 0x2bb   : > { %v7760_v34 = vpack.c.bf16 %v4602_v32, %v4602_v32  ;;  %v4796_v35 = vsel %vm4024_vm15, %v3412_v20, %v4410_v30  ;;  %v4411_v36 = vmul.f32 0.01, %v3415_v31  ;;  %8576 = vmatprep.mubr.msk.bf16.mxu0 %vm9231_vm0, %v9230_v1  ;;  %8964 = vmatprep.mubr.msk.bf16.mxu1 %vm9231_vm0, %v9230_v1 }
 0x2bc   : > { %v4603_v37 = vsel %vm3831_vm2, %v2639_v27, %v4217_v33  ;;  %v7954_v38 = vpack.c.bf16 %v4796_v35, %v4796_v35 }
 0x2bd   : > { %6533 = vst.msk [vmem:[%s9521_s29 + $0x1d0] sm:$0xf] %vm6416_vm4, %v7760_v34  ;;  %v7761_v40 = vpack.c.bf16 %v4603_v37, %v4603_v37  ;;  %v4797_v41 = vsel %vm4025_vm3, %v3415_v31, %v4411_v36  ;;  %v2643_v42 = vpop.f32.mrb[236].mxu0  ;;  %v3419_v58 = vpop.f32.mrb[236].mxu1  ;;  %v9199_v37 = vld [vmem:[%s9287_s24 + $0x2c0] sm:$0xff]  }
 0x2be   : > { %6727 = vst.msk [vmem:[%s9521_s29 + $0x4d8] sm:$0xf] %vm6416_vm4, %v7954_v38  ;;  %v7955_v43 = vpack.c.bf16 %v4797_v41, %v4797_v41  ;;  %v2644_v44 = vadd.f32 %v10631_v0, %v2643_v42  ;;  %v8470_v45 = vpop.f32.mrb[237].mxu0  ;;  %v3420_v46 = vadd.f32 %v10631_v0, %v3419_v58  ;;  %v8858_v48 = vpop.f32.mrb[237].mxu1 }
 0x2bf   : > { %6534 = vst.msk [vmem:[%s9521_s29 + $0x1d4] sm:$0xf] %vm6416_vm4, %v7761_v40  ;;  %v2646_v50 = vpop.f32.mrb[238].mxu0  ;;  %v3422_v51 = vpop.f32.mrb[238].mxu1  ;;  %v9200_v40 = vld [vmem:[%s9287_s24 + $0x5c8] sm:$0xff]  }
 0x2c0   : > { %6728 = vst.msk [vmem:[%s9521_s29 + $0x4dc] sm:$0xf] %vm6416_vm4, %v7955_v43  ;;  %vm3832_vm5 = vcmp.ge.f32.partialorder %v2644_v44, 0.0  ;;  %v4218_v52 = vmul.f32 0.01, %v2644_v44  ;;  %v2647_v53 = vadd.f32 %v10631_v0, %v2646_v50  ;;  %v8471_v54 = vpop.f32.mrb[239].mxu0  ;;  %v3423_v9 = vadd.f32 %v10631_v0, %v3422_v51 }
 0x2c1   : > { %vm4026_vm6 = vcmp.ge.f32.partialorder %v3420_v46, 0.0  ;;  %v8859_v55 = vpop.f32.mrb[239].mxu1  ;;  %v4412_v56 = vmul.f32 0.01, %v3420_v46 }
 0x2c2   : > { %v4604_v57 = vsel %vm3832_vm5, %v2644_v44, %v4218_v52  ;;  %vm3833_vm7 = vcmp.ge.f32.partialorder %v2647_v53, 0.0  ;;  %v4219_v59 = vmul.f32 0.01, %v2647_v53  ;;  %8577 = vmatmul.mubr.msk.bf16.gmra.mrb[88].mxu0 %vm1557_vm1, %v9195_v47  ;;  %8965 = vmatmul.mubr.msk.bf16.gmra.mrb[88].mxu1 %vm1557_vm1, %v9196_v49  ;;  %vm4027_vm8 = vcmp.ge.f32.partialorder %v3423_v9, 0.0 }
 0x2c3   : > { %v7762_v60 = vpack.c.bf16 %v4604_v57, %v4604_v57  ;;  %v4798_v61 = vsel %vm4026_vm6, %v3420_v46, %v4412_v56  ;;  %v4413_v62 = vmul.f32 0.01, %v3423_v9  ;;  %8580 = vmatprep.mubr.msk.bf16.mxu0 %vm9231_vm0, %v9230_v1  ;;  %8968 = vmatprep.mubr.msk.bf16.mxu1 %vm9231_vm0, %v9230_v1 }
 0x2c4   : > { %v4605_v63 = vsel %vm3833_vm7, %v2647_v53, %v4219_v59  ;;  %v7956_v2 = vpack.c.bf16 %v4798_v61, %v4798_v61 }
 0x2c5   : > { %6535 = vst.msk [vmem:[%s9521_s29 + $0x1d8] sm:$0xf] %vm6416_vm4, %v7762_v60  ;;  %v7763_v17 = vpack.c.bf16 %v4605_v63, %v4605_v63  ;;  %v4799_v3 = vsel %vm4027_vm8, %v3423_v9, %v4413_v62  ;;  %v2651_v4 = vpop.f32.mrb[240].mxu0  ;;  %v3427_v5 = vpop.f32.mrb[240].mxu1  ;;  %v9201_v63 = vld [vmem:[%s9287_s24 + $0x2c8] sm:$0xff]  }
 0x2c6   : > { %6729 = vst.msk [vmem:[%s9521_s29 + $0x4e0] sm:$0xf] %vm6416_vm4, %v7956_v2  ;;  %v7957_v6 = vpack.c.bf16 %v4799_v3, %v4799_v3  ;;  %v2652_v7 = vadd.f32 %v10631_v0, %v2651_v4  ;;  %v8474_v8 = vpop.f32.mrb[241].mxu0  ;;  %v3428_v10 = vadd.f32 %v10631_v0, %v3427_v5  ;;  %v8862_v11 = vpop.f32.mrb[241].mxu1 }
 0x2c7   : > { %6536 = vst.msk [vmem:[%s9521_s29 + $0x1dc] sm:$0xf] %vm6416_vm4, %v7763_v17  ;;  %v2654_v13 = vpop.f32.mrb[242].mxu0  ;;  %v3430_v14 = vpop.f32.mrb[242].mxu1  ;;  %v9202_v17 = vld [vmem:[%s9287_s24 + $0x5d0] sm:$0xff]  }
 0x2c8   : > { %6730 = vst.msk [vmem:[%s9521_s29 + $0x4e4] sm:$0xf] %vm6416_vm4, %v7957_v6  ;;  %vm3834_vm9 = vcmp.ge.f32.partialorder %v2652_v7, 0.0  ;;  %v4220_v15 = vmul.f32 0.01, %v2652_v7  ;;  %v2655_v16 = vadd.f32 %v10631_v0, %v2654_v13  ;;  %v8475_v18 = vpop.f32.mrb[243].mxu0  ;;  %v3431_v21 = vadd.f32 %v10631_v0, %v3430_v14 }
 0x2c9   : > { %vm4028_vm10 = vcmp.ge.f32.partialorder %v3428_v10, 0.0  ;;  %v8863_v19 = vpop.f32.mrb[243].mxu1  ;;  %v4414_v20 = vmul.f32 0.01, %v3428_v10 }
 0x2ca   : > { %v4606_v22 = vsel %vm3834_vm9, %v2652_v7, %v4220_v15  ;;  %vm3835_vm11 = vcmp.ge.f32.partialorder %v2655_v16, 0.0  ;;  %v4221_v23 = vmul.f32 0.01, %v2655_v16  ;;  %8581 = vmatmul.mubr.msk.bf16.gmra.mrb[92].mxu0 %vm1557_vm1, %v9197_v39  ;;  %8969 = vmatmul.mubr.msk.bf16.gmra.mrb[92].mxu1 %vm1557_vm1, %v9198_v12  ;;  %vm4029_vm12 = vcmp.ge.f32.partialorder %v3431_v21, 0.0 }
 0x2cb   : > { %v7764_v24 = vpack.c.bf16 %v4606_v22, %v4606_v22  ;;  %v4800_v25 = vsel %vm4028_vm10, %v3428_v10, %v4414_v20  ;;  %v4415_v26 = vmul.f32 0.01, %v3431_v21  ;;  %8584 = vmatprep.mubr.msk.bf16.mxu0 %vm9231_vm0, %v9230_v1  ;;  %8972 = vmatprep.mubr.msk.bf16.mxu1 %vm9231_vm0, %v9230_v1 }
 0x2cc   : > { %v4607_v27 = vsel %vm3835_vm11, %v2655_v16, %v4221_v23  ;;  %v7958_v28 = vpack.c.bf16 %v4800_v25, %v4800_v25 }
 0x2cd   : > { %6537 = vst.msk [vmem:[%s9521_s29 + $0x1e0] sm:$0xf] %vm6416_vm4, %v7764_v24  ;;  %v7765_v29 = vpack.c.bf16 %v4607_v27, %v4607_v27  ;;  %v4801_v30 = vsel %vm4029_vm12, %v3431_v21, %v4415_v26  ;;  %v2659_v31 = vpop.f32.mrb[244].mxu0  ;;  %v3435_v32 = vpop.f32.mrb[244].mxu1  ;;  %v9203_v27 = vld [vmem:[%s9287_s24 + $0x2d0] sm:$0xff]  }
 0x2ce   : > { %6731 = vst.msk [vmem:[%s9521_s29 + $0x4e8] sm:$0xf] %vm6416_vm4, %v7958_v28  ;;  %v7959_v33 = vpack.c.bf16 %v4801_v30, %v4801_v30  ;;  %v2660_v34 = vadd.f32 %v10631_v0, %v2659_v31  ;;  %v8478_v35 = vpop.f32.mrb[245].mxu0  ;;  %v3436_v36 = vadd.f32 %v10631_v0, %v3435_v32  ;;  %v8866_v38 = vpop.f32.mrb[245].mxu1 }
 0x2cf   : > { %6538 = vst.msk [vmem:[%s9521_s29 + $0x1e4] sm:$0xf] %vm6416_vm4, %v7765_v29  ;;  %v2662_v41 = vpop.f32.mrb[246].mxu0  ;;  %v3438_v42 = vpop.f32.mrb[246].mxu1  ;;  %v9204_v29 = vld [vmem:[%s9287_s24 + $0x5d8] sm:$0xff]  }
 0x2d0   : > { %6732 = vst.msk [vmem:[%s9521_s29 + $0x4ec] sm:$0xf] %vm6416_vm4, %v7959_v33  ;;  %vm3836_vm13 = vcmp.ge.f32.partialorder %v2660_v34, 0.0  ;;  %v4222_v58 = vmul.f32 0.01, %v2660_v34  ;;  %v2663_v43 = vadd.f32 %v10631_v0, %v2662_v41  ;;  %v8479_v44 = vpop.f32.mrb[247].mxu0  ;;  %v3439_v47 = vadd.f32 %v10631_v0, %v3438_v42 }
 0x2d1   : > { %vm4030_vm14 = vcmp.ge.f32.partialorder %v3436_v36, 0.0  ;;  %v8867_v45 = vpop.f32.mrb[247].mxu1  ;;  %v4416_v46 = vmul.f32 0.01, %v3436_v36 }
 0x2d2   : > { %v4608_v48 = vsel %vm3836_vm13, %v2660_v34, %v4222_v58  ;;  %vm3837_vm15 = vcmp.ge.f32.partialorder %v2663_v43, 0.0  ;;  %v4223_v49 = vmul.f32 0.01, %v2663_v43  ;;  %8585 = vmatmul.mubr.msk.bf16.gmra.mrb[96].mxu0 %vm1557_vm1, %v9199_v37  ;;  %8973 = vmatmul.mubr.msk.bf16.gmra.mrb[96].mxu1 %vm1557_vm1, %v9200_v40  ;;  %vm4031_vm2 = vcmp.ge.f32.partialorder %v3439_v47, 0.0 }
 0x2d3   : > { %v7766_v50 = vpack.c.bf16 %v4608_v48, %v4608_v48  ;;  %v4802_v51 = vsel %vm4030_vm14, %v3436_v36, %v4416_v46  ;;  %v4417_v52 = vmul.f32 0.01, %v3439_v47  ;;  %8588 = vmatprep.mubr.msk.bf16.mxu0 %vm9231_vm0, %v9230_v1  ;;  %8976 = vmatprep.mubr.msk.bf16.mxu1 %vm9231_vm0, %v9230_v1 }
 0x2d4   : > { %v4609_v53 = vsel %vm3837_vm15, %v2663_v43, %v4223_v49  ;;  %v7960_v54 = vpack.c.bf16 %v4802_v51, %v4802_v51 }
 0x2d5   : > { %6539 = vst.msk [vmem:[%s9521_s29 + $0x1e8] sm:$0xf] %vm6416_vm4, %v7766_v50  ;;  %v7767_v55 = vpack.c.bf16 %v4609_v53, %v4609_v53  ;;  %v4803_v56 = vsel %vm4031_vm2, %v3439_v47, %v4417_v52  ;;  %v2667_v9 = vpop.f32.mrb[248].mxu0  ;;  %v3443_v57 = vpop.f32.mrb[248].mxu1  ;;  %v9205_v53 = vld [vmem:[%s9287_s24 + $0x2d8] sm:$0xff]  }
 0x2d6   : > { %6733 = vst.msk [vmem:[%s9521_s29 + $0x4f0] sm:$0xf] %vm6416_vm4, %v7960_v54  ;;  %v7961_v59 = vpack.c.bf16 %v4803_v56, %v4803_v56  ;;  %v2668_v60 = vadd.f32 %v10631_v0, %v2667_v9  ;;  %v8482_v61 = vpop.f32.mrb[249].mxu0  ;;  %v3444_v62 = vadd.f32 %v10631_v0, %v3443_v57  ;;  %v8870_v2 = vpop.f32.mrb[249].mxu1 }
 0x2d7   : > { %6540 = vst.msk [vmem:[%s9521_s29 + $0x1ec] sm:$0xf] %vm6416_vm4, %v7767_v55  ;;  %v2670_v3 = vpop.f32.mrb[250].mxu0  ;;  %v3446_v4 = vpop.f32.mrb[250].mxu1  ;;  %v9206_v55 = vld [vmem:[%s9287_s24 + $0x5e0] sm:$0xff]  }
 0x2d8   : > { %6734 = vst.msk [vmem:[%s9521_s29 + $0x4f4] sm:$0xf] %vm6416_vm4, %v7961_v59  ;;  %vm3838_vm3 = vcmp.ge.f32.partialorder %v2668_v60, 0.0  ;;  %v4224_v5 = vmul.f32 0.01, %v2668_v60  ;;  %v2671_v6 = vadd.f32 %v10631_v0, %v2670_v3  ;;  %v8483_v7 = vpop.f32.mrb[251].mxu0  ;;  %v3447_v39 = vadd.f32 %v10631_v0, %v3446_v4 }
 0x2d9   : > { %vm4032_vm5 = vcmp.ge.f32.partialorder %v3444_v62, 0.0  ;;  %v8871_v8 = vpop.f32.mrb[251].mxu1  ;;  %v4418_v10 = vmul.f32 0.01, %v3444_v62 }
 0x2da   : > { %v4610_v11 = vsel %vm3838_vm3, %v2668_v60, %v4224_v5  ;;  %vm3839_vm6 = vcmp.ge.f32.partialorder %v2671_v6, 0.0  ;;  %v4225_v12 = vmul.f32 0.01, %v2671_v6  ;;  %8589 = vmatmul.mubr.msk.bf16.gmra.mrb[100].mxu0 %vm1557_vm1, %v9201_v63  ;;  %8977 = vmatmul.mubr.msk.bf16.gmra.mrb[100].mxu1 %vm1557_vm1, %v9202_v17  ;;  %vm4033_vm7 = vcmp.ge.f32.partialorder %v3447_v39, 0.0 }
 0x2db   : > { %v7768_v13 = vpack.c.bf16 %v4610_v11, %v4610_v11  ;;  %v4804_v14 = vsel %vm4032_vm5, %v3444_v62, %v4418_v10  ;;  %v4419_v15 = vmul.f32 0.01, %v3447_v39  ;;  %8592 = vmatprep.mubr.msk.bf16.mxu0 %vm9231_vm0, %v9230_v1  ;;  %8980 = vmatprep.mubr.msk.bf16.mxu1 %vm9231_vm0, %v9230_v1 }
 0x2dc   : > { %v4611_v16 = vsel %vm3839_vm6, %v2671_v6, %v4225_v12  ;;  %v7962_v18 = vpack.c.bf16 %v4804_v14, %v4804_v14 }
 0x2dd   : > { %6541 = vst.msk [vmem:[%s9521_s29 + $0x1f0] sm:$0xf] %vm6416_vm4, %v7768_v13  ;;  %v7769_v19 = vpack.c.bf16 %v4611_v16, %v4611_v16  ;;  %v4805_v20 = vsel %vm4033_vm7, %v3447_v39, %v4419_v15  ;;  %v2675_v21 = vpop.f32.mrb[252].mxu0  ;;  %v3451_v22 = vpop.f32.mrb[252].mxu1  ;;  %v9207_v16 = vld [vmem:[%s9287_s24 + $0x2e0] sm:$0xff]  }
 0x2de   : > { %6735 = vst.msk [vmem:[%s9521_s29 + $0x4f8] sm:$0xf] %vm6416_vm4, %v7962_v18  ;;  %v7963_v23 = vpack.c.bf16 %v4805_v20, %v4805_v20  ;;  %v2676_v24 = vadd.f32 %v10631_v0, %v2675_v21  ;;  %v8486_v25 = vpop.f32.mrb[253].mxu0  ;;  %v3452_v26 = vadd.f32 %v10631_v0, %v3451_v22  ;;  %v8874_v28 = vpop.f32.mrb[253].mxu1 }
 0x2df   : > { %6542 = vst.msk [vmem:[%s9521_s29 + $0x1f4] sm:$0xf] %vm6416_vm4, %v7769_v19  ;;  %v2678_v30 = vpop.f32.mrb[254].mxu0  ;;  %v3454_v31 = vpop.f32.mrb[254].mxu1  ;;  %v9208_v19 = vld [vmem:[%s9287_s24 + $0x5e8] sm:$0xff]  }
 0x2e0   : > { %6736 = vst.msk [vmem:[%s9521_s29 + $0x4fc] sm:$0xf] %vm6416_vm4, %v7963_v23  ;;  %vm3840_vm8 = vcmp.ge.f32.partialorder %v2676_v24, 0.0  ;;  %v4226_v32 = vmul.f32 0.01, %v2676_v24  ;;  %v2679_v33 = vadd.f32 %v10631_v0, %v2678_v30  ;;  %v8487_v34 = vpop.f32.mrb[255].mxu0  ;;  %v3455_v37 = vadd.f32 %v10631_v0, %v3454_v31 }
 0x2e1   : > { %vm4034_vm9 = vcmp.ge.f32.partialorder %v3452_v26, 0.0  ;;  %v8875_v35 = vpop.f32.mrb[255].mxu1  ;;  %v4420_v36 = vmul.f32 0.01, %v3452_v26 }
 0x2e2   : > { %v4612_v38 = vsel %vm3840_vm8, %v2676_v24, %v4226_v32  ;;  %vm3841_vm10 = vcmp.ge.f32.partialorder %v2679_v33, 0.0  ;;  %v4227_v40 = vmul.f32 0.01, %v2679_v33  ;;  %8593 = vmatmul.mubr.msk.bf16.gmra.mrb[104].mxu0 %vm1557_vm1, %v9203_v27  ;;  %8981 = vmatmul.mubr.msk.bf16.gmra.mrb[104].mxu1 %vm1557_vm1, %v9204_v29  ;;  %vm4035_vm11 = vcmp.ge.f32.partialorder %v3455_v37, 0.0 }
 0x2e3   : > { %v7770_v41 = vpack.c.bf16 %v4612_v38, %v4612_v38  ;;  %v4806_v42 = vsel %vm4034_vm9, %v3452_v26, %v4420_v36  ;;  %v4421_v58 = vmul.f32 0.01, %v3455_v37  ;;  %8596 = vmatprep.mubr.msk.bf16.mxu0 %vm9231_vm0, %v9230_v1  ;;  %8984 = vmatprep.mubr.msk.bf16.mxu1 %vm9231_vm0, %v9230_v1 }
 0x2e4   : > { %v4613_v43 = vsel %vm3841_vm10, %v2679_v33, %v4227_v40  ;;  %v7964_v44 = vpack.c.bf16 %v4806_v42, %v4806_v42 }
 0x2e5   : > { %6543 = vst.msk [vmem:[%s9521_s29 + $0x1f8] sm:$0xf] %vm6416_vm4, %v7770_v41  ;;  %v7771_v45 = vpack.c.bf16 %v4613_v43, %v4613_v43  ;;  %v4807_v46 = vsel %vm4035_vm11, %v3455_v37, %v4421_v58  ;;  %v2683_v47 = vpop.f32.mrb[0].mxu0  ;;  %v3459_v48 = vpop.f32.mrb[0].mxu1  ;;  %v9209_v43 = vld [vmem:[%s9287_s24 + $0x2e8] sm:$0xff]  }
 0x2e6   : > { %6737 = vst.msk [vmem:[%s9521_s29 + $0x500] sm:$0xf] %vm6416_vm4, %v7964_v44  ;;  %v7965_v49 = vpack.c.bf16 %v4807_v46, %v4807_v46  ;;  %v2684_v50 = vadd.f32 %v10631_v0, %v2683_v47  ;;  %v8490_v51 = vpop.f32.mrb[1].mxu0  ;;  %v3460_v52 = vadd.f32 %v10631_v0, %v3459_v48  ;;  %v8878_v54 = vpop.f32.mrb[1].mxu1 }
 0x2e7   : > { %6544 = vst.msk [vmem:[%s9521_s29 + $0x1fc] sm:$0xf] %vm6416_vm4, %v7771_v45  ;;  %v2686_v56 = vpop.f32.mrb[2].mxu0  ;;  %v3462_v9 = vpop.f32.mrb[2].mxu1  ;;  %v9210_v45 = vld [vmem:[%s9287_s24 + $0x5f0] sm:$0xff]  }
 0x2e8   : > { %6738 = vst.msk [vmem:[%s9521_s29 + $0x504] sm:$0xf] %vm6416_vm4, %v7965_v49  ;;  %vm3842_vm12 = vcmp.ge.f32.partialorder %v2684_v50, 0.0  ;;  %v4228_v57 = vmul.f32 0.01, %v2684_v50  ;;  %v2687_v59 = vadd.f32 %v10631_v0, %v2686_v56  ;;  %v8491_v60 = vpop.f32.mrb[3].mxu0  ;;  %v3463_v63 = vadd.f32 %v10631_v0, %v3462_v9 }
 0x2e9   : > { %vm4036_vm13 = vcmp.ge.f32.partialorder %v3460_v52, 0.0  ;;  %v8879_v61 = vpop.f32.mrb[3].mxu1  ;;  %v4422_v62 = vmul.f32 0.01, %v3460_v52 }
 0x2ea   : > { %v4614_v2 = vsel %vm3842_vm12, %v2684_v50, %v4228_v57  ;;  %vm3843_vm14 = vcmp.ge.f32.partialorder %v2687_v59, 0.0  ;;  %v4229_v17 = vmul.f32 0.01, %v2687_v59  ;;  %8597 = vmatmul.mubr.msk.bf16.gmra.mrb[108].mxu0 %vm1557_vm1, %v9205_v53  ;;  %8985 = vmatmul.mubr.msk.bf16.gmra.mrb[108].mxu1 %vm1557_vm1, %v9206_v55  ;;  %vm4037_vm15 = vcmp.ge.f32.partialorder %v3463_v63, 0.0 }
 0x2eb   : > { %v7772_v3 = vpack.c.bf16 %v4614_v2, %v4614_v2  ;;  %v4808_v4 = vsel %vm4036_vm13, %v3460_v52, %v4422_v62  ;;  %v4423_v5 = vmul.f32 0.01, %v3463_v63  ;;  %8600 = vmatprep.mubr.msk.bf16.mxu0 %vm9231_vm0, %v9230_v1  ;;  %8988 = vmatprep.mubr.msk.bf16.mxu1 %vm9231_vm0, %v9230_v1 }
 0x2ec   : > { %v4615_v6 = vsel %vm3843_vm14, %v2687_v59, %v4229_v17  ;;  %v7966_v7 = vpack.c.bf16 %v4808_v4, %v4808_v4 }
 0x2ed   : > { %6545 = vst.msk [vmem:[%s9521_s29 + $0x200] sm:$0xf] %vm6416_vm4, %v7772_v3  ;;  %v7773_v8 = vpack.c.bf16 %v4615_v6, %v4615_v6  ;;  %v4809_v10 = vsel %vm4037_vm15, %v3463_v63, %v4423_v5  ;;  %v2691_v39 = vpop.f32.mrb[4].mxu0  ;;  %v3467_v11 = vpop.f32.mrb[4].mxu1  ;;  %v9211_v6 = vld [vmem:[%s9287_s24 + $0x2f0] sm:$0xff]  }
 0x2ee   : > { %6739 = vst.msk [vmem:[%s9521_s29 + $0x508] sm:$0xf] %vm6416_vm4, %v7966_v7  ;;  %v7967_v12 = vpack.c.bf16 %v4809_v10, %v4809_v10  ;;  %v2692_v13 = vadd.f32 %v10631_v0, %v2691_v39  ;;  %v8494_v14 = vpop.f32.mrb[5].mxu0  ;;  %v3468_v15 = vadd.f32 %v10631_v0, %v3467_v11  ;;  %v8882_v18 = vpop.f32.mrb[5].mxu1 }
 0x2ef   : > { %6546 = vst.msk [vmem:[%s9521_s29 + $0x204] sm:$0xf] %vm6416_vm4, %v7773_v8  ;;  %v2694_v20 = vpop.f32.mrb[6].mxu0  ;;  %v3470_v21 = vpop.f32.mrb[6].mxu1  ;;  %v9212_v8 = vld [vmem:[%s9287_s24 + $0x5f8] sm:$0xff]  }
 0x2f0   : > { %6740 = vst.msk [vmem:[%s9521_s29 + $0x50c] sm:$0xf] %vm6416_vm4, %v7967_v12  ;;  %vm3844_vm2 = vcmp.ge.f32.partialorder %v2692_v13, 0.0  ;;  %v4230_v22 = vmul.f32 0.01, %v2692_v13  ;;  %v2695_v23 = vadd.f32 %v10631_v0, %v2694_v20  ;;  %v8495_v24 = vpop.f32.mrb[7].mxu0  ;;  %v3471_v27 = vadd.f32 %v10631_v0, %v3470_v21 }
 0x2f1   : > { %vm4038_vm3 = vcmp.ge.f32.partialorder %v3468_v15, 0.0  ;;  %v8883_v25 = vpop.f32.mrb[7].mxu1  ;;  %v4424_v26 = vmul.f32 0.01, %v3468_v15 }
 0x2f2   : > { %v4616_v28 = vsel %vm3844_vm2, %v2692_v13, %v4230_v22  ;;  %vm3845_vm5 = vcmp.ge.f32.partialorder %v2695_v23, 0.0  ;;  %v4231_v29 = vmul.f32 0.01, %v2695_v23  ;;  %8601 = vmatmul.mubr.msk.bf16.gmra.mrb[112].mxu0 %vm1557_vm1, %v9207_v16  ;;  %8989 = vmatmul.mubr.msk.bf16.gmra.mrb[112].mxu1 %vm1557_vm1, %v9208_v19  ;;  %vm4039_vm6 = vcmp.ge.f32.partialorder %v3471_v27, 0.0 }
 0x2f3   : > { %v7774_v30 = vpack.c.bf16 %v4616_v28, %v4616_v28  ;;  %v4810_v31 = vsel %vm4038_vm3, %v3468_v15, %v4424_v26  ;;  %v4425_v32 = vmul.f32 0.01, %v3471_v27  ;;  %8604 = vmatprep.mubr.msk.bf16.mxu0 %vm9231_vm0, %v9230_v1  ;;  %8992 = vmatprep.mubr.msk.bf16.mxu1 %vm9231_vm0, %v9230_v1 }
 0x2f4   : > { %v4617_v33 = vsel %vm3845_vm5, %v2695_v23, %v4231_v29  ;;  %v7968_v34 = vpack.c.bf16 %v4810_v31, %v4810_v31 }
 0x2f5   : > { %6547 = vst.msk [vmem:[%s9521_s29 + $0x208] sm:$0xf] %vm6416_vm4, %v7774_v30  ;;  %v7775_v35 = vpack.c.bf16 %v4617_v33, %v4617_v33  ;;  %v4811_v36 = vsel %vm4039_vm6, %v3471_v27, %v4425_v32  ;;  %v2699_v37 = vpop.f32.mrb[8].mxu0  ;;  %v3475_v38 = vpop.f32.mrb[8].mxu1  ;;  %v9213_v33 = vld [vmem:[%s9287_s24 + $0x2f8] sm:$0xff]  }
 0x2f6   : > { %6741 = vst.msk [vmem:[%s9521_s29 + $0x510] sm:$0xf] %vm6416_vm4, %v7968_v34  ;;  %v7969_v40 = vpack.c.bf16 %v4811_v36, %v4811_v36  ;;  %v2700_v41 = vadd.f32 %v10631_v0, %v2699_v37  ;;  %v8498_v42 = vpop.f32.mrb[9].mxu0  ;;  %v3476_v58 = vadd.f32 %v10631_v0, %v3475_v38  ;;  %v8886_v44 = vpop.f32.mrb[9].mxu1 }
 0x2f7   : > { %6548 = vst.msk [vmem:[%s9521_s29 + $0x20c] sm:$0xf] %vm6416_vm4, %v7775_v35  ;;  %v2702_v46 = vpop.f32.mrb[10].mxu0  ;;  %v3478_v47 = vpop.f32.mrb[10].mxu1  ;;  %v9214_v35 = vld [vmem:[%s9287_s24 + $0x600] sm:$0xff]  }
 0x2f8   : > { %6742 = vst.msk [vmem:[%s9521_s29 + $0x514] sm:$0xf] %vm6416_vm4, %v7969_v40  ;;  %vm3846_vm7 = vcmp.ge.f32.partialorder %v2700_v41, 0.0  ;;  %v4232_v48 = vmul.f32 0.01, %v2700_v41  ;;  %v2703_v49 = vadd.f32 %v10631_v0, %v2702_v46  ;;  %v8499_v50 = vpop.f32.mrb[11].mxu0  ;;  %v3479_v53 = vadd.f32 %v10631_v0, %v3478_v47 }
 0x2f9   : > { %vm4040_vm8 = vcmp.ge.f32.partialorder %v3476_v58, 0.0  ;;  %v8887_v51 = vpop.f32.mrb[11].mxu1  ;;  %v4426_v52 = vmul.f32 0.01, %v3476_v58 }
 0x2fa   : > { %v4618_v54 = vsel %vm3846_vm7, %v2700_v41, %v4232_v48  ;;  %vm3847_vm9 = vcmp.ge.f32.partialorder %v2703_v49, 0.0  ;;  %v4233_v55 = vmul.f32 0.01, %v2703_v49  ;;  %8605 = vmatmul.mubr.msk.bf16.gmra.mrb[116].mxu0 %vm1557_vm1, %v9209_v43  ;;  %8993 = vmatmul.mubr.msk.bf16.gmra.mrb[116].mxu1 %vm1557_vm1, %v9210_v45  ;;  %vm4041_vm10 = vcmp.ge.f32.partialorder %v3479_v53, 0.0 }
 0x2fb   : > { %v7776_v56 = vpack.c.bf16 %v4618_v54, %v4618_v54  ;;  %v4812_v9 = vsel %vm4040_vm8, %v3476_v58, %v4426_v52  ;;  %v4427_v57 = vmul.f32 0.01, %v3479_v53  ;;  %8608 = vmatprep.mubr.msk.bf16.mxu0 %vm9231_vm0, %v9230_v1  ;;  %8996 = vmatprep.mubr.msk.bf16.mxu1 %vm9231_vm0, %v9230_v1 }
 0x2fc   : > { %v4619_v59 = vsel %vm3847_vm9, %v2703_v49, %v4233_v55  ;;  %v7970_v60 = vpack.c.bf16 %v4812_v9, %v4812_v9  ;;  %v10914_v55 = vld [vmem:[%s11262_s2] ss:$0 sm:$0xff] }
 0x2fd   : > { %6549 = vst.msk [vmem:[%s9521_s29 + $0x210] sm:$0xf] %vm6416_vm4, %v7776_v56  ;;  %v7777_v61 = vpack.c.bf16 %v4619_v59, %v4619_v59  ;;  %v4813_v62 = vsel %vm4041_vm10, %v3479_v53, %v4427_v57  ;;  %v2707_v63 = vpop.f32.mrb[12].mxu0  ;;  %v3483_v2 = vpop.f32.mrb[12].mxu1  ;;  %v9215_v57 = vld [vmem:[%s9287_s24 + $0x300] sm:$0xff]  }
 0x2fe   : > { %6743 = vst.msk [vmem:[%s9521_s29 + $0x518] sm:$0xf] %vm6416_vm4, %v7970_v60  ;;  %v7971_v17 = vpack.c.bf16 %v4813_v62, %v4813_v62  ;;  %v2708_v3 = vadd.f32 %v10631_v0, %v2707_v63  ;;  %v8502_v4 = vpop.f32.mrb[13].mxu0  ;;  %v3484_v5 = vadd.f32 %v10631_v0, %v3483_v2  ;;  %v8890_v7 = vpop.f32.mrb[13].mxu1 }
 0x2ff   : > { %6550 = vst.msk [vmem:[%s9521_s29 + $0x214] sm:$0xf] %vm6416_vm4, %v7777_v61  ;;  %v2710_v10 = vpop.f32.mrb[14].mxu0  ;;  %v3486_v39 = vpop.f32.mrb[14].mxu1 }
 0x300   : > { %6744 = vst.msk [vmem:[%s9521_s29 + $0x51c] sm:$0xf] %vm6416_vm4, %v7971_v17  ;;  %vm3848_vm11 = vcmp.ge.f32.partialorder %v2708_v3, 0.0  ;;  %v4234_v11 = vmul.f32 0.01, %v2708_v3  ;;  %v2711_v12 = vadd.f32 %v10631_v0, %v2710_v10  ;;  %v8503_v13 = vpop.f32.mrb[15].mxu0  ;;  %v3487_v16 = vadd.f32 %v10631_v0, %v3486_v39 }
 0x301   : > { %vm4042_vm12 = vcmp.ge.f32.partialorder %v3484_v5, 0.0  ;;  %v8891_v14 = vpop.f32.mrb[15].mxu1  ;;  %v4428_v15 = vmul.f32 0.01, %v3484_v5 }
 0x302   : > { %v4620_v18 = vsel %vm3848_vm11, %v2708_v3, %v4234_v11  ;;  %vm3849_vm13 = vcmp.ge.f32.partialorder %v2711_v12, 0.0  ;;  %v4235_v19 = vmul.f32 0.01, %v2711_v12  ;;  %8609 = vmatmul.mubr.msk.bf16.gmra.mrb[120].mxu0 %vm1557_vm1, %v9211_v6  ;;  %8997 = vmatmul.mubr.msk.bf16.gmra.mrb[120].mxu1 %vm1557_vm1, %v9212_v8  ;;  %vm4043_vm14 = vcmp.ge.f32.partialorder %v3487_v16, 0.0 }
 0x303   : > { %v7778_v20 = vpack.c.bf16 %v4620_v18, %v4620_v18  ;;  %v4814_v21 = vsel %vm4042_vm12, %v3484_v5, %v4428_v15  ;;  %v4429_v22 = vmul.f32 0.01, %v3487_v16  ;;  %8612 = vmatprep.mubr.msk.bf16.mxu0 %vm9231_vm0, %v9230_v1  ;;  %9000 = vmatprep.mubr.msk.bf16.mxu1 %vm9231_vm0, %v9230_v1 }
 0x304   : > { %v4621_v23 = vsel %vm3849_vm13, %v2711_v12, %v4235_v19  ;;  %v7972_v24 = vpack.c.bf16 %v4814_v21, %v4814_v21 }
 0x305   : > { %6551 = vst.msk [vmem:[%s9521_s29 + $0x218] sm:$0xf] %vm6416_vm4, %v7778_v20  ;;  %v7779_v25 = vpack.c.bf16 %v4621_v23, %v4621_v23  ;;  %v4815_v26 = vsel %vm4043_vm14, %v3487_v16, %v4429_v22  ;;  %v2715_v27 = vpop.f32.mrb[16].mxu0  ;;  %v3491_v28 = vpop.f32.mrb[16].mxu1 }
 0x306   : > { %6745 = vst.msk [vmem:[%s9521_s29 + $0x520] sm:$0xf] %vm6416_vm4, %v7972_v24  ;;  %v7973_v29 = vpack.c.bf16 %v4815_v26, %v4815_v26  ;;  %v2716_v30 = vadd.f32 %v10631_v0, %v2715_v27  ;;  %v8506_v31 = vpop.f32.mrb[17].mxu0  ;;  %v3492_v32 = vadd.f32 %v10631_v0, %v3491_v28  ;;  %v8894_v34 = vpop.f32.mrb[17].mxu1 }
 0x307   : > { %6552 = vst.msk [vmem:[%s9521_s29 + $0x21c] sm:$0xf] %vm6416_vm4, %v7779_v25  ;;  %v2718_v36 = vpop.f32.mrb[18].mxu0  ;;  %v3494_v37 = vpop.f32.mrb[18].mxu1 }
 0x308   : > { %6746 = vst.msk [vmem:[%s9521_s29 + $0x524] sm:$0xf] %vm6416_vm4, %v7973_v29  ;;  %vm3850_vm15 = vcmp.ge.f32.partialorder %v2716_v30, 0.0  ;;  %v4236_v38 = vmul.f32 0.01, %v2716_v30  ;;  %v2719_v40 = vadd.f32 %v10631_v0, %v2718_v36  ;;  %v8507_v41 = vpop.f32.mrb[19].mxu0  ;;  %v3495_v43 = vadd.f32 %v10631_v0, %v3494_v37 }
 0x309   : > { %vm4044_vm2 = vcmp.ge.f32.partialorder %v3492_v32, 0.0  ;;  %v8895_v42 = vpop.f32.mrb[19].mxu1  ;;  %v4430_v58 = vmul.f32 0.01, %v3492_v32 }
 0x30a   : > { %v4622_v44 = vsel %vm3850_vm15, %v2716_v30, %v4236_v38  ;;  %vm3851_vm3 = vcmp.ge.f32.partialorder %v2719_v40, 0.0  ;;  %v4237_v45 = vmul.f32 0.01, %v2719_v40  ;;  %8613 = vmatmul.mubr.msk.bf16.gmra.mrb[124].mxu0 %vm1557_vm1, %v9213_v33  ;;  %9001 = vmatmul.mubr.msk.bf16.gmra.mrb[124].mxu1 %vm1557_vm1, %v9214_v35  ;;  %vm4045_vm5 = vcmp.ge.f32.partialorder %v3495_v43, 0.0 }
 0x30b   : > { %v7780_v46 = vpack.c.bf16 %v4622_v44, %v4622_v44  ;;  %v4816_v47 = vsel %vm4044_vm2, %v3492_v32, %v4430_v58  ;;  %v4431_v48 = vmul.f32 0.01, %v3495_v43  ;;  %8616 = vmatprep.mubr.msk.bf16.mxu0 %vm9231_vm0, %v9230_v1 }
 0x30c   : > { %v4623_v49 = vsel %vm3851_vm3, %v2719_v40, %v4237_v45  ;;  %v7974_v50 = vpack.c.bf16 %v4816_v47, %v4816_v47 }
 0x30d   : > { %6553 = vst.msk [vmem:[%s9521_s29 + $0x220] sm:$0xf] %vm6416_vm4, %v7780_v46  ;;  %v7781_v0 = vpack.c.bf16 %v4623_v49, %v4623_v49  ;;  %v4817_v51 = vsel %vm4045_vm5, %v3495_v43, %v4431_v48  ;;  %v2723_v52 = vpop.f32.mrb[20].mxu0  ;;  %v3499_v53 = vpop.f32.mrb[20].mxu1 }
 0x30e   : > { %6747 = vst.msk [vmem:[%s9521_s29 + $0x528] sm:$0xf] %vm6416_vm4, %v7974_v50  ;;  %v7975_v54 = vpack.c.bf16 %v4817_v51, %v4817_v51  ;;  %v2724_v1 = vadd.f32 %v10914_v55, %v2723_v52  ;;  %v8510_v56 = vpop.f32.mrb[21].mxu0  ;;  %v3500_v9 = vadd.f32 %v10914_v55, %v3499_v53  ;;  %v8898_v59 = vpop.f32.mrb[21].mxu1 }
 0x30f   : > { %6554 = vst.msk [vmem:[%s9521_s29 + $0x224] sm:$0xf] %vm6416_vm4, %v7781_v0  ;;  %v2726_v60 = vpop.f32.mrb[22].mxu0  ;;  %v3502_v61 = vpop.f32.mrb[22].mxu1 }
 0x310   : > { %6748 = vst.msk [vmem:[%s9521_s29 + $0x52c] sm:$0xf] %vm6416_vm4, %v7975_v54  ;;  %vm3852_vm0 = vcmp.ge.f32.partialorder %v2724_v1, 0.0  ;;  %v4238_v62 = vmul.f32 0.01, %v2724_v1  ;;  %v2727_v63 = vadd.f32 %v10914_v55, %v2726_v60  ;;  %v8511_v2 = vpop.f32.mrb[23].mxu0  ;;  %v3503_v4 = vadd.f32 %v10914_v55, %v3502_v61 }
 0x311   : > { %vm4046_vm6 = vcmp.ge.f32.partialorder %v3500_v9, 0.0  ;;  %v8899_v17 = vpop.f32.mrb[23].mxu1  ;;  %v4432_v3 = vmul.f32 0.01, %v3500_v9 }
 0x312   : > { %v4624_v5 = vsel %vm3852_vm0, %v2724_v1, %v4238_v62  ;;  %vm3853_vm7 = vcmp.ge.f32.partialorder %v2727_v63, 0.0  ;;  %v4239_v6 = vmul.f32 0.01, %v2727_v63  ;;  %8617 = vmatmul.mubr.msk.bf16.gmra.mrb[128].mxu0 %vm1557_vm1, %v9215_v57  ;;  %vm4047_vm8 = vcmp.ge.f32.partialorder %v3503_v4, 0.0 }
 0x313   : > { %v7782_v7 = vpack.c.bf16 %v4624_v5, %v4624_v5  ;;  %v4818_v8 = vsel %vm4046_vm6, %v3500_v9, %v4432_v3  ;;  %v4433_v10 = vmul.f32 0.01, %v3503_v4 }
 0x314   : > { %v4625_v39 = vsel %vm3853_vm7, %v2727_v63, %v4239_v6  ;;  %v7976_v11 = vpack.c.bf16 %v4818_v8, %v4818_v8 }
 0x315   : > { %6555 = vst.msk [vmem:[%s9521_s29 + $0x228] sm:$0xf] %vm6416_vm4, %v7782_v7  ;;  %v7783_v12 = vpack.c.bf16 %v4625_v39, %v4625_v39  ;;  %v4819_v13 = vsel %vm4047_vm8, %v3503_v4, %v4433_v10  ;;  %v2731_v14 = vpop.f32.mrb[24].mxu0  ;;  %v3507_v15 = vpop.f32.mrb[24].mxu1 }
 0x316   : > { %6749 = vst.msk [vmem:[%s9521_s29 + $0x530] sm:$0xf] %vm6416_vm4, %v7976_v11  ;;  %v7977_v16 = vpack.c.bf16 %v4819_v13, %v4819_v13  ;;  %v2732_v18 = vadd.f32 %v10914_v55, %v2731_v14  ;;  %v8514_v19 = vpop.f32.mrb[25].mxu0  ;;  %v3508_v20 = vadd.f32 %v10914_v55, %v3507_v15  ;;  %v8902_v21 = vpop.f32.mrb[25].mxu1 }
 0x317   : > { %6556 = vst.msk [vmem:[%s9521_s29 + $0x22c] sm:$0xf] %vm6416_vm4, %v7783_v12  ;;  %v2734_v22 = vpop.f32.mrb[26].mxu0  ;;  %v3510_v23 = vpop.f32.mrb[26].mxu1 }
 0x318   : > { %6750 = vst.msk [vmem:[%s9521_s29 + $0x534] sm:$0xf] %vm6416_vm4, %v7977_v16  ;;  %vm3854_vm1 = vcmp.ge.f32.partialorder %v2732_v18, 0.0  ;;  %v4240_v24 = vmul.f32 0.01, %v2732_v18  ;;  %v2735_v25 = vadd.f32 %v10914_v55, %v2734_v22  ;;  %v8515_v26 = vpop.f32.mrb[27].mxu0  ;;  %v3511_v29 = vadd.f32 %v10914_v55, %v3510_v23 }
 0x319   : > { %vm4048_vm9 = vcmp.ge.f32.partialorder %v3508_v20, 0.0  ;;  %v8903_v27 = vpop.f32.mrb[27].mxu1  ;;  %v4434_v28 = vmul.f32 0.01, %v3508_v20 }
 0x31a   : > { %v4626_v30 = vsel %vm3854_vm1, %v2732_v18, %v4240_v24  ;;  %vm3855_vm10 = vcmp.ge.f32.partialorder %v2735_v25, 0.0  ;;  %v4241_v31 = vmul.f32 0.01, %v2735_v25  ;;  %vm4049_vm11 = vcmp.ge.f32.partialorder %v3511_v29, 0.0 }
 0x31b   : > { %v7784_v32 = vpack.c.bf16 %v4626_v30, %v4626_v30  ;;  %v4820_v33 = vsel %vm4048_vm9, %v3508_v20, %v4434_v28  ;;  %v4435_v34 = vmul.f32 0.01, %v3511_v29 }
 0x31c   : > { %v4627_v35 = vsel %vm3855_vm10, %v2735_v25, %v4241_v31  ;;  %v7978_v36 = vpack.c.bf16 %v4820_v33, %v4820_v33 }
 0x31d   : > { %6557 = vst.msk [vmem:[%s9521_s29 + $0x230] sm:$0xf] %vm6416_vm4, %v7784_v32  ;;  %v7785_v37 = vpack.c.bf16 %v4627_v35, %v4627_v35  ;;  %v4821_v38 = vsel %vm4049_vm11, %v3511_v29, %v4435_v34  ;;  %v2739_v40 = vpop.f32.mrb[28].mxu0  ;;  %v3515_v41 = vpop.f32.mrb[28].mxu1 }
 0x31e   : > { %6751 = vst.msk [vmem:[%s9521_s29 + $0x538] sm:$0xf] %vm6416_vm4, %v7978_v36  ;;  %v7979_v42 = vpack.c.bf16 %v4821_v38, %v4821_v38  ;;  %v2740_v58 = vadd.f32 %v10914_v55, %v2739_v40  ;;  %v8518_v43 = vpop.f32.mrb[29].mxu0  ;;  %v3516_v44 = vadd.f32 %v10914_v55, %v3515_v41  ;;  %v8906_v45 = vpop.f32.mrb[29].mxu1 }
 0x31f   : > { %6558 = vst.msk [vmem:[%s9521_s29 + $0x234] sm:$0xf] %vm6416_vm4, %v7785_v37  ;;  %v2742_v46 = vpop.f32.mrb[30].mxu0  ;;  %v3518_v47 = vpop.f32.mrb[30].mxu1 }
 0x320   : > { %6752 = vst.msk [vmem:[%s9521_s29 + $0x53c] sm:$0xf] %vm6416_vm4, %v7979_v42  ;;  %vm3856_vm12 = vcmp.ge.f32.partialorder %v2740_v58, 0.0  ;;  %v4242_v48 = vmul.f32 0.01, %v2740_v58  ;;  %v2743_v49 = vadd.f32 %v10914_v55, %v2742_v46  ;;  %v8519_v50 = vpop.f32.mrb[31].mxu0  ;;  %v3519_v52 = vadd.f32 %v10914_v55, %v3518_v47 }
 0x321   : > { %vm4050_vm13 = vcmp.ge.f32.partialorder %v3516_v44, 0.0  ;;  %v8907_v0 = vpop.f32.mrb[31].mxu1  ;;  %v4436_v51 = vmul.f32 0.01, %v3516_v44 }
 0x322   : > { %v4628_v53 = vsel %vm3856_vm12, %v2740_v58, %v4242_v48  ;;  %vm3857_vm14 = vcmp.ge.f32.partialorder %v2743_v49, 0.0  ;;  %v4243_v54 = vmul.f32 0.01, %v2743_v49  ;;  %vm4051_vm15 = vcmp.ge.f32.partialorder %v3519_v52, 0.0 }
 0x323   : > { %v7786_v1 = vpack.c.bf16 %v4628_v53, %v4628_v53  ;;  %v4822_v56 = vsel %vm4050_vm13, %v3516_v44, %v4436_v51  ;;  %v4437_v9 = vmul.f32 0.01, %v3519_v52 }
 0x324   : > { %v4629_v57 = vsel %vm3857_vm14, %v2743_v49, %v4243_v54  ;;  %v7980_v59 = vpack.c.bf16 %v4822_v56, %v4822_v56 }
 0x325   : > { %6559 = vst.msk [vmem:[%s9521_s29 + $0x238] sm:$0xf] %vm6416_vm4, %v7786_v1  ;;  %v7787_v60 = vpack.c.bf16 %v4629_v57, %v4629_v57  ;;  %v4823_v61 = vsel %vm4051_vm15, %v3519_v52, %v4437_v9  ;;  %v2747_v62 = vpop.f32.mrb[32].mxu0  ;;  %v3523_v63 = vpop.f32.mrb[32].mxu1 }
 0x326   : > { %6753 = vst.msk [vmem:[%s9521_s29 + $0x540] sm:$0xf] %vm6416_vm4, %v7980_v59  ;;  %v7981_v2 = vpack.c.bf16 %v4823_v61, %v4823_v61  ;;  %v2748_v17 = vadd.f32 %v10914_v55, %v2747_v62  ;;  %v8522_v3 = vpop.f32.mrb[33].mxu0  ;;  %v3524_v4 = vadd.f32 %v10914_v55, %v3523_v63  ;;  %v8910_v5 = vpop.f32.mrb[33].mxu1 }
 0x327   : > { %6560 = vst.msk [vmem:[%s9521_s29 + $0x23c] sm:$0xf] %vm6416_vm4, %v7787_v60  ;;  %v2750_v6 = vpop.f32.mrb[34].mxu0  ;;  %v3526_v7 = vpop.f32.mrb[34].mxu1 }
 0x328   : > { %6754 = vst.msk [vmem:[%s9521_s29 + $0x544] sm:$0xf] %vm6416_vm4, %v7981_v2  ;;  %vm3858_vm2 = vcmp.ge.f32.partialorder %v2748_v17, 0.0  ;;  %v4244_v8 = vmul.f32 0.01, %v2748_v17  ;;  %v2751_v10 = vadd.f32 %v10914_v55, %v2750_v6  ;;  %v8523_v39 = vpop.f32.mrb[35].mxu0  ;;  %v3527_v13 = vadd.f32 %v10914_v55, %v3526_v7 }
 0x329   : > { %vm4052_vm3 = vcmp.ge.f32.partialorder %v3524_v4, 0.0  ;;  %v8911_v11 = vpop.f32.mrb[35].mxu1  ;;  %v4438_v12 = vmul.f32 0.01, %v3524_v4 }
 0x32a   : > { %v4630_v14 = vsel %vm3858_vm2, %v2748_v17, %v4244_v8  ;;  %vm3859_vm5 = vcmp.ge.f32.partialorder %v2751_v10, 0.0  ;;  %v4245_v15 = vmul.f32 0.01, %v2751_v10  ;;  %vm4053_vm0 = vcmp.ge.f32.partialorder %v3527_v13, 0.0 }
 0x32b   : > { %v7788_v16 = vpack.c.bf16 %v4630_v14, %v4630_v14  ;;  %v4824_v18 = vsel %vm4052_vm3, %v3524_v4, %v4438_v12  ;;  %v4439_v19 = vmul.f32 0.01, %v3527_v13 }
 0x32c   : > { %v4631_v20 = vsel %vm3859_vm5, %v2751_v10, %v4245_v15  ;;  %v7982_v21 = vpack.c.bf16 %v4824_v18, %v4824_v18 }
 0x32d   : > { %6561 = vst.msk [vmem:[%s9521_s29 + $0x240] sm:$0xf] %vm6416_vm4, %v7788_v16  ;;  %v7789_v22 = vpack.c.bf16 %v4631_v20, %v4631_v20  ;;  %v4825_v23 = vsel %vm4053_vm0, %v3527_v13, %v4439_v19  ;;  %v2755_v24 = vpop.f32.mrb[36].mxu0  ;;  %v3531_v25 = vpop.f32.mrb[36].mxu1 }
 0x32e   : > { %6755 = vst.msk [vmem:[%s9521_s29 + $0x548] sm:$0xf] %vm6416_vm4, %v7982_v21  ;;  %v7983_v26 = vpack.c.bf16 %v4825_v23, %v4825_v23  ;;  %v2756_v27 = vadd.f32 %v10914_v55, %v2755_v24  ;;  %v8526_v28 = vpop.f32.mrb[37].mxu0  ;;  %v3532_v29 = vadd.f32 %v10914_v55, %v3531_v25  ;;  %v8914_v30 = vpop.f32.mrb[37].mxu1 }
 0x32f   : > { %6562 = vst.msk [vmem:[%s9521_s29 + $0x244] sm:$0xf] %vm6416_vm4, %v7789_v22  ;;  %v2758_v31 = vpop.f32.mrb[38].mxu0  ;;  %v3534_v32 = vpop.f32.mrb[38].mxu1 }
 0x330   : > { %6756 = vst.msk [vmem:[%s9521_s29 + $0x54c] sm:$0xf] %vm6416_vm4, %v7983_v26  ;;  %vm3860_vm6 = vcmp.ge.f32.partialorder %v2756_v27, 0.0  ;;  %v4246_v33 = vmul.f32 0.01, %v2756_v27  ;;  %v2759_v34 = vadd.f32 %v10914_v55, %v2758_v31  ;;  %v8527_v35 = vpop.f32.mrb[39].mxu0  ;;  %v3535_v38 = vadd.f32 %v10914_v55, %v3534_v32 }
 0x331   : > { %vm4054_vm7 = vcmp.ge.f32.partialorder %v3532_v29, 0.0  ;;  %v8915_v36 = vpop.f32.mrb[39].mxu1  ;;  %v4440_v37 = vmul.f32 0.01, %v3532_v29 }
 0x332   : > { %v4632_v40 = vsel %vm3860_vm6, %v2756_v27, %v4246_v33  ;;  %vm3861_vm8 = vcmp.ge.f32.partialorder %v2759_v34, 0.0  ;;  %v4247_v41 = vmul.f32 0.01, %v2759_v34  ;;  %vm4055_vm1 = vcmp.ge.f32.partialorder %v3535_v38, 0.0 }
 0x333   : > { %v7790_v42 = vpack.c.bf16 %v4632_v40, %v4632_v40  ;;  %v4826_v58 = vsel %vm4054_vm7, %v3532_v29, %v4440_v37  ;;  %v4441_v43 = vmul.f32 0.01, %v3535_v38 }
 0x334   : > { %v4633_v44 = vsel %vm3861_vm8, %v2759_v34, %v4247_v41  ;;  %v7984_v45 = vpack.c.bf16 %v4826_v58, %v4826_v58 }
 0x335   : > { %6563 = vst.msk [vmem:[%s9521_s29 + $0x248] sm:$0xf] %vm6416_vm4, %v7790_v42  ;;  %v7791_v46 = vpack.c.bf16 %v4633_v44, %v4633_v44  ;;  %v4827_v47 = vsel %vm4055_vm1, %v3535_v38, %v4441_v43  ;;  %v2763_v48 = vpop.f32.mrb[40].mxu0  ;;  %v3539_v49 = vpop.f32.mrb[40].mxu1 }
 0x336   : > { %6757 = vst.msk [vmem:[%s9521_s29 + $0x550] sm:$0xf] %vm6416_vm4, %v7984_v45  ;;  %v7985_v50 = vpack.c.bf16 %v4827_v47, %v4827_v47  ;;  %v2764_v0 = vadd.f32 %v10914_v55, %v2763_v48  ;;  %v8530_v51 = vpop.f32.mrb[41].mxu0  ;;  %v3540_v52 = vadd.f32 %v10914_v55, %v3539_v49  ;;  %v8918_v53 = vpop.f32.mrb[41].mxu1 }
 0x337   : > { %6564 = vst.msk [vmem:[%s9521_s29 + $0x24c] sm:$0xf] %vm6416_vm4, %v7791_v46  ;;  %v2766_v54 = vpop.f32.mrb[42].mxu0  ;;  %v3542_v1 = vpop.f32.mrb[42].mxu1 }
 0x338   : > { %6758 = vst.msk [vmem:[%s9521_s29 + $0x554] sm:$0xf] %vm6416_vm4, %v7985_v50  ;;  %vm3862_vm9 = vcmp.ge.f32.partialorder %v2764_v0, 0.0  ;;  %v4248_v56 = vmul.f32 0.01, %v2764_v0  ;;  %v2767_v9 = vadd.f32 %v10914_v55, %v2766_v54  ;;  %v8531_v57 = vpop.f32.mrb[43].mxu0  ;;  %v3543_v61 = vadd.f32 %v10914_v55, %v3542_v1 }
 0x339   : > { %vm4056_vm10 = vcmp.ge.f32.partialorder %v3540_v52, 0.0  ;;  %v8919_v59 = vpop.f32.mrb[43].mxu1  ;;  %v4442_v60 = vmul.f32 0.01, %v3540_v52 }
 0x33a   : > { %v4634_v62 = vsel %vm3862_vm9, %v2764_v0, %v4248_v56  ;;  %vm3863_vm11 = vcmp.ge.f32.partialorder %v2767_v9, 0.0  ;;  %v4249_v63 = vmul.f32 0.01, %v2767_v9  ;;  %vm4057_vm12 = vcmp.ge.f32.partialorder %v3543_v61, 0.0 }
 0x33b   : > { %v7792_v2 = vpack.c.bf16 %v4634_v62, %v4634_v62  ;;  %v4828_v17 = vsel %vm4056_vm10, %v3540_v52, %v4442_v60  ;;  %v4443_v3 = vmul.f32 0.01, %v3543_v61 }
 0x33c   : > { %v4635_v4 = vsel %vm3863_vm11, %v2767_v9, %v4249_v63  ;;  %v7986_v5 = vpack.c.bf16 %v4828_v17, %v4828_v17 }
 0x33d   : > { %6565 = vst.msk [vmem:[%s9521_s29 + $0x250] sm:$0xf] %vm6416_vm4, %v7792_v2  ;;  %v7793_v6 = vpack.c.bf16 %v4635_v4, %v4635_v4  ;;  %v4829_v7 = vsel %vm4057_vm12, %v3543_v61, %v4443_v3  ;;  %v2771_v8 = vpop.f32.mrb[44].mxu0  ;;  %v3547_v10 = vpop.f32.mrb[44].mxu1 }
 0x33e   : > { %6759 = vst.msk [vmem:[%s9521_s29 + $0x558] sm:$0xf] %vm6416_vm4, %v7986_v5  ;;  %v7987_v39 = vpack.c.bf16 %v4829_v7, %v4829_v7  ;;  %v2772_v11 = vadd.f32 %v10914_v55, %v2771_v8  ;;  %v8534_v12 = vpop.f32.mrb[45].mxu0  ;;  %v3548_v13 = vadd.f32 %v10914_v55, %v3547_v10  ;;  %v8922_v14 = vpop.f32.mrb[45].mxu1 }
 0x33f   : > { %6566 = vst.msk [vmem:[%s9521_s29 + $0x254] sm:$0xf] %vm6416_vm4, %v7793_v6  ;;  %v2774_v15 = vpop.f32.mrb[46].mxu0  ;;  %v3550_v16 = vpop.f32.mrb[46].mxu1 }
 0x340   : > { %6760 = vst.msk [vmem:[%s9521_s29 + $0x55c] sm:$0xf] %vm6416_vm4, %v7987_v39  ;;  %vm3864_vm13 = vcmp.ge.f32.partialorder %v2772_v11, 0.0  ;;  %v4250_v18 = vmul.f32 0.01, %v2772_v11  ;;  %v2775_v19 = vadd.f32 %v10914_v55, %v2774_v15  ;;  %v8535_v20 = vpop.f32.mrb[47].mxu0  ;;  %v3551_v23 = vadd.f32 %v10914_v55, %v3550_v16 }
 0x341   : > { %vm4058_vm14 = vcmp.ge.f32.partialorder %v3548_v13, 0.0  ;;  %v8923_v21 = vpop.f32.mrb[47].mxu1  ;;  %v4444_v22 = vmul.f32 0.01, %v3548_v13 }
 0x342   : > { %v4636_v24 = vsel %vm3864_vm13, %v2772_v11, %v4250_v18  ;;  %vm3865_vm15 = vcmp.ge.f32.partialorder %v2775_v19, 0.0  ;;  %v4251_v25 = vmul.f32 0.01, %v2775_v19  ;;  %vm4059_vm2 = vcmp.ge.f32.partialorder %v3551_v23, 0.0 }
 0x343   : > { %v7794_v26 = vpack.c.bf16 %v4636_v24, %v4636_v24  ;;  %v4830_v27 = vsel %vm4058_vm14, %v3548_v13, %v4444_v22  ;;  %v4445_v28 = vmul.f32 0.01, %v3551_v23 }
 0x344   : > { %v4637_v29 = vsel %vm3865_vm15, %v2775_v19, %v4251_v25  ;;  %v7988_v30 = vpack.c.bf16 %v4830_v27, %v4830_v27 }
 0x345   : > { %6567 = vst.msk [vmem:[%s9521_s29 + $0x258] sm:$0xf] %vm6416_vm4, %v7794_v26  ;;  %v7795_v31 = vpack.c.bf16 %v4637_v29, %v4637_v29  ;;  %v4831_v32 = vsel %vm4059_vm2, %v3551_v23, %v4445_v28  ;;  %v2779_v33 = vpop.f32.mrb[48].mxu0  ;;  %v3555_v34 = vpop.f32.mrb[48].mxu1 }
 0x346   : > { %6761 = vst.msk [vmem:[%s9521_s29 + $0x560] sm:$0xf] %vm6416_vm4, %v7988_v30  ;;  %v7989_v35 = vpack.c.bf16 %v4831_v32, %v4831_v32  ;;  %v2780_v36 = vadd.f32 %v10914_v55, %v2779_v33  ;;  %v8538_v37 = vpop.f32.mrb[49].mxu0  ;;  %v3556_v38 = vadd.f32 %v10914_v55, %v3555_v34  ;;  %v8926_v40 = vpop.f32.mrb[49].mxu1 }
 0x347   : > { %6568 = vst.msk [vmem:[%s9521_s29 + $0x25c] sm:$0xf] %vm6416_vm4, %v7795_v31  ;;  %v2782_v41 = vpop.f32.mrb[50].mxu0  ;;  %v3558_v42 = vpop.f32.mrb[50].mxu1 }
 0x348   : > { %6762 = vst.msk [vmem:[%s9521_s29 + $0x564] sm:$0xf] %vm6416_vm4, %v7989_v35  ;;  %vm3866_vm3 = vcmp.ge.f32.partialorder %v2780_v36, 0.0  ;;  %v4252_v58 = vmul.f32 0.01, %v2780_v36  ;;  %v2783_v43 = vadd.f32 %v10914_v55, %v2782_v41  ;;  %v8539_v44 = vpop.f32.mrb[51].mxu0  ;;  %v3559_v47 = vadd.f32 %v10914_v55, %v3558_v42 }
 0x349   : > { %vm4060_vm5 = vcmp.ge.f32.partialorder %v3556_v38, 0.0  ;;  %v8927_v45 = vpop.f32.mrb[51].mxu1  ;;  %v4446_v46 = vmul.f32 0.01, %v3556_v38 }
 0x34a   : > { %v4638_v48 = vsel %vm3866_vm3, %v2780_v36, %v4252_v58  ;;  %vm3867_vm0 = vcmp.ge.f32.partialorder %v2783_v43, 0.0  ;;  %v4253_v49 = vmul.f32 0.01, %v2783_v43  ;;  %vm4061_vm6 = vcmp.ge.f32.partialorder %v3559_v47, 0.0 }
 0x34b   : > { %v7796_v50 = vpack.c.bf16 %v4638_v48, %v4638_v48  ;;  %v4832_v0 = vsel %vm4060_vm5, %v3556_v38, %v4446_v46  ;;  %v4447_v51 = vmul.f32 0.01, %v3559_v47 }
 0x34c   : > { %v4639_v52 = vsel %vm3867_vm0, %v2783_v43, %v4253_v49  ;;  %v7990_v53 = vpack.c.bf16 %v4832_v0, %v4832_v0 }
 0x34d   : > { %6569 = vst.msk [vmem:[%s9521_s29 + $0x260] sm:$0xf] %vm6416_vm4, %v7796_v50  ;;  %v7797_v54 = vpack.c.bf16 %v4639_v52, %v4639_v52  ;;  %v4833_v1 = vsel %vm4061_vm6, %v3559_v47, %v4447_v51  ;;  %v2787_v56 = vpop.f32.mrb[52].mxu0  ;;  %v3563_v9 = vpop.f32.mrb[52].mxu1 }
 0x34e   : > { %6763 = vst.msk [vmem:[%s9521_s29 + $0x568] sm:$0xf] %vm6416_vm4, %v7990_v53  ;;  %v7991_v57 = vpack.c.bf16 %v4833_v1, %v4833_v1  ;;  %v2788_v59 = vadd.f32 %v10914_v55, %v2787_v56  ;;  %v8542_v60 = vpop.f32.mrb[53].mxu0  ;;  %v3564_v61 = vadd.f32 %v10914_v55, %v3563_v9  ;;  %v8930_v62 = vpop.f32.mrb[53].mxu1 }
 0x34f   : > { %6570 = vst.msk [vmem:[%s9521_s29 + $0x264] sm:$0xf] %vm6416_vm4, %v7797_v54  ;;  %v2790_v63 = vpop.f32.mrb[54].mxu0  ;;  %v3566_v2 = vpop.f32.mrb[54].mxu1 }
 0x350   : > { %6764 = vst.msk [vmem:[%s9521_s29 + $0x56c] sm:$0xf] %vm6416_vm4, %v7991_v57  ;;  %vm3868_vm7 = vcmp.ge.f32.partialorder %v2788_v59, 0.0  ;;  %v4254_v17 = vmul.f32 0.01, %v2788_v59  ;;  %v2791_v3 = vadd.f32 %v10914_v55, %v2790_v63  ;;  %v8543_v4 = vpop.f32.mrb[55].mxu0  ;;  %v3567_v7 = vadd.f32 %v10914_v55, %v3566_v2 }
 0x351   : > { %vm4062_vm8 = vcmp.ge.f32.partialorder %v3564_v61, 0.0  ;;  %v8931_v5 = vpop.f32.mrb[55].mxu1  ;;  %v4448_v6 = vmul.f32 0.01, %v3564_v61 }
 0x352   : > { %v4640_v8 = vsel %vm3868_vm7, %v2788_v59, %v4254_v17  ;;  %vm3869_vm1 = vcmp.ge.f32.partialorder %v2791_v3, 0.0  ;;  %v4255_v10 = vmul.f32 0.01, %v2791_v3  ;;  %vm4063_vm9 = vcmp.ge.f32.partialorder %v3567_v7, 0.0 }
 0x353   : > { %v7798_v39 = vpack.c.bf16 %v4640_v8, %v4640_v8  ;;  %v4834_v11 = vsel %vm4062_vm8, %v3564_v61, %v4448_v6  ;;  %v4449_v12 = vmul.f32 0.01, %v3567_v7 }
 0x354   : > { %v4641_v13 = vsel %vm3869_vm1, %v2791_v3, %v4255_v10  ;;  %v7992_v14 = vpack.c.bf16 %v4834_v11, %v4834_v11 }
 0x355   : > { %6571 = vst.msk [vmem:[%s9521_s29 + $0x268] sm:$0xf] %vm6416_vm4, %v7798_v39  ;;  %v7799_v15 = vpack.c.bf16 %v4641_v13, %v4641_v13  ;;  %v4835_v16 = vsel %vm4063_vm9, %v3567_v7, %v4449_v12  ;;  %v2795_v18 = vpop.f32.mrb[56].mxu0  ;;  %v3571_v19 = vpop.f32.mrb[56].mxu1 }
 0x356   : > { %6765 = vst.msk [vmem:[%s9521_s29 + $0x570] sm:$0xf] %vm6416_vm4, %v7992_v14  ;;  %v7993_v20 = vpack.c.bf16 %v4835_v16, %v4835_v16  ;;  %v2796_v21 = vadd.f32 %v10914_v55, %v2795_v18  ;;  %v8546_v22 = vpop.f32.mrb[57].mxu0  ;;  %v3572_v23 = vadd.f32 %v10914_v55, %v3571_v19  ;;  %v8934_v24 = vpop.f32.mrb[57].mxu1 }
 0x357   : > { %6572 = vst.msk [vmem:[%s9521_s29 + $0x26c] sm:$0xf] %vm6416_vm4, %v7799_v15  ;;  %v2798_v25 = vpop.f32.mrb[58].mxu0  ;;  %v3574_v26 = vpop.f32.mrb[58].mxu1 }
 0x358   : > { %6766 = vst.msk [vmem:[%s9521_s29 + $0x574] sm:$0xf] %vm6416_vm4, %v7993_v20  ;;  %vm3870_vm10 = vcmp.ge.f32.partialorder %v2796_v21, 0.0  ;;  %v4256_v27 = vmul.f32 0.01, %v2796_v21  ;;  %v2799_v28 = vadd.f32 %v10914_v55, %v2798_v25  ;;  %v8547_v29 = vpop.f32.mrb[59].mxu0  ;;  %v3575_v32 = vadd.f32 %v10914_v55, %v3574_v26 }
 0x359   : > { %vm4064_vm11 = vcmp.ge.f32.partialorder %v3572_v23, 0.0  ;;  %v8935_v30 = vpop.f32.mrb[59].mxu1  ;;  %v4450_v31 = vmul.f32 0.01, %v3572_v23 }
 0x35a   : > { %v4642_v33 = vsel %vm3870_vm10, %v2796_v21, %v4256_v27  ;;  %vm3871_vm12 = vcmp.ge.f32.partialorder %v2799_v28, 0.0  ;;  %v4257_v34 = vmul.f32 0.01, %v2799_v28  ;;  %vm4065_vm13 = vcmp.ge.f32.partialorder %v3575_v32, 0.0 }
 0x35b   : > { %v7800_v35 = vpack.c.bf16 %v4642_v33, %v4642_v33  ;;  %v4836_v36 = vsel %vm4064_vm11, %v3572_v23, %v4450_v31  ;;  %v4451_v37 = vmul.f32 0.01, %v3575_v32 }
 0x35c   : > { %v4643_v38 = vsel %vm3871_vm12, %v2799_v28, %v4257_v34  ;;  %v7994_v40 = vpack.c.bf16 %v4836_v36, %v4836_v36 }
 0x35d   : > { %6573 = vst.msk [vmem:[%s9521_s29 + $0x270] sm:$0xf] %vm6416_vm4, %v7800_v35  ;;  %v7801_v41 = vpack.c.bf16 %v4643_v38, %v4643_v38  ;;  %v4837_v42 = vsel %vm4065_vm13, %v3575_v32, %v4451_v37  ;;  %v2803_v58 = vpop.f32.mrb[60].mxu0  ;;  %v3579_v43 = vpop.f32.mrb[60].mxu1 }
 0x35e   : > { %6767 = vst.msk [vmem:[%s9521_s29 + $0x578] sm:$0xf] %vm6416_vm4, %v7994_v40  ;;  %v7995_v44 = vpack.c.bf16 %v4837_v42, %v4837_v42  ;;  %v2804_v45 = vadd.f32 %v10914_v55, %v2803_v58  ;;  %v8550_v46 = vpop.f32.mrb[61].mxu0  ;;  %v3580_v47 = vadd.f32 %v10914_v55, %v3579_v43  ;;  %v8938_v48 = vpop.f32.mrb[61].mxu1 }
 0x35f   : > { %6574 = vst.msk [vmem:[%s9521_s29 + $0x274] sm:$0xf] %vm6416_vm4, %v7801_v41  ;;  %v2806_v49 = vpop.f32.mrb[62].mxu0  ;;  %v3582_v50 = vpop.f32.mrb[62].mxu1 }
 0x360   : > { %6768 = vst.msk [vmem:[%s9521_s29 + $0x57c] sm:$0xf] %vm6416_vm4, %v7995_v44  ;;  %vm3872_vm14 = vcmp.ge.f32.partialorder %v2804_v45, 0.0  ;;  %v4258_v0 = vmul.f32 0.01, %v2804_v45  ;;  %v2807_v51 = vadd.f32 %v10914_v55, %v2806_v49  ;;  %v8551_v52 = vpop.f32.mrb[63].mxu0  ;;  %v3583_v1 = vadd.f32 %v10914_v55, %v3582_v50 }
 0x361   : > { %vm4066_vm15 = vcmp.ge.f32.partialorder %v3580_v47, 0.0  ;;  %v8939_v53 = vpop.f32.mrb[63].mxu1  ;;  %v4452_v54 = vmul.f32 0.01, %v3580_v47 }
 0x362   : > { %v4644_v56 = vsel %vm3872_vm14, %v2804_v45, %v4258_v0  ;;  %vm3873_vm2 = vcmp.ge.f32.partialorder %v2807_v51, 0.0  ;;  %v4259_v9 = vmul.f32 0.01, %v2807_v51  ;;  %vm4067_vm3 = vcmp.ge.f32.partialorder %v3583_v1, 0.0 }
 0x363   : > { %v7802_v57 = vpack.c.bf16 %v4644_v56, %v4644_v56  ;;  %v4838_v59 = vsel %vm4066_vm15, %v3580_v47, %v4452_v54  ;;  %v4453_v60 = vmul.f32 0.01, %v3583_v1 }
 0x364   : > { %v4645_v61 = vsel %vm3873_vm2, %v2807_v51, %v4259_v9  ;;  %v7996_v62 = vpack.c.bf16 %v4838_v59, %v4838_v59 }
 0x365   : > { %6575 = vst.msk [vmem:[%s9521_s29 + $0x278] sm:$0xf] %vm6416_vm4, %v7802_v57  ;;  %v7803_v63 = vpack.c.bf16 %v4645_v61, %v4645_v61  ;;  %v4839_v2 = vsel %vm4067_vm3, %v3583_v1, %v4453_v60  ;;  %v2811_v17 = vpop.f32.mrb[64].mxu0  ;;  %v3587_v3 = vpop.f32.mrb[64].mxu1 }
 0x366   : > { %6769 = vst.msk [vmem:[%s9521_s29 + $0x580] sm:$0xf] %vm6416_vm4, %v7996_v62  ;;  %v7997_v4 = vpack.c.bf16 %v4839_v2, %v4839_v2  ;;  %v2812_v5 = vadd.f32 %v10914_v55, %v2811_v17  ;;  %v8554_v6 = vpop.f32.mrb[65].mxu0  ;;  %v3588_v7 = vadd.f32 %v10914_v55, %v3587_v3  ;;  %v8942_v8 = vpop.f32.mrb[65].mxu1 }
 0x367   : > { %6576 = vst.msk [vmem:[%s9521_s29 + $0x27c] sm:$0xf] %vm6416_vm4, %v7803_v63  ;;  %v2814_v10 = vpop.f32.mrb[66].mxu0  ;;  %v3590_v39 = vpop.f32.mrb[66].mxu1 }
 0x368   : > { %6770 = vst.msk [vmem:[%s9521_s29 + $0x584] sm:$0xf] %vm6416_vm4, %v7997_v4  ;;  %vm3874_vm5 = vcmp.ge.f32.partialorder %v2812_v5, 0.0  ;;  %v4260_v11 = vmul.f32 0.01, %v2812_v5  ;;  %v2815_v12 = vadd.f32 %v10914_v55, %v2814_v10  ;;  %v8555_v13 = vpop.f32.mrb[67].mxu0  ;;  %v3591_v16 = vadd.f32 %v10914_v55, %v3590_v39 }
 0x369   : > { %vm4068_vm0 = vcmp.ge.f32.partialorder %v3588_v7, 0.0  ;;  %v8943_v14 = vpop.f32.mrb[67].mxu1  ;;  %v4454_v15 = vmul.f32 0.01, %v3588_v7 }
 0x36a   : > { %v4646_v18 = vsel %vm3874_vm5, %v2812_v5, %v4260_v11  ;;  %vm3875_vm6 = vcmp.ge.f32.partialorder %v2815_v12, 0.0  ;;  %v4261_v19 = vmul.f32 0.01, %v2815_v12  ;;  %vm4069_vm7 = vcmp.ge.f32.partialorder %v3591_v16, 0.0 }
 0x36b   : > { %v7804_v20 = vpack.c.bf16 %v4646_v18, %v4646_v18  ;;  %v4840_v21 = vsel %vm4068_vm0, %v3588_v7, %v4454_v15  ;;  %v4455_v22 = vmul.f32 0.01, %v3591_v16 }
 0x36c   : > { %v4647_v23 = vsel %vm3875_vm6, %v2815_v12, %v4261_v19  ;;  %v7998_v24 = vpack.c.bf16 %v4840_v21, %v4840_v21 }
 0x36d   : > { %6577 = vst.msk [vmem:[%s9521_s29 + $0x280] sm:$0xf] %vm6416_vm4, %v7804_v20  ;;  %v7805_v25 = vpack.c.bf16 %v4647_v23, %v4647_v23  ;;  %v4841_v26 = vsel %vm4069_vm7, %v3591_v16, %v4455_v22  ;;  %v2819_v27 = vpop.f32.mrb[68].mxu0  ;;  %v3595_v28 = vpop.f32.mrb[68].mxu1 }
 0x36e   : > { %6771 = vst.msk [vmem:[%s9521_s29 + $0x588] sm:$0xf] %vm6416_vm4, %v7998_v24  ;;  %v7999_v29 = vpack.c.bf16 %v4841_v26, %v4841_v26  ;;  %v2820_v30 = vadd.f32 %v10914_v55, %v2819_v27  ;;  %v8558_v31 = vpop.f32.mrb[69].mxu0  ;;  %v3596_v32 = vadd.f32 %v10914_v55, %v3595_v28  ;;  %v8946_v33 = vpop.f32.mrb[69].mxu1 }
 0x36f   : > { %6578 = vst.msk [vmem:[%s9521_s29 + $0x284] sm:$0xf] %vm6416_vm4, %v7805_v25  ;;  %v2822_v34 = vpop.f32.mrb[70].mxu0  ;;  %v3598_v35 = vpop.f32.mrb[70].mxu1 }
 0x370   : > { %6772 = vst.msk [vmem:[%s9521_s29 + $0x58c] sm:$0xf] %vm6416_vm4, %v7999_v29  ;;  %vm3876_vm8 = vcmp.ge.f32.partialorder %v2820_v30, 0.0  ;;  %v4262_v36 = vmul.f32 0.01, %v2820_v30  ;;  %v2823_v37 = vadd.f32 %v10914_v55, %v2822_v34  ;;  %v8559_v38 = vpop.f32.mrb[71].mxu0  ;;  %v3599_v42 = vadd.f32 %v10914_v55, %v3598_v35 }
 0x371   : > { %vm4070_vm1 = vcmp.ge.f32.partialorder %v3596_v32, 0.0  ;;  %v8947_v40 = vpop.f32.mrb[71].mxu1  ;;  %v4456_v41 = vmul.f32 0.01, %v3596_v32 }
 0x372   : > { %v4648_v58 = vsel %vm3876_vm8, %v2820_v30, %v4262_v36  ;;  %vm3877_vm9 = vcmp.ge.f32.partialorder %v2823_v37, 0.0  ;;  %v4263_v43 = vmul.f32 0.01, %v2823_v37  ;;  %vm4071_vm10 = vcmp.ge.f32.partialorder %v3599_v42, 0.0 }
 0x373   : > { %v7806_v44 = vpack.c.bf16 %v4648_v58, %v4648_v58  ;;  %v4842_v45 = vsel %vm4070_vm1, %v3596_v32, %v4456_v41  ;;  %v4457_v46 = vmul.f32 0.01, %v3599_v42 }
 0x374   : > { %v4649_v47 = vsel %vm3877_vm9, %v2823_v37, %v4263_v43  ;;  %v8000_v48 = vpack.c.bf16 %v4842_v45, %v4842_v45 }
 0x375   : > { %6579 = vst.msk [vmem:[%s9521_s29 + $0x288] sm:$0xf] %vm6416_vm4, %v7806_v44  ;;  %v7807_v49 = vpack.c.bf16 %v4649_v47, %v4649_v47  ;;  %v4843_v50 = vsel %vm4071_vm10, %v3599_v42, %v4457_v46  ;;  %v2827_v0 = vpop.f32.mrb[72].mxu0  ;;  %v3603_v51 = vpop.f32.mrb[72].mxu1 }
 0x376   : > { %6773 = vst.msk [vmem:[%s9521_s29 + $0x590] sm:$0xf] %vm6416_vm4, %v8000_v48  ;;  %v8001_v52 = vpack.c.bf16 %v4843_v50, %v4843_v50  ;;  %v2828_v53 = vadd.f32 %v10914_v55, %v2827_v0  ;;  %v8562_v54 = vpop.f32.mrb[73].mxu0  ;;  %v3604_v1 = vadd.f32 %v10914_v55, %v3603_v51  ;;  %v8950_v56 = vpop.f32.mrb[73].mxu1 }
 0x377   : > { %6580 = vst.msk [vmem:[%s9521_s29 + $0x28c] sm:$0xf] %vm6416_vm4, %v7807_v49  ;;  %v2830_v9 = vpop.f32.mrb[74].mxu0  ;;  %v3606_v57 = vpop.f32.mrb[74].mxu1 }
 0x378   : > { %6774 = vst.msk [vmem:[%s9521_s29 + $0x594] sm:$0xf] %vm6416_vm4, %v8001_v52  ;;  %vm3878_vm11 = vcmp.ge.f32.partialorder %v2828_v53, 0.0  ;;  %v4264_v59 = vmul.f32 0.01, %v2828_v53  ;;  %v2831_v60 = vadd.f32 %v10914_v55, %v2830_v9  ;;  %v8563_v61 = vpop.f32.mrb[75].mxu0  ;;  %v3607_v2 = vadd.f32 %v10914_v55, %v3606_v57 }
 0x379   : > { %vm4072_vm12 = vcmp.ge.f32.partialorder %v3604_v1, 0.0  ;;  %v8951_v62 = vpop.f32.mrb[75].mxu1  ;;  %v4458_v63 = vmul.f32 0.01, %v3604_v1  ;;  %v11113_v61 = vld [vmem:[%s11262_s2] ss:$0 sm:$0xff] }
 0x37a   : > { %v4650_v17 = vsel %vm3878_vm11, %v2828_v53, %v4264_v59  ;;  %vm3879_vm13 = vcmp.ge.f32.partialorder %v2831_v60, 0.0  ;;  %v4265_v3 = vmul.f32 0.01, %v2831_v60  ;;  %vm4073_vm14 = vcmp.ge.f32.partialorder %v3607_v2, 0.0 }
 0x37b   : > { %v7808_v4 = vpack.c.bf16 %v4650_v17, %v4650_v17  ;;  %v4844_v5 = vsel %vm4072_vm12, %v3604_v1, %v4458_v63  ;;  %v4459_v6 = vmul.f32 0.01, %v3607_v2 }
 0x37c   : > { %v4651_v7 = vsel %vm3879_vm13, %v2831_v60, %v4265_v3  ;;  %v8002_v8 = vpack.c.bf16 %v4844_v5, %v4844_v5 }
 0x37d   : > { %6581 = vst.msk [vmem:[%s9521_s29 + $0x290] sm:$0xf] %vm6416_vm4, %v7808_v4  ;;  %v7809_v10 = vpack.c.bf16 %v4651_v7, %v4651_v7  ;;  %v4845_v39 = vsel %vm4073_vm14, %v3607_v2, %v4459_v6  ;;  %v2835_v11 = vpop.f32.mrb[76].mxu0  ;;  %v3611_v12 = vpop.f32.mrb[76].mxu1 }
 0x37e   : > { %6775 = vst.msk [vmem:[%s9521_s29 + $0x598] sm:$0xf] %vm6416_vm4, %v8002_v8  ;;  %v8003_v13 = vpack.c.bf16 %v4845_v39, %v4845_v39  ;;  %v2836_v14 = vadd.f32 %v10914_v55, %v2835_v11  ;;  %v8566_v15 = vpop.f32.mrb[77].mxu0  ;;  %v3612_v16 = vadd.f32 %v10914_v55, %v3611_v12  ;;  %v8954_v18 = vpop.f32.mrb[77].mxu1 }
 0x37f   : > { %6582 = vst.msk [vmem:[%s9521_s29 + $0x294] sm:$0xf] %vm6416_vm4, %v7809_v10  ;;  %v2838_v19 = vpop.f32.mrb[78].mxu0  ;;  %v3614_v20 = vpop.f32.mrb[78].mxu1 }
 0x380   : > { %6776 = vst.msk [vmem:[%s9521_s29 + $0x59c] sm:$0xf] %vm6416_vm4, %v8003_v13  ;;  %vm3880_vm15 = vcmp.ge.f32.partialorder %v2836_v14, 0.0  ;;  %v4266_v21 = vmul.f32 0.01, %v2836_v14  ;;  %v2839_v22 = vadd.f32 %v10914_v55, %v2838_v19  ;;  %v8567_v23 = vpop.f32.mrb[79].mxu0  ;;  %v3615_v26 = vadd.f32 %v10914_v55, %v3614_v20 }
 0x381   : > { %vm4074_vm2 = vcmp.ge.f32.partialorder %v3612_v16, 0.0  ;;  %v8955_v24 = vpop.f32.mrb[79].mxu1  ;;  %v4460_v25 = vmul.f32 0.01, %v3612_v16 }
 0x382   : > { %v4652_v27 = vsel %vm3880_vm15, %v2836_v14, %v4266_v21  ;;  %vm3881_vm3 = vcmp.ge.f32.partialorder %v2839_v22, 0.0  ;;  %v4267_v28 = vmul.f32 0.01, %v2839_v22  ;;  %vm4075_vm5 = vcmp.ge.f32.partialorder %v3615_v26, 0.0 }
 0x383   : > { %v7810_v29 = vpack.c.bf16 %v4652_v27, %v4652_v27  ;;  %v4846_v30 = vsel %vm4074_vm2, %v3612_v16, %v4460_v25  ;;  %v4461_v31 = vmul.f32 0.01, %v3615_v26 }
 0x384   : > { %v4653_v32 = vsel %vm3881_vm3, %v2839_v22, %v4267_v28  ;;  %v8004_v33 = vpack.c.bf16 %v4846_v30, %v4846_v30 }
 0x385   : > { %6583 = vst.msk [vmem:[%s9521_s29 + $0x298] sm:$0xf] %vm6416_vm4, %v7810_v29  ;;  %v7811_v34 = vpack.c.bf16 %v4653_v32, %v4653_v32  ;;  %v4847_v35 = vsel %vm4075_vm5, %v3615_v26, %v4461_v31  ;;  %v2843_v36 = vpop.f32.mrb[80].mxu0  ;;  %v3619_v37 = vpop.f32.mrb[80].mxu1 }
 0x386   : > { %6777 = vst.msk [vmem:[%s9521_s29 + $0x5a0] sm:$0xf] %vm6416_vm4, %v8004_v33  ;;  %v8005_v38 = vpack.c.bf16 %v4847_v35, %v4847_v35  ;;  %v2844_v40 = vadd.f32 %v10914_v55, %v2843_v36  ;;  %v8570_v41 = vpop.f32.mrb[81].mxu0  ;;  %v3620_v42 = vadd.f32 %v10914_v55, %v3619_v37  ;;  %v8958_v58 = vpop.f32.mrb[81].mxu1 }
 0x387   : > { %6584 = vst.msk [vmem:[%s9521_s29 + $0x29c] sm:$0xf] %vm6416_vm4, %v7811_v34  ;;  %v2846_v43 = vpop.f32.mrb[82].mxu0  ;;  %v3622_v44 = vpop.f32.mrb[82].mxu1 }
 0x388   : > { %6778 = vst.msk [vmem:[%s9521_s29 + $0x5a4] sm:$0xf] %vm6416_vm4, %v8005_v38  ;;  %vm3882_vm0 = vcmp.ge.f32.partialorder %v2844_v40, 0.0  ;;  %v4268_v45 = vmul.f32 0.01, %v2844_v40  ;;  %v2847_v46 = vadd.f32 %v10914_v55, %v2846_v43  ;;  %v8571_v47 = vpop.f32.mrb[83].mxu0  ;;  %v3623_v50 = vadd.f32 %v10914_v55, %v3622_v44 }
 0x389   : > { %vm4076_vm6 = vcmp.ge.f32.partialorder %v3620_v42, 0.0  ;;  %v8959_v48 = vpop.f32.mrb[83].mxu1  ;;  %v4462_v49 = vmul.f32 0.01, %v3620_v42 }
 0x38a   : > { %v4654_v0 = vsel %vm3882_vm0, %v2844_v40, %v4268_v45  ;;  %vm3883_vm7 = vcmp.ge.f32.partialorder %v2847_v46, 0.0  ;;  %v4269_v51 = vmul.f32 0.01, %v2847_v46  ;;  %vm4077_vm8 = vcmp.ge.f32.partialorder %v3623_v50, 0.0 }
 0x38b   : > { %v7812_v52 = vpack.c.bf16 %v4654_v0, %v4654_v0  ;;  %v4848_v53 = vsel %vm4076_vm6, %v3620_v42, %v4462_v49  ;;  %v4463_v54 = vmul.f32 0.01, %v3623_v50 }
 0x38c   : > { %v4655_v1 = vsel %vm3883_vm7, %v2847_v46, %v4269_v51  ;;  %v8006_v56 = vpack.c.bf16 %v4848_v53, %v4848_v53 }
 0x38d   : > { %6585 = vst.msk [vmem:[%s9521_s29 + $0x2a0] sm:$0xf] %vm6416_vm4, %v7812_v52  ;;  %v7813_v9 = vpack.c.bf16 %v4655_v1, %v4655_v1  ;;  %v4849_v57 = vsel %vm4077_vm8, %v3623_v50, %v4463_v54  ;;  %v2851_v59 = vpop.f32.mrb[84].mxu0  ;;  %v3627_v60 = vpop.f32.mrb[84].mxu1 }
 0x38e   : > { %6779 = vst.msk [vmem:[%s9521_s29 + $0x5a8] sm:$0xf] %vm6416_vm4, %v8006_v56  ;;  %v8007_v55 = vpack.c.bf16 %v4849_v57, %v4849_v57  ;;  %v2852_v62 = vadd.f32 %v11113_v61, %v2851_v59  ;;  %v8574_v63 = vpop.f32.mrb[85].mxu0  ;;  %v3628_v2 = vadd.f32 %v11113_v61, %v3627_v60  ;;  %v8962_v17 = vpop.f32.mrb[85].mxu1 }
 0x38f   : > { %6586 = vst.msk [vmem:[%s9521_s29 + $0x2a4] sm:$0xf] %vm6416_vm4, %v7813_v9  ;;  %v2854_v3 = vpop.f32.mrb[86].mxu0  ;;  %v3630_v4 = vpop.f32.mrb[86].mxu1 }
 0x390   : > { %6780 = vst.msk [vmem:[%s9521_s29 + $0x5ac] sm:$0xf] %vm6416_vm4, %v8007_v55  ;;  %vm3884_vm1 = vcmp.ge.f32.partialorder %v2852_v62, 0.0  ;;  %v4270_v5 = vmul.f32 0.01, %v2852_v62  ;;  %v2855_v6 = vadd.f32 %v11113_v61, %v2854_v3  ;;  %v8575_v7 = vpop.f32.mrb[87].mxu0  ;;  %v3631_v39 = vadd.f32 %v11113_v61, %v3630_v4 }
 0x391   : > { %vm4078_vm9 = vcmp.ge.f32.partialorder %v3628_v2, 0.0  ;;  %v8963_v8 = vpop.f32.mrb[87].mxu1  ;;  %v4464_v10 = vmul.f32 0.01, %v3628_v2 }
 0x392   : > { %v4656_v11 = vsel %vm3884_vm1, %v2852_v62, %v4270_v5  ;;  %vm3885_vm10 = vcmp.ge.f32.partialorder %v2855_v6, 0.0  ;;  %v4271_v12 = vmul.f32 0.01, %v2855_v6  ;;  %vm4079_vm11 = vcmp.ge.f32.partialorder %v3631_v39, 0.0 }
 0x393   : > { %v7814_v13 = vpack.c.bf16 %v4656_v11, %v4656_v11  ;;  %v4850_v14 = vsel %vm4078_vm9, %v3628_v2, %v4464_v10  ;;  %v4465_v15 = vmul.f32 0.01, %v3631_v39 }
 0x394   : > { %v4657_v16 = vsel %vm3885_vm10, %v2855_v6, %v4271_v12  ;;  %v8008_v18 = vpack.c.bf16 %v4850_v14, %v4850_v14 }
 0x395   : > { %6587 = vst.msk [vmem:[%s9521_s29 + $0x2a8] sm:$0xf] %vm6416_vm4, %v7814_v13  ;;  %v7815_v19 = vpack.c.bf16 %v4657_v16, %v4657_v16  ;;  %v4851_v20 = vsel %vm4079_vm11, %v3631_v39, %v4465_v15  ;;  %v2859_v21 = vpop.f32.mrb[88].mxu0  ;;  %v3635_v22 = vpop.f32.mrb[88].mxu1 }
 0x396   : > { %6781 = vst.msk [vmem:[%s9521_s29 + $0x5b0] sm:$0xf] %vm6416_vm4, %v8008_v18  ;;  %v8009_v23 = vpack.c.bf16 %v4851_v20, %v4851_v20  ;;  %v2860_v24 = vadd.f32 %v11113_v61, %v2859_v21  ;;  %v8578_v25 = vpop.f32.mrb[89].mxu0  ;;  %v3636_v26 = vadd.f32 %v11113_v61, %v3635_v22  ;;  %v8966_v27 = vpop.f32.mrb[89].mxu1 }
 0x397   : > { %6588 = vst.msk [vmem:[%s9521_s29 + $0x2ac] sm:$0xf] %vm6416_vm4, %v7815_v19  ;;  %v2862_v28 = vpop.f32.mrb[90].mxu0  ;;  %v3638_v29 = vpop.f32.mrb[90].mxu1 }
 0x398   : > { %6782 = vst.msk [vmem:[%s9521_s29 + $0x5b4] sm:$0xf] %vm6416_vm4, %v8009_v23  ;;  %vm3886_vm12 = vcmp.ge.f32.partialorder %v2860_v24, 0.0  ;;  %v4272_v30 = vmul.f32 0.01, %v2860_v24  ;;  %v2863_v31 = vadd.f32 %v11113_v61, %v2862_v28  ;;  %v8579_v32 = vpop.f32.mrb[91].mxu0  ;;  %v3639_v35 = vadd.f32 %v11113_v61, %v3638_v29 }
 0x399   : > { %vm4080_vm13 = vcmp.ge.f32.partialorder %v3636_v26, 0.0  ;;  %v8967_v33 = vpop.f32.mrb[91].mxu1  ;;  %v4466_v34 = vmul.f32 0.01, %v3636_v26 }
 0x39a   : > { %v4658_v36 = vsel %vm3886_vm12, %v2860_v24, %v4272_v30  ;;  %vm3887_vm14 = vcmp.ge.f32.partialorder %v2863_v31, 0.0  ;;  %v4273_v37 = vmul.f32 0.01, %v2863_v31  ;;  %vm4081_vm15 = vcmp.ge.f32.partialorder %v3639_v35, 0.0 }
 0x39b   : > { %v7816_v38 = vpack.c.bf16 %v4658_v36, %v4658_v36  ;;  %v4852_v40 = vsel %vm4080_vm13, %v3636_v26, %v4466_v34  ;;  %v4467_v41 = vmul.f32 0.01, %v3639_v35 }
 0x39c   : > { %v4659_v42 = vsel %vm3887_vm14, %v2863_v31, %v4273_v37  ;;  %v8010_v58 = vpack.c.bf16 %v4852_v40, %v4852_v40 }
 0x39d   : > { %6589 = vst.msk [vmem:[%s9521_s29 + $0x2b0] sm:$0xf] %vm6416_vm4, %v7816_v38  ;;  %v7817_v43 = vpack.c.bf16 %v4659_v42, %v4659_v42  ;;  %v4853_v44 = vsel %vm4081_vm15, %v3639_v35, %v4467_v41  ;;  %v2867_v45 = vpop.f32.mrb[92].mxu0  ;;  %v3643_v46 = vpop.f32.mrb[92].mxu1 }
 0x39e   : > { %6783 = vst.msk [vmem:[%s9521_s29 + $0x5b8] sm:$0xf] %vm6416_vm4, %v8010_v58  ;;  %v8011_v47 = vpack.c.bf16 %v4853_v44, %v4853_v44  ;;  %v2868_v48 = vadd.f32 %v11113_v61, %v2867_v45  ;;  %v8582_v49 = vpop.f32.mrb[93].mxu0  ;;  %v3644_v50 = vadd.f32 %v11113_v61, %v3643_v46  ;;  %v8970_v0 = vpop.f32.mrb[93].mxu1 }
 0x39f   : > { %6590 = vst.msk [vmem:[%s9521_s29 + $0x2b4] sm:$0xf] %vm6416_vm4, %v7817_v43  ;;  %v2870_v51 = vpop.f32.mrb[94].mxu0  ;;  %v3646_v52 = vpop.f32.mrb[94].mxu1 }
 0x3a0   : > { %6784 = vst.msk [vmem:[%s9521_s29 + $0x5bc] sm:$0xf] %vm6416_vm4, %v8011_v47  ;;  %vm3888_vm2 = vcmp.ge.f32.partialorder %v2868_v48, 0.0  ;;  %v4274_v53 = vmul.f32 0.01, %v2868_v48  ;;  %v2871_v54 = vadd.f32 %v11113_v61, %v2870_v51  ;;  %v8583_v1 = vpop.f32.mrb[95].mxu0  ;;  %v3647_v57 = vadd.f32 %v11113_v61, %v3646_v52 }
 0x3a1   : > { %vm4082_vm3 = vcmp.ge.f32.partialorder %v3644_v50, 0.0  ;;  %v8971_v56 = vpop.f32.mrb[95].mxu1  ;;  %v4468_v9 = vmul.f32 0.01, %v3644_v50 }
 0x3a2   : > { %v4660_v59 = vsel %vm3888_vm2, %v2868_v48, %v4274_v53  ;;  %vm3889_vm5 = vcmp.ge.f32.partialorder %v2871_v54, 0.0  ;;  %v4275_v60 = vmul.f32 0.01, %v2871_v54  ;;  %vm4083_vm0 = vcmp.ge.f32.partialorder %v3647_v57, 0.0 }
 0x3a3   : > { %v7818_v55 = vpack.c.bf16 %v4660_v59, %v4660_v59  ;;  %v4854_v62 = vsel %vm4082_vm3, %v3644_v50, %v4468_v9  ;;  %v4469_v63 = vmul.f32 0.01, %v3647_v57 }
 0x3a4   : > { %v4661_v2 = vsel %vm3889_vm5, %v2871_v54, %v4275_v60  ;;  %v8012_v17 = vpack.c.bf16 %v4854_v62, %v4854_v62 }
 0x3a5   : > { %6591 = vst.msk [vmem:[%s9521_s29 + $0x2b8] sm:$0xf] %vm6416_vm4, %v7818_v55  ;;  %v7819_v3 = vpack.c.bf16 %v4661_v2, %v4661_v2  ;;  %v4855_v4 = vsel %vm4083_vm0, %v3647_v57, %v4469_v63  ;;  %v2875_v5 = vpop.f32.mrb[96].mxu0  ;;  %v3651_v6 = vpop.f32.mrb[96].mxu1 }
 0x3a6   : > { %6785 = vst.msk [vmem:[%s9521_s29 + $0x5c0] sm:$0xf] %vm6416_vm4, %v8012_v17  ;;  %v8013_v7 = vpack.c.bf16 %v4855_v4, %v4855_v4  ;;  %v2876_v8 = vadd.f32 %v11113_v61, %v2875_v5  ;;  %v8586_v10 = vpop.f32.mrb[97].mxu0  ;;  %v3652_v39 = vadd.f32 %v11113_v61, %v3651_v6  ;;  %v8974_v11 = vpop.f32.mrb[97].mxu1 }
 0x3a7   : > { %6592 = vst.msk [vmem:[%s9521_s29 + $0x2bc] sm:$0xf] %vm6416_vm4, %v7819_v3  ;;  %v2878_v12 = vpop.f32.mrb[98].mxu0  ;;  %v3654_v13 = vpop.f32.mrb[98].mxu1 }
 0x3a8   : > { %6786 = vst.msk [vmem:[%s9521_s29 + $0x5c4] sm:$0xf] %vm6416_vm4, %v8013_v7  ;;  %vm3890_vm6 = vcmp.ge.f32.partialorder %v2876_v8, 0.0  ;;  %v4276_v14 = vmul.f32 0.01, %v2876_v8  ;;  %v2879_v15 = vadd.f32 %v11113_v61, %v2878_v12  ;;  %v8587_v16 = vpop.f32.mrb[99].mxu0  ;;  %v3655_v20 = vadd.f32 %v11113_v61, %v3654_v13 }
 0x3a9   : > { %vm4084_vm7 = vcmp.ge.f32.partialorder %v3652_v39, 0.0  ;;  %v8975_v18 = vpop.f32.mrb[99].mxu1  ;;  %v4470_v19 = vmul.f32 0.01, %v3652_v39 }
 0x3aa   : > { %v4662_v21 = vsel %vm3890_vm6, %v2876_v8, %v4276_v14  ;;  %vm3891_vm8 = vcmp.ge.f32.partialorder %v2879_v15, 0.0  ;;  %v4277_v22 = vmul.f32 0.01, %v2879_v15  ;;  %vm4085_vm1 = vcmp.ge.f32.partialorder %v3655_v20, 0.0 }
 0x3ab   : > { %v7820_v23 = vpack.c.bf16 %v4662_v21, %v4662_v21  ;;  %v4856_v24 = vsel %vm4084_vm7, %v3652_v39, %v4470_v19  ;;  %v4471_v25 = vmul.f32 0.01, %v3655_v20 }
 0x3ac   : > { %v4663_v26 = vsel %vm3891_vm8, %v2879_v15, %v4277_v22  ;;  %v8014_v27 = vpack.c.bf16 %v4856_v24, %v4856_v24 }
 0x3ad   : > { %6593 = vst.msk [vmem:[%s9521_s29 + $0x2c0] sm:$0xf] %vm6416_vm4, %v7820_v23  ;;  %v7821_v28 = vpack.c.bf16 %v4663_v26, %v4663_v26  ;;  %v4857_v29 = vsel %vm4085_vm1, %v3655_v20, %v4471_v25  ;;  %v2883_v30 = vpop.f32.mrb[100].mxu0  ;;  %v3659_v31 = vpop.f32.mrb[100].mxu1 }
 0x3ae   : > { %6787 = vst.msk [vmem:[%s9521_s29 + $0x5c8] sm:$0xf] %vm6416_vm4, %v8014_v27  ;;  %v8015_v32 = vpack.c.bf16 %v4857_v29, %v4857_v29  ;;  %v2884_v33 = vadd.f32 %v11113_v61, %v2883_v30  ;;  %v8590_v34 = vpop.f32.mrb[101].mxu0  ;;  %v3660_v35 = vadd.f32 %v11113_v61, %v3659_v31  ;;  %v8978_v36 = vpop.f32.mrb[101].mxu1 }
 0x3af   : > { %6594 = vst.msk [vmem:[%s9521_s29 + $0x2c4] sm:$0xf] %vm6416_vm4, %v7821_v28  ;;  %v2886_v37 = vpop.f32.mrb[102].mxu0  ;;  %v3662_v38 = vpop.f32.mrb[102].mxu1 }
 0x3b0   : > { %6788 = vst.msk [vmem:[%s9521_s29 + $0x5cc] sm:$0xf] %vm6416_vm4, %v8015_v32  ;;  %vm3892_vm9 = vcmp.ge.f32.partialorder %v2884_v33, 0.0  ;;  %v4278_v40 = vmul.f32 0.01, %v2884_v33  ;;  %v2887_v41 = vadd.f32 %v11113_v61, %v2886_v37  ;;  %v8591_v42 = vpop.f32.mrb[103].mxu0  ;;  %v3663_v44 = vadd.f32 %v11113_v61, %v3662_v38 }
 0x3b1   : > { %vm4086_vm10 = vcmp.ge.f32.partialorder %v3660_v35, 0.0  ;;  %v8979_v58 = vpop.f32.mrb[103].mxu1  ;;  %v4472_v43 = vmul.f32 0.01, %v3660_v35 }
 0x3b2   : > { %v4664_v45 = vsel %vm3892_vm9, %v2884_v33, %v4278_v40  ;;  %vm3893_vm11 = vcmp.ge.f32.partialorder %v2887_v41, 0.0  ;;  %v4279_v46 = vmul.f32 0.01, %v2887_v41  ;;  %vm4087_vm12 = vcmp.ge.f32.partialorder %v3663_v44, 0.0 }
 0x3b3   : > { %v7822_v47 = vpack.c.bf16 %v4664_v45, %v4664_v45  ;;  %v4858_v48 = vsel %vm4086_vm10, %v3660_v35, %v4472_v43  ;;  %v4473_v49 = vmul.f32 0.01, %v3663_v44 }
 0x3b4   : > { %v4665_v50 = vsel %vm3893_vm11, %v2887_v41, %v4279_v46  ;;  %v8016_v0 = vpack.c.bf16 %v4858_v48, %v4858_v48 }
 0x3b5   : > { %6595 = vst.msk [vmem:[%s9521_s29 + $0x2c8] sm:$0xf] %vm6416_vm4, %v7822_v47  ;;  %v7823_v51 = vpack.c.bf16 %v4665_v50, %v4665_v50  ;;  %v4859_v52 = vsel %vm4087_vm12, %v3663_v44, %v4473_v49  ;;  %v2891_v53 = vpop.f32.mrb[104].mxu0  ;;  %v3667_v54 = vpop.f32.mrb[104].mxu1 }
 0x3b6   : > { %6789 = vst.msk [vmem:[%s9521_s29 + $0x5d0] sm:$0xf] %vm6416_vm4, %v8016_v0  ;;  %v8017_v1 = vpack.c.bf16 %v4859_v52, %v4859_v52  ;;  %v2892_v56 = vadd.f32 %v11113_v61, %v2891_v53  ;;  %v8594_v9 = vpop.f32.mrb[105].mxu0  ;;  %v3668_v57 = vadd.f32 %v11113_v61, %v3667_v54  ;;  %v8982_v59 = vpop.f32.mrb[105].mxu1 }
 0x3b7   : > { %6596 = vst.msk [vmem:[%s9521_s29 + $0x2cc] sm:$0xf] %vm6416_vm4, %v7823_v51  ;;  %v2894_v60 = vpop.f32.mrb[106].mxu0  ;;  %v3670_v55 = vpop.f32.mrb[106].mxu1 }
 0x3b8   : > { %6790 = vst.msk [vmem:[%s9521_s29 + $0x5d4] sm:$0xf] %vm6416_vm4, %v8017_v1  ;;  %vm3894_vm13 = vcmp.ge.f32.partialorder %v2892_v56, 0.0  ;;  %v4280_v62 = vmul.f32 0.01, %v2892_v56  ;;  %v2895_v63 = vadd.f32 %v11113_v61, %v2894_v60  ;;  %v8595_v2 = vpop.f32.mrb[107].mxu0  ;;  %v3671_v4 = vadd.f32 %v11113_v61, %v3670_v55 }
 0x3b9   : > { %vm4088_vm14 = vcmp.ge.f32.partialorder %v3668_v57, 0.0  ;;  %v8983_v17 = vpop.f32.mrb[107].mxu1  ;;  %v4474_v3 = vmul.f32 0.01, %v3668_v57 }
 0x3ba   : > { %v4666_v5 = vsel %vm3894_vm13, %v2892_v56, %v4280_v62  ;;  %vm3895_vm15 = vcmp.ge.f32.partialorder %v2895_v63, 0.0  ;;  %v4281_v6 = vmul.f32 0.01, %v2895_v63  ;;  %vm4089_vm2 = vcmp.ge.f32.partialorder %v3671_v4, 0.0 }
 0x3bb   : > { %v7824_v7 = vpack.c.bf16 %v4666_v5, %v4666_v5  ;;  %v4860_v8 = vsel %vm4088_vm14, %v3668_v57, %v4474_v3  ;;  %v4475_v10 = vmul.f32 0.01, %v3671_v4 }
 0x3bc   : > { %v4667_v39 = vsel %vm3895_vm15, %v2895_v63, %v4281_v6  ;;  %v8018_v11 = vpack.c.bf16 %v4860_v8, %v4860_v8 }
 0x3bd   : > { %6597 = vst.msk [vmem:[%s9521_s29 + $0x2d0] sm:$0xf] %vm6416_vm4, %v7824_v7  ;;  %v7825_v12 = vpack.c.bf16 %v4667_v39, %v4667_v39  ;;  %v4861_v13 = vsel %vm4089_vm2, %v3671_v4, %v4475_v10  ;;  %v2899_v14 = vpop.f32.mrb[108].mxu0  ;;  %v3675_v15 = vpop.f32.mrb[108].mxu1 }
 0x3be   : > { %6791 = vst.msk [vmem:[%s9521_s29 + $0x5d8] sm:$0xf] %vm6416_vm4, %v8018_v11  ;;  %v8019_v16 = vpack.c.bf16 %v4861_v13, %v4861_v13  ;;  %v2900_v18 = vadd.f32 %v11113_v61, %v2899_v14  ;;  %v8598_v19 = vpop.f32.mrb[109].mxu0  ;;  %v3676_v20 = vadd.f32 %v11113_v61, %v3675_v15  ;;  %v8986_v21 = vpop.f32.mrb[109].mxu1 }
 0x3bf   : > { %6598 = vst.msk [vmem:[%s9521_s29 + $0x2d4] sm:$0xf] %vm6416_vm4, %v7825_v12  ;;  %v2902_v22 = vpop.f32.mrb[110].mxu0  ;;  %v3678_v23 = vpop.f32.mrb[110].mxu1 }
 0x3c0   : > { %6792 = vst.msk [vmem:[%s9521_s29 + $0x5dc] sm:$0xf] %vm6416_vm4, %v8019_v16  ;;  %vm3896_vm3 = vcmp.ge.f32.partialorder %v2900_v18, 0.0  ;;  %v4282_v24 = vmul.f32 0.01, %v2900_v18  ;;  %v2903_v25 = vadd.f32 %v11113_v61, %v2902_v22  ;;  %v8599_v26 = vpop.f32.mrb[111].mxu0  ;;  %v3679_v29 = vadd.f32 %v11113_v61, %v3678_v23 }
 0x3c1   : > { %vm4090_vm5 = vcmp.ge.f32.partialorder %v3676_v20, 0.0  ;;  %v8987_v27 = vpop.f32.mrb[111].mxu1  ;;  %v4476_v28 = vmul.f32 0.01, %v3676_v20 }
 0x3c2   : > { %v4668_v30 = vsel %vm3896_vm3, %v2900_v18, %v4282_v24  ;;  %vm3897_vm0 = vcmp.ge.f32.partialorder %v2903_v25, 0.0  ;;  %v4283_v31 = vmul.f32 0.01, %v2903_v25  ;;  %vm4091_vm6 = vcmp.ge.f32.partialorder %v3679_v29, 0.0 }
 0x3c3   : > { %v7826_v32 = vpack.c.bf16 %v4668_v30, %v4668_v30  ;;  %v4862_v33 = vsel %vm4090_vm5, %v3676_v20, %v4476_v28  ;;  %v4477_v34 = vmul.f32 0.01, %v3679_v29 }
 0x3c4   : > { %v4669_v35 = vsel %vm3897_vm0, %v2903_v25, %v4283_v31  ;;  %v8020_v36 = vpack.c.bf16 %v4862_v33, %v4862_v33 }
 0x3c5   : > { %6599 = vst.msk [vmem:[%s9521_s29 + $0x2d8] sm:$0xf] %vm6416_vm4, %v7826_v32  ;;  %v7827_v37 = vpack.c.bf16 %v4669_v35, %v4669_v35  ;;  %v4863_v38 = vsel %vm4091_vm6, %v3679_v29, %v4477_v34  ;;  %v2907_v40 = vpop.f32.mrb[112].mxu0  ;;  %v3683_v41 = vpop.f32.mrb[112].mxu1 }
 0x3c6   : > { %6793 = vst.msk [vmem:[%s9521_s29 + $0x5e0] sm:$0xf] %vm6416_vm4, %v8020_v36  ;;  %v8021_v42 = vpack.c.bf16 %v4863_v38, %v4863_v38  ;;  %v2908_v58 = vadd.f32 %v11113_v61, %v2907_v40  ;;  %v8602_v43 = vpop.f32.mrb[113].mxu0  ;;  %v3684_v44 = vadd.f32 %v11113_v61, %v3683_v41  ;;  %v8990_v45 = vpop.f32.mrb[113].mxu1 }
 0x3c7   : > { %6600 = vst.msk [vmem:[%s9521_s29 + $0x2dc] sm:$0xf] %vm6416_vm4, %v7827_v37  ;;  %v2910_v46 = vpop.f32.mrb[114].mxu0  ;;  %v3686_v47 = vpop.f32.mrb[114].mxu1 }
 0x3c8   : > { %6794 = vst.msk [vmem:[%s9521_s29 + $0x5e4] sm:$0xf] %vm6416_vm4, %v8021_v42  ;;  %vm3898_vm7 = vcmp.ge.f32.partialorder %v2908_v58, 0.0  ;;  %v4284_v48 = vmul.f32 0.01, %v2908_v58  ;;  %v2911_v49 = vadd.f32 %v11113_v61, %v2910_v46  ;;  %v8603_v50 = vpop.f32.mrb[115].mxu0  ;;  %v3687_v52 = vadd.f32 %v11113_v61, %v3686_v47 }
 0x3c9   : > { %vm4092_vm8 = vcmp.ge.f32.partialorder %v3684_v44, 0.0  ;;  %v8991_v0 = vpop.f32.mrb[115].mxu1  ;;  %v4478_v51 = vmul.f32 0.01, %v3684_v44 }
 0x3ca   : > { %v4670_v53 = vsel %vm3898_vm7, %v2908_v58, %v4284_v48  ;;  %vm3899_vm1 = vcmp.ge.f32.partialorder %v2911_v49, 0.0  ;;  %v4285_v54 = vmul.f32 0.01, %v2911_v49  ;;  %vm4093_vm9 = vcmp.ge.f32.partialorder %v3687_v52, 0.0 }
 0x3cb   : > { %v7828_v1 = vpack.c.bf16 %v4670_v53, %v4670_v53  ;;  %v4864_v56 = vsel %vm4092_vm8, %v3684_v44, %v4478_v51  ;;  %v4479_v9 = vmul.f32 0.01, %v3687_v52 }
 0x3cc   : > { %v4671_v57 = vsel %vm3899_vm1, %v2911_v49, %v4285_v54  ;;  %v8022_v59 = vpack.c.bf16 %v4864_v56, %v4864_v56 }
 0x3cd   : > { %6601 = vst.msk [vmem:[%s9521_s29 + $0x2e0] sm:$0xf] %vm6416_vm4, %v7828_v1  ;;  %v7829_v60 = vpack.c.bf16 %v4671_v57, %v4671_v57  ;;  %v4865_v55 = vsel %vm4093_vm9, %v3687_v52, %v4479_v9  ;;  %v2915_v62 = vpop.f32.mrb[116].mxu0  ;;  %v3691_v63 = vpop.f32.mrb[116].mxu1 }
 0x3ce   : > { %6795 = vst.msk [vmem:[%s9521_s29 + $0x5e8] sm:$0xf] %vm6416_vm4, %v8022_v59  ;;  %v8023_v2 = vpack.c.bf16 %v4865_v55, %v4865_v55  ;;  %v2916_v17 = vadd.f32 %v11113_v61, %v2915_v62  ;;  %v8606_v3 = vpop.f32.mrb[117].mxu0  ;;  %v3692_v4 = vadd.f32 %v11113_v61, %v3691_v63  ;;  %v8994_v5 = vpop.f32.mrb[117].mxu1 }
 0x3cf   : > { %6602 = vst.msk [vmem:[%s9521_s29 + $0x2e4] sm:$0xf] %vm6416_vm4, %v7829_v60  ;;  %v2918_v6 = vpop.f32.mrb[118].mxu0  ;;  %v3694_v7 = vpop.f32.mrb[118].mxu1 }
 0x3d0   : > { %6796 = vst.msk [vmem:[%s9521_s29 + $0x5ec] sm:$0xf] %vm6416_vm4, %v8023_v2  ;;  %vm3900_vm10 = vcmp.ge.f32.partialorder %v2916_v17, 0.0  ;;  %v4286_v8 = vmul.f32 0.01, %v2916_v17  ;;  %v2919_v10 = vadd.f32 %v11113_v61, %v2918_v6  ;;  %v8607_v39 = vpop.f32.mrb[119].mxu0  ;;  %v3695_v13 = vadd.f32 %v11113_v61, %v3694_v7 }
 0x3d1   : > { %vm4094_vm11 = vcmp.ge.f32.partialorder %v3692_v4, 0.0  ;;  %v8995_v11 = vpop.f32.mrb[119].mxu1  ;;  %v4480_v12 = vmul.f32 0.01, %v3692_v4 }
 0x3d2   : > { %v4672_v14 = vsel %vm3900_vm10, %v2916_v17, %v4286_v8  ;;  %vm3901_vm12 = vcmp.ge.f32.partialorder %v2919_v10, 0.0  ;;  %v4287_v15 = vmul.f32 0.01, %v2919_v10  ;;  %vm4095_vm13 = vcmp.ge.f32.partialorder %v3695_v13, 0.0 }
 0x3d3   : > { %v7830_v16 = vpack.c.bf16 %v4672_v14, %v4672_v14  ;;  %v4866_v18 = vsel %vm4094_vm11, %v3692_v4, %v4480_v12  ;;  %v4481_v19 = vmul.f32 0.01, %v3695_v13 }
 0x3d4   : > { %v4673_v20 = vsel %vm3901_vm12, %v2919_v10, %v4287_v15  ;;  %v8024_v21 = vpack.c.bf16 %v4866_v18, %v4866_v18 }
 0x3d5   : > { %6603 = vst.msk [vmem:[%s9521_s29 + $0x2e8] sm:$0xf] %vm6416_vm4, %v7830_v16  ;;  %v7831_v22 = vpack.c.bf16 %v4673_v20, %v4673_v20  ;;  %v4867_v23 = vsel %vm4095_vm13, %v3695_v13, %v4481_v19  ;;  %v2923_v24 = vpop.f32.mrb[120].mxu0  ;;  %v3699_v25 = vpop.f32.mrb[120].mxu1 }
 0x3d6   : > { %6797 = vst.msk [vmem:[%s9521_s29 + $0x5f0] sm:$0xf] %vm6416_vm4, %v8024_v21  ;;  %v8025_v26 = vpack.c.bf16 %v4867_v23, %v4867_v23  ;;  %v2924_v27 = vadd.f32 %v11113_v61, %v2923_v24  ;;  %v8610_v28 = vpop.f32.mrb[121].mxu0  ;;  %v3700_v29 = vadd.f32 %v11113_v61, %v3699_v25  ;;  %v8998_v30 = vpop.f32.mrb[121].mxu1 }
 0x3d7   : > { %6604 = vst.msk [vmem:[%s9521_s29 + $0x2ec] sm:$0xf] %vm6416_vm4, %v7831_v22  ;;  %v2926_v31 = vpop.f32.mrb[122].mxu0  ;;  %v3702_v32 = vpop.f32.mrb[122].mxu1 }
 0x3d8   : > { %6798 = vst.msk [vmem:[%s9521_s29 + $0x5f4] sm:$0xf] %vm6416_vm4, %v8025_v26  ;;  %vm3902_vm14 = vcmp.ge.f32.partialorder %v2924_v27, 0.0  ;;  %v4288_v33 = vmul.f32 0.01, %v2924_v27  ;;  %v2927_v34 = vadd.f32 %v11113_v61, %v2926_v31  ;;  %v8611_v35 = vpop.f32.mrb[123].mxu0  ;;  %v3703_v38 = vadd.f32 %v11113_v61, %v3702_v32 }
 0x3d9   : > { %vm4096_vm15 = vcmp.ge.f32.partialorder %v3700_v29, 0.0  ;;  %v8999_v36 = vpop.f32.mrb[123].mxu1  ;;  %v4482_v37 = vmul.f32 0.01, %v3700_v29 }
 0x3da   : > { %v4674_v40 = vsel %vm3902_vm14, %v2924_v27, %v4288_v33  ;;  %vm3903_vm2 = vcmp.ge.f32.partialorder %v2927_v34, 0.0  ;;  %v4289_v41 = vmul.f32 0.01, %v2927_v34  ;;  %vm4097_vm3 = vcmp.ge.f32.partialorder %v3703_v38, 0.0 }
 0x3db   : > { %v7832_v42 = vpack.c.bf16 %v4674_v40, %v4674_v40  ;;  %v4868_v58 = vsel %vm4096_vm15, %v3700_v29, %v4482_v37  ;;  %v4483_v43 = vmul.f32 0.01, %v3703_v38 }
 0x3dc   : > { %v4675_v44 = vsel %vm3903_vm2, %v2927_v34, %v4289_v41  ;;  %v8026_v45 = vpack.c.bf16 %v4868_v58, %v4868_v58 }
 0x3dd   : > { %6605 = vst.msk [vmem:[%s9521_s29 + $0x2f0] sm:$0xf] %vm6416_vm4, %v7832_v42  ;;  %v7833_v46 = vpack.c.bf16 %v4675_v44, %v4675_v44  ;;  %v4869_v47 = vsel %vm4097_vm3, %v3703_v38, %v4483_v43  ;;  %v2931_v48 = vpop.f32.mrb[124].mxu0  ;;  %v3707_v49 = vpop.f32.mrb[124].mxu1 }
 0x3de   : > { %6799 = vst.msk [vmem:[%s9521_s29 + $0x5f8] sm:$0xf] %vm6416_vm4, %v8026_v45  ;;  %v8027_v50 = vpack.c.bf16 %v4869_v47, %v4869_v47  ;;  %v2932_v0 = vadd.f32 %v11113_v61, %v2931_v48  ;;  %v8614_v51 = vpop.f32.mrb[125].mxu0  ;;  %v3708_v52 = vadd.f32 %v11113_v61, %v3707_v49  ;;  %v9002_v53 = vpop.f32.mrb[125].mxu1 }
 0x3df   : > { %6606 = vst.msk [vmem:[%s9521_s29 + $0x2f4] sm:$0xf] %vm6416_vm4, %v7833_v46  ;;  %v2934_v54 = vpop.f32.mrb[126].mxu0  ;;  %v3710_v1 = vpop.f32.mrb[126].mxu1 }
 0x3e0   : > { %6800 = vst.msk [vmem:[%s9521_s29 + $0x5fc] sm:$0xf] %vm6416_vm4, %v8027_v50  ;;  %vm3904_vm5 = vcmp.ge.f32.partialorder %v2932_v0, 0.0  ;;  %v4290_v56 = vmul.f32 0.01, %v2932_v0  ;;  %v2935_v9 = vadd.f32 %v11113_v61, %v2934_v54  ;;  %v8615_v57 = vpop.f32.mrb[127].mxu0  ;;  %v3711_v55 = vadd.f32 %v11113_v61, %v3710_v1 }
 0x3e1   : > { %vm4098_vm0 = vcmp.ge.f32.partialorder %v3708_v52, 0.0  ;;  %v9003_v59 = vpop.f32.mrb[127].mxu1  ;;  %v4484_v60 = vmul.f32 0.01, %v3708_v52 }
 0x3e2   : > { %v4676_v62 = vsel %vm3904_vm5, %v2932_v0, %v4290_v56  ;;  %vm3905_vm6 = vcmp.ge.f32.partialorder %v2935_v9, 0.0  ;;  %v4291_v63 = vmul.f32 0.01, %v2935_v9  ;;  %vm4099_vm7 = vcmp.ge.f32.partialorder %v3711_v55, 0.0 }
 0x3e3   : > { %v7834_v2 = vpack.c.bf16 %v4676_v62, %v4676_v62  ;;  %v4870_v17 = vsel %vm4098_vm0, %v3708_v52, %v4484_v60  ;;  %v4485_v3 = vmul.f32 0.01, %v3711_v55 }
 0x3e4   : > { %v4677_v4 = vsel %vm3905_vm6, %v2935_v9, %v4291_v63  ;;  %v8028_v5 = vpack.c.bf16 %v4870_v17, %v4870_v17 }
 0x3e5   : > { %6607 = vst.msk [vmem:[%s9521_s29 + $0x2f8] sm:$0xf] %vm6416_vm4, %v7834_v2  ;;  %v7835_v6 = vpack.c.bf16 %v4677_v4, %v4677_v4  ;;  %v4871_v7 = vsel %vm4099_vm7, %v3711_v55, %v4485_v3  ;;  %v2939_v8 = vpop.f32.mrb[128].mxu0 }
 0x3e6   : > { %6801 = vst.msk [vmem:[%s9521_s29 + $0x600] sm:$0xf] %vm6416_vm4, %v8028_v5  ;;  %v8029_v10 = vpack.c.bf16 %v4871_v7, %v4871_v7  ;;  %v2940_v39 = vadd.f32 %v11113_v61, %v2939_v8  ;;  %v8618_v11 = vpop.f32.mrb[129].mxu0 }
 0x3e7   : > { %6608 = vst.msk [vmem:[%s9521_s29 + $0x2fc] sm:$0xf] %vm6416_vm4, %v7835_v6  ;;  %v2942_v12 = vpop.f32.mrb[130].mxu0 }
 0x3e8   : > { %6802 = vst.msk [vmem:[%s9521_s29 + $0x604] sm:$0xf] %vm6416_vm4, %v8029_v10  ;;  %vm3906_vm8 = vcmp.ge.f32.partialorder %v2940_v39, 0.0  ;;  %v4292_v13 = vmul.f32 0.01, %v2940_v39  ;;  %v2943_v14 = vadd.f32 %v11113_v61, %v2942_v12  ;;  %v8619_v15 = vpop.f32.mrb[131].mxu0 }
 0x3ea   : > { %v4678_v16 = vsel %vm3906_vm8, %v2940_v39, %v4292_v13  ;;  %vm3907_vm1 = vcmp.ge.f32.partialorder %v2943_v14, 0.0  ;;  %v4293_v18 = vmul.f32 0.01, %v2943_v14 }
 0x3eb   : > { %v7836_v19 = vpack.c.bf16 %v4678_v16, %v4678_v16 }
 0x3ec   : > { %v4679_v20 = vsel %vm3907_vm1, %v2943_v14, %v4293_v18 }
 0x3ed   : > { %6609 = vst.msk [vmem:[%s9521_s29 + $0x300] sm:$0xf] %vm6416_vm4, %v7836_v19  ;;  %v7837_v21 = vpack.c.bf16 %v4679_v20, %v4679_v20 }
 0x3ef   : > { %6610 = vst.msk [vmem:[%s9521_s29 + $0x304] sm:$0xf] %vm6416_vm4, %v7837_v21 }
 0x3f0 PF: > { %s13_s12 = sadd.s32 1, %s9228_s12  }
 0x3f1   : > { %p10_p4 = scmp.ge.s32.totalorder %s13_s12, 4  }
 0x3f3   :  { %12 = sbr.rel (!%p10_p4) target bundleno = 1 (0x1), region = 62 }

</bundles_post_ra>
